<compile_context>
chip_gen: v7x
topology: tpu7x:2x2x1
jax: 0.10.0
libtpu: 0.0.40
codegen_flags: <defaults>
</compile_context>

<pallas_src>
import functools

import jax
import jax.numpy as jnp
import numpy as np
from jax.experimental import pallas as pl
from jax.experimental.pallas import tpu as pltpu

CHANNELS = 4
REDUCTION = 16
MID = max(CHANNELS // REDUCTION, 8)          # matches max(channels // reduction, 8)
KSIZE = 7
PAD = 3
BN_EPS = 1e-5

# Row offsets inside the packed MLP-parameter slab (each parameter 8-sublane aligned so
# in-kernel slices start on tile boundaries).
_W1_ROW, _B1_ROW, _W2_ROW, _B2_ROW = 0, 8, 16, 24
_SLAB_ROWS = 32


def _hardswish(z):
    # nn.Hardswish: z * relu6(z + 3) / 6
    return z * jnp.clip(z + 3.0, 0.0, 6.0) * (1.0 / 6.0)


def cbam_kernel(x_ref, mlp_ref, cs_ref, o_ref, *, h, w, mid):
    b, c, hw = x_ref.shape
    x = x_ref[...]                                   # (b, c, h*w)  lane-dense f32

    # ---------------- channel attention (one fused MLP pass over avg||max) -------------
    avg_pool = jnp.sum(x, axis=-1) * (1.0 / hw)      # (b, c)  single lane reduce
    max_pool = jnp.max(x, axis=-1)                   # (b, c)
    pooled = jnp.concatenate([avg_pool, max_pool], axis=0)      # (2b, c)

    slab = mlp_ref[...]                              # (32, max(mid, c))
    w1 = slab[_W1_ROW:_W1_ROW + c, :mid]             # (c, mid)
    b1 = slab[_B1_ROW:_B1_ROW + 1, :mid]             # (1, mid)
    w2 = slab[_W2_ROW:_W2_ROW + mid, :c]             # (mid, c)
    b2 = slab[_B2_ROW:_B2_ROW + 1, :c]               # (1, c)

    h1 = jnp.sum(pooled[:, :, None] * w1[None, :, :], axis=1) + b1      # (2b, mid)
    h1 = _hardswish(h1)
    mlp_out = jnp.sum(h1[:, :, None] * w2[None, :, :], axis=1) + b2     # (2b, c)

    ch_att = jax.nn.sigmoid(mlp_out[:b, :] + mlp_out[b:, :])            # (b, c)
    xc = x * ch_att[:, :, None]                      # (b, c, h*w)

    # ---------------- spatial attention ----------------
    sp_max = jnp.max(xc, axis=1)                     # (b, h*w)  conv in-channel 0
    sp_avg = jnp.sum(xc, axis=1) * (1.0 / c)         # (b, h*w)  conv in-channel 1
    stacked = jnp.concatenate([sp_max, sp_avg], axis=0)   # (2b, h*w) sublane-stacked

    # Hoisted border compares (drop trivially-true halves); w, h are powers of two.
    col = jax.lax.broadcasted_iota(jnp.int32, (2 * b, hw), 1)
    xpos = jnp.bitwise_and(col, w - 1)               # col % w
    ypos = jnp.right_shift(col, int(np.log2(w)))     # col // w
    row_is_max = jax.lax.broadcasted_iota(jnp.int32, (2 * b, hw), 0) < b

    def axis_cmp(pos, extent, d):
        if d == 0:
            return None                              # always valid
        if d < 0:
            return pos >= -d                         # pos + d >= 0
        return pos < extent - d                      # pos + d < extent

    ycmp = [axis_cmp(ypos, h, dy) for dy in range(-PAD, PAD + 1)]
    xcmp = [axis_cmp(xpos, w, dx) for dx in range(-PAD, PAD + 1)]

    conv_b = cs_ref[2 * KSIZE * KSIZE + 0]
    gamma = cs_ref[2 * KSIZE * KSIZE + 1]
    beta = cs_ref[2 * KSIZE * KSIZE + 2]

    # Conv2d(2, 1, k=7, pad=3): 49 rolled-in-register taps on the stacked (2b, h*w) plane,
    # spread over 4 independent accumulator chains (fills the 4 VALU slots per bundle).
    accs = [jnp.zeros((2 * b, hw), jnp.float32) for _ in range(4)]
    tap = 0
    for dy in range(-PAD, PAD + 1):
        for dx in range(-PAD, PAD + 1):
            shift = (-(dy * w + dx)) % hw
            rolled = stacked if shift == 0 else pltpu.roll(stacked, shift, 1)
            k_idx = (dy + PAD) * KSIZE + (dx + PAD)
            w_max = cs_ref[k_idx]                        # weight, ci = 0 (max plane)
            w_avg = cs_ref[KSIZE * KSIZE + k_idx]        # weight, ci = 1 (avg plane)
            wsel = jnp.where(row_is_max, w_max, w_avg)   # per-sublane conv weight
            ym, xm = ycmp[dy + PAD], xcmp[dx + PAD]
            if ym is None and xm is None:
                wv = wsel
            elif ym is None:
                wv = jnp.where(xm, wsel, 0.0)
            elif xm is None:
                wv = jnp.where(ym, wsel, 0.0)
            else:
                wv = jnp.where(jnp.logical_and(ym, xm), wsel, 0.0)
            accs[tap % 4] = accs[tap % 4] + wv * rolled
            tap += 1
    conv2 = (accs[0] + accs[1]) + (accs[2] + accs[3])    # (2b, h*w)
    conv = conv2[:b, :] + conv2[b:, :] + conv_b          # (b, h*w): sum the two channels

    # BatchNorm2d(1) in training mode: batch statistics over (N, H, W), biased variance.
    mu = jnp.mean(conv, keepdims=True)
    var = jnp.mean((conv - mu) ** 2, keepdims=True)
    norm = (conv - mu) * jax.lax.rsqrt(var + BN_EPS)
    sp_att = jax.nn.sigmoid(gamma * norm + beta)         # (b, h*w)

    o_ref[...] = xc * sp_att[:, None, :]                 # lane-dense, unmasked stores


def _pack_params(params):
    """Pack the 4 tiny MLP params into one VMEM slab and conv/BN scalars into one SMEM vec."""
    w1, b1, w2, b2, convw_flat, scal = params
    c, mid = w1.shape
    slab = jnp.zeros((_SLAB_ROWS, max(mid, c)), jnp.float32)
    slab = slab.at[_W1_ROW:_W1_ROW + c, :mid].set(w1)
    slab = slab.at[_B1_ROW:_B1_ROW + 1, :mid].set(b1)
    slab = slab.at[_W2_ROW:_W2_ROW + mid, :c].set(w2)
    slab = slab.at[_B2_ROW:_B2_ROW + 1, :c].set(b2)
    conv_scal = jnp.concatenate([convw_flat.astype(jnp.float32),
                                 scal.astype(jnp.float32)])
    return slab, conv_scal, mid


def cbam_forward(x, params):
    b, c, h, w = x.shape
    hw = h * w
    assert w & (w - 1) == 0, "kernel border-mask math assumes w is a power of two"
    slab, conv_scal, mid = _pack_params(params)        # in production: pack once at init
    x_flat = x.reshape(b, c, hw)                       # lane-dense: last dim = h*w

    kernel = functools.partial(cbam_kernel, h=h, w=w, mid=mid)
    cost = pl.CostEstimate(
        flops=2 * 2 * KSIZE * KSIZE * b * hw + 24 * b * c * hw,
        transcendentals=b * hw + 2 * b * c,
        bytes_accessed=2 * x.size * 4 + (slab.size + conv_scal.size) * 4,
    )
    out_flat = pl.pallas_call(
        kernel,
        out_shape=jax.ShapeDtypeStruct((b, c, hw), jnp.float32),
        in_specs=[
            pl.BlockSpec(memory_space=pltpu.MemorySpace.VMEM),   # x (flattened)
            pl.BlockSpec(memory_space=pltpu.MemorySpace.VMEM),   # packed MLP params
            pl.BlockSpec(memory_space=pltpu.MemorySpace.SMEM),   # conv w + [bias, gamma, beta]
        ],
        out_specs=pl.BlockSpec(memory_space=pltpu.MemorySpace.VMEM),
        cost_estimate=cost,
    )(x_flat, slab, conv_scal)
    return out_flat.reshape(b, c, h, w)


def cbam_reference(x, params):
    """Pure-JAX reference mirroring the PyTorch forward (training-mode BN)."""
    w1, b1, w2, b2, convw_flat, scal = params
    conv_w = convw_flat.reshape(1, 2, KSIZE, KSIZE)
    conv_b, gamma, beta = scal[0], scal[1], scal[2]

    def mlp(p):
        h1 = p @ w1 + b1
        h1 = h1 * jnp.clip(h1 + 3.0, 0.0, 6.0) / 6.0
        return h1 @ w2 + b2

    avg_pool = jnp.mean(x, axis=(2, 3))
    max_pool = jnp.max(x, axis=(2, 3))
    b, c, h, w = x.shape
    ch_att = jax.nn.sigmoid(mlp(avg_pool) + mlp(max_pool)).reshape(b, c, 1, 1)
    xc = x * ch_att
    sp_max = jnp.max(xc, axis=1, keepdims=True)
    sp_avg = jnp.mean(xc, axis=1, keepdims=True)
    sp_in = jnp.concatenate([sp_max, sp_avg], axis=1)
    conv = jax.lax.conv_general_dilated(
        sp_in, conv_w, window_strides=(1, 1),
        padding=((PAD, PAD), (PAD, PAD)),
        dimension_numbers=("NCHW", "OIHW", "NCHW")) + conv_b
    mu = jnp.mean(conv)
    var = jnp.mean((conv - mu) ** 2)
    norm = (conv - mu) * jax.lax.rsqrt(var + BN_EPS)
    sp_att = jax.nn.sigmoid(gamma * norm + beta)
    return xc * sp_att


if __name__ == "__main__":
    key = jax.random.PRNGKey(0)
    kx, k1, k2, k3, k4, k5, k6 = jax.random.split(key, 7)
    b, c, h, w = 2, CHANNELS, 16, 16

    x = jax.random.normal(kx, (b, c, h, w), jnp.float32)

    # Deterministic synthetic parameters (shapes follow the module's __init__).
    w1 = jax.random.normal(k1, (c, MID), jnp.float32) * 0.5        # Linear(c -> mid).weight.T
    b1 = jax.random.normal(k2, (1, MID), jnp.float32) * 0.1
    w2 = jax.random.normal(k3, (MID, c), jnp.float32) * 0.5        # Linear(mid -> c).weight.T
    b2 = jax.random.normal(k4, (1, c), jnp.float32) * 0.1
    convw = jax.random.normal(k5, (2 * KSIZE * KSIZE,), jnp.float32) * 0.1  # Conv2d(2,1,7) flat [ci,ky,kx]
    conv_b = jax.random.normal(k6, (), jnp.float32) * 0.1
    scal = jnp.array([conv_b, 1.0, 0.0], jnp.float32)              # conv bias, BN gamma, BN beta

    params = (w1, b1, w2, b2, convw, scal)

    out = jax.block_until_ready(cbam_forward(x, params))
    ref = cbam_reference(x, params)
    np.testing.assert_allclose(np.asarray(out), np.asarray(ref), rtol=2e-3, atol=2e-3)
    print("KERNEL_OK")
</pallas_src>

<mosaic_0001>
module attributes {stable_mosaic.version = 11 : i64} {
  func.func @cbam_kernel(%arg0: memref<2x4x256xf32, #tpu.memory_space<vmem>>, %arg1: memref<32x8xf32, #tpu.memory_space<vmem>>, %arg2: memref<101xf32, #tpu.memory_space<smem>>, %arg3: memref<2x4x256xf32, #tpu.memory_space<vmem>>) attributes {dimension_semantics = [], scalar_prefetch = 0 : i64, scratch_operands = 0 : i64, tpu.core_type = #tpu.core_type<tc>} {
    %c0 = arith.constant 0 : index
    %c0_0 = arith.constant 0 : index
    %c0_1 = arith.constant 0 : index
    %0 = vector.load %arg0[%c0, %c0_0, %c0_1] : memref<2x4x256xf32, #tpu.memory_space<vmem>>, vector<2x4x256xf32>
    %cst = arith.constant dense<0.000000e+00> : vector<2x4xf32>
    %1 = vector.multi_reduction <add>, %0, %cst [2] : vector<2x4x256xf32> to vector<2x4xf32>
    %cst_2 = arith.constant 3.906250e-03 : f32
    %2 = vector.broadcast %cst_2 : f32 to vector<2x4xf32>
    %3 = arith.mulf %1, %2 : vector<2x4xf32>
    %cst_3 = arith.constant dense<0xFF800000> : vector<2x4xf32>
    %4 = vector.multi_reduction <maximumf>, %0, %cst_3 [2] : vector<2x4x256xf32> to vector<2x4xf32>
    %5 = tpu.concatenate %3, %4 in 0 : vector<2x4xf32>, vector<2x4xf32> -> vector<4x4xf32>
    %c0_4 = arith.constant 0 : index
    %c0_5 = arith.constant 0 : index
    %6 = vector.load %arg1[%c0_4, %c0_5] : memref<32x8xf32, #tpu.memory_space<vmem>>, vector<32x8xf32>
    %7 = vector.extract_strided_slice %6 {offsets = [0, 0], sizes = [4, 8], strides = [1, 1]} : vector<32x8xf32> to vector<4x8xf32>
    %8 = vector.extract_strided_slice %6 {offsets = [8, 0], sizes = [1, 8], strides = [1, 1]} : vector<32x8xf32> to vector<1x8xf32>
    %9 = vector.extract_strided_slice %6 {offsets = [16, 0], sizes = [8, 4], strides = [1, 1]} : vector<32x8xf32> to vector<8x4xf32>
    %10 = vector.extract_strided_slice %6 {offsets = [24, 0], sizes = [1, 4], strides = [1, 1]} : vector<32x8xf32> to vector<1x4xf32>
    %11 = vector.shape_cast %5 : vector<4x4xf32> to vector<4x4x1xf32>
    %12 = vector.shape_cast %7 : vector<4x8xf32> to vector<1x4x8xf32>
    %13 = vector.broadcast %11 : vector<4x4x1xf32> to vector<4x4x8xf32>
    %14 = vector.broadcast %12 : vector<1x4x8xf32> to vector<4x4x8xf32>
    %15 = arith.mulf %13, %14 : vector<4x4x8xf32>
    %cst_6 = arith.constant dense<0.000000e+00> : vector<4x8xf32>
    %16 = vector.multi_reduction <add>, %15, %cst_6 [1] : vector<4x4x8xf32> to vector<4x8xf32>
    %17 = vector.broadcast %8 : vector<1x8xf32> to vector<4x8xf32>
    %18 = arith.addf %16, %17 : vector<4x8xf32>
    %cst_7 = arith.constant 3.000000e+00 : f32
    %19 = vector.broadcast %cst_7 : f32 to vector<4x8xf32>
    %20 = arith.addf %18, %19 : vector<4x8xf32>
    %cst_8 = arith.constant 0.000000e+00 : f32
    %cst_9 = arith.constant 6.000000e+00 : f32
    %21 = vector.broadcast %cst_8 : f32 to vector<4x8xf32>
    %22 = arith.maximumf %21, %20 : vector<4x8xf32>
    %23 = vector.broadcast %cst_9 : f32 to vector<4x8xf32>
    %24 = arith.minimumf %23, %22 : vector<4x8xf32>
    %25 = arith.mulf %18, %24 : vector<4x8xf32>
    %cst_10 = arith.constant 0.166666672 : f32
    %26 = vector.broadcast %cst_10 : f32 to vector<4x8xf32>
    %27 = arith.mulf %25, %26 : vector<4x8xf32>
    %28 = vector.shape_cast %27 : vector<4x8xf32> to vector<4x8x1xf32>
    %29 = vector.shape_cast %9 : vector<8x4xf32> to vector<1x8x4xf32>
    %30 = vector.broadcast %28 : vector<4x8x1xf32> to vector<4x8x4xf32>
    %31 = vector.broadcast %29 : vector<1x8x4xf32> to vector<4x8x4xf32>
    %32 = arith.mulf %30, %31 : vector<4x8x4xf32>
    %cst_11 = arith.constant dense<0.000000e+00> : vector<4x4xf32>
    %33 = vector.multi_reduction <add>, %32, %cst_11 [1] : vector<4x8x4xf32> to vector<4x4xf32>
    %34 = vector.broadcast %10 : vector<1x4xf32> to vector<4x4xf32>
    %35 = arith.addf %33, %34 : vector<4x4xf32>
    %36 = vector.extract_strided_slice %35 {offsets = [0, 0], sizes = [2, 4], strides = [1, 1]} : vector<4x4xf32> to vector<2x4xf32>
    %37 = vector.extract_strided_slice %35 {offsets = [2, 0], sizes = [2, 4], strides = [1, 1]} : vector<4x4xf32> to vector<2x4xf32>
    %38 = arith.addf %36, %37 : vector<2x4xf32>
    %39 = arith.negf %38 : vector<2x4xf32>
    %40 = math.exp %39 : vector<2x4xf32>
    %cst_12 = arith.constant 1.000000e+00 : f32
    %41 = vector.broadcast %cst_12 : f32 to vector<2x4xf32>
    %42 = arith.addf %41, %40 : vector<2x4xf32>
    %43 = arith.divf %41, %42 : vector<2x4xf32>
    %44 = vector.shape_cast %43 : vector<2x4xf32> to vector<2x4x1xf32>
    %45 = vector.broadcast %44 : vector<2x4x1xf32> to vector<2x4x256xf32>
    %46 = arith.mulf %0, %45 : vector<2x4x256xf32>
    %cst_13 = arith.constant dense<0xFF800000> : vector<2x256xf32>
    %47 = vector.multi_reduction <maximumf>, %46, %cst_13 [1] : vector<2x4x256xf32> to vector<2x256xf32>
    %cst_14 = arith.constant dense<0.000000e+00> : vector<2x256xf32>
    %48 = vector.multi_reduction <add>, %46, %cst_14 [1] : vector<2x4x256xf32> to vector<2x256xf32>
    %cst_15 = arith.constant 2.500000e-01 : f32
    %49 = vector.broadcast %cst_15 : f32 to vector<2x256xf32>
    %50 = arith.mulf %48, %49 : vector<2x256xf32>
    %51 = tpu.concatenate %47, %50 in 0 : vector<2x256xf32>, vector<2x256xf32> -> vector<4x256xf32>
    %52 = tpu.iota {dimensions = array<i32: 1>} : vector<4x256xi32>
    %c15_i32 = arith.constant 15 : i32
    %53 = vector.broadcast %c15_i32 : i32 to vector<4x256xi32>
    %54 = arith.andi %52, %53 : vector<4x256xi32>
    %c4_i32 = arith.constant 4 : i32
    %55 = vector.broadcast %c4_i32 : i32 to vector<4x256xi32>
    %56 = arith.shrsi %52, %55 : vector<4x256xi32>
    %57 = tpu.iota {dimensions = array<i32: 0>} : vector<4x256xi32>
    %c2_i32 = arith.constant 2 : i32
    %58 = vector.broadcast %c2_i32 : i32 to vector<4x256xi32>
    %59 = arith.cmpi slt, %57, %58 : vector<4x256xi32>
    %c3_i32 = arith.constant 3 : i32
    %60 = vector.broadcast %c3_i32 : i32 to vector<4x256xi32>
    %61 = arith.cmpi sge, %56, %60 : vector<4x256xi32>
    %c2_i32_16 = arith.constant 2 : i32
    %62 = vector.broadcast %c2_i32_16 : i32 to vector<4x256xi32>
    %63 = arith.cmpi sge, %56, %62 : vector<4x256xi32>
    %c1_i32 = arith.constant 1 : i32
    %64 = vector.broadcast %c1_i32 : i32 to vector<4x256xi32>
    %65 = arith.cmpi sge, %56, %64 : vector<4x256xi32>
    %c15_i32_17 = arith.constant 15 : i32
    %66 = vector.broadcast %c15_i32_17 : i32 to vector<4x256xi32>
    %67 = arith.cmpi slt, %56, %66 : vector<4x256xi32>
    %c14_i32 = arith.constant 14 : i32
    %68 = vector.broadcast %c14_i32 : i32 to vector<4x256xi32>
    %69 = arith.cmpi slt, %56, %68 : vector<4x256xi32>
    %c13_i32 = arith.constant 13 : i32
    %70 = vector.broadcast %c13_i32 : i32 to vector<4x256xi32>
    %71 = arith.cmpi slt, %56, %70 : vector<4x256xi32>
    %c3_i32_18 = arith.constant 3 : i32
    %72 = vector.broadcast %c3_i32_18 : i32 to vector<4x256xi32>
    %73 = arith.cmpi sge, %54, %72 : vector<4x256xi32>
    %c2_i32_19 = arith.constant 2 : i32
    %74 = vector.broadcast %c2_i32_19 : i32 to vector<4x256xi32>
    %75 = arith.cmpi sge, %54, %74 : vector<4x256xi32>
    %c1_i32_20 = arith.constant 1 : i32
    %76 = vector.broadcast %c1_i32_20 : i32 to vector<4x256xi32>
    %77 = arith.cmpi sge, %54, %76 : vector<4x256xi32>
    %c15_i32_21 = arith.constant 15 : i32
    %78 = vector.broadcast %c15_i32_21 : i32 to vector<4x256xi32>
    %79 = arith.cmpi slt, %54, %78 : vector<4x256xi32>
    %c14_i32_22 = arith.constant 14 : i32
    %80 = vector.broadcast %c14_i32_22 : i32 to vector<4x256xi32>
    %81 = arith.cmpi slt, %54, %80 : vector<4x256xi32>
    %c13_i32_23 = arith.constant 13 : i32
    %82 = vector.broadcast %c13_i32_23 : i32 to vector<4x256xi32>
    %83 = arith.cmpi slt, %54, %82 : vector<4x256xi32>
    %c98 = arith.constant 98 : index
    %84 = memref.load %arg2[%c98] : memref<101xf32, #tpu.memory_space<smem>>
    %c99 = arith.constant 99 : index
    %85 = memref.load %arg2[%c99] : memref<101xf32, #tpu.memory_space<smem>>
    %c100 = arith.constant 100 : index
    %86 = memref.load %arg2[%c100] : memref<101xf32, #tpu.memory_space<smem>>
    %cst_24 = arith.constant 0.000000e+00 : f32
    %87 = vector.broadcast %cst_24 : f32 to vector<4x256xf32>
    %cst_25 = arith.constant 0.000000e+00 : f32
    %88 = vector.broadcast %cst_25 : f32 to vector<4x256xf32>
    %cst_26 = arith.constant 0.000000e+00 : f32
    %89 = vector.broadcast %cst_26 : f32 to vector<4x256xf32>
    %cst_27 = arith.constant 0.000000e+00 : f32
    %90 = vector.broadcast %cst_27 : f32 to vector<4x256xf32>
    %c51_i32 = arith.constant 51 : i32
    %91 = tpu.dynamic_rotate %51 by %c51_i32 dim 1 : vector<4x256xf32>, i32 -> vector<4x256xf32>
    %c0_28 = arith.constant 0 : index
    %92 = memref.load %arg2[%c0_28] : memref<101xf32, #tpu.memory_space<smem>>
    %c49 = arith.constant 49 : index
    %93 = memref.load %arg2[%c49] : memref<101xf32, #tpu.memory_space<smem>>
    %94 = vector.broadcast %92 : f32 to vector<4x256xf32>
    %95 = vector.broadcast %93 : f32 to vector<4x256xf32>
    %96 = arith.select %59, %94, %95 : vector<4x256xi1>, vector<4x256xf32>
    %97 = arith.andi %61, %73 : vector<4x256xi1>
    %cst_29 = arith.constant 0.000000e+00 : f32
    %98 = vector.broadcast %cst_29 : f32 to vector<4x256xf32>
    %99 = arith.select %97, %96, %98 : vector<4x256xi1>, vector<4x256xf32>
    %100 = arith.mulf %99, %91 : vector<4x256xf32>
    %101 = arith.addf %87, %100 : vector<4x256xf32>
    %c50_i32 = arith.constant 50 : i32
    %102 = tpu.dynamic_rotate %51 by %c50_i32 dim 1 : vector<4x256xf32>, i32 -> vector<4x256xf32>
    %c1 = arith.constant 1 : index
    %103 = memref.load %arg2[%c1] : memref<101xf32, #tpu.memory_space<smem>>
    %c50 = arith.constant 50 : index
    %104 = memref.load %arg2[%c50] : memref<101xf32, #tpu.memory_space<smem>>
    %105 = vector.broadcast %103 : f32 to vector<4x256xf32>
    %106 = vector.broadcast %104 : f32 to vector<4x256xf32>
    %107 = arith.select %59, %105, %106 : vector<4x256xi1>, vector<4x256xf32>
    %108 = arith.andi %61, %75 : vector<4x256xi1>
    %cst_30 = arith.constant 0.000000e+00 : f32
    %109 = vector.broadcast %cst_30 : f32 to vector<4x256xf32>
    %110 = arith.select %108, %107, %109 : vector<4x256xi1>, vector<4x256xf32>
    %111 = arith.mulf %110, %102 : vector<4x256xf32>
    %112 = arith.addf %88, %111 : vector<4x256xf32>
    %c49_i32 = arith.constant 49 : i32
    %113 = tpu.dynamic_rotate %51 by %c49_i32 dim 1 : vector<4x256xf32>, i32 -> vector<4x256xf32>
    %c2 = arith.constant 2 : index
    %114 = memref.load %arg2[%c2] : memref<101xf32, #tpu.memory_space<smem>>
    %c51 = arith.constant 51 : index
    %115 = memref.load %arg2[%c51] : memref<101xf32, #tpu.memory_space<smem>>
    %116 = vector.broadcast %114 : f32 to vector<4x256xf32>
    %117 = vector.broadcast %115 : f32 to vector<4x256xf32>
    %118 = arith.select %59, %116, %117 : vector<4x256xi1>, vector<4x256xf32>
    %119 = arith.andi %61, %77 : vector<4x256xi1>
    %cst_31 = arith.constant 0.000000e+00 : f32
    %120 = vector.broadcast %cst_31 : f32 to vector<4x256xf32>
    %121 = arith.select %119, %118, %120 : vector<4x256xi1>, vector<4x256xf32>
    %122 = arith.mulf %121, %113 : vector<4x256xf32>
    %123 = arith.addf %89, %122 : vector<4x256xf32>
    %c48_i32 = arith.constant 48 : i32
    %124 = tpu.dynamic_rotate %51 by %c48_i32 dim 1 : vector<4x256xf32>, i32 -> vector<4x256xf32>
    %c3 = arith.constant 3 : index
    %125 = memref.load %arg2[%c3] : memref<101xf32, #tpu.memory_space<smem>>
    %c52 = arith.constant 52 : index
    %126 = memref.load %arg2[%c52] : memref<101xf32, #tpu.memory_space<smem>>
    %127 = vector.broadcast %125 : f32 to vector<4x256xf32>
    %128 = vector.broadcast %126 : f32 to vector<4x256xf32>
    %129 = arith.select %59, %127, %128 : vector<4x256xi1>, vector<4x256xf32>
    %cst_32 = arith.constant 0.000000e+00 : f32
    %130 = vector.broadcast %cst_32 : f32 to vector<4x256xf32>
    %131 = arith.select %61, %129, %130 : vector<4x256xi1>, vector<4x256xf32>
    %132 = arith.mulf %131, %124 : vector<4x256xf32>
    %133 = arith.addf %90, %132 : vector<4x256xf32>
    %c47_i32 = arith.constant 47 : i32
    %134 = tpu.dynamic_rotate %51 by %c47_i32 dim 1 : vector<4x256xf32>, i32 -> vector<4x256xf32>
    %c4 = arith.constant 4 : index
    %135 = memref.load %arg2[%c4] : memref<101xf32, #tpu.memory_space<smem>>
    %c53 = arith.constant 53 : index
    %136 = memref.load %arg2[%c53] : memref<101xf32, #tpu.memory_space<smem>>
    %137 = vector.broadcast %135 : f32 to vector<4x256xf32>
    %138 = vector.broadcast %136 : f32 to vector<4x256xf32>
    %139 = arith.select %59, %137, %138 : vector<4x256xi1>, vector<4x256xf32>
    %140 = arith.andi %61, %79 : vector<4x256xi1>
    %cst_33 = arith.constant 0.000000e+00 : f32
    %141 = vector.broadcast %cst_33 : f32 to vector<4x256xf32>
    %142 = arith.select %140, %139, %141 : vector<4x256xi1>, vector<4x256xf32>
    %143 = arith.mulf %142, %134 : vector<4x256xf32>
    %144 = arith.addf %101, %143 : vector<4x256xf32>
    %c46_i32 = arith.constant 46 : i32
    %145 = tpu.dynamic_rotate %51 by %c46_i32 dim 1 : vector<4x256xf32>, i32 -> vector<4x256xf32>
    %c5 = arith.constant 5 : index
    %146 = memref.load %arg2[%c5] : memref<101xf32, #tpu.memory_space<smem>>
    %c54 = arith.constant 54 : index
    %147 = memref.load %arg2[%c54] : memref<101xf32, #tpu.memory_space<smem>>
    %148 = vector.broadcast %146 : f32 to vector<4x256xf32>
    %149 = vector.broadcast %147 : f32 to vector<4x256xf32>
    %150 = arith.select %59, %148, %149 : vector<4x256xi1>, vector<4x256xf32>
    %151 = arith.andi %61, %81 : vector<4x256xi1>
    %cst_34 = arith.constant 0.000000e+00 : f32
    %152 = vector.broadcast %cst_34 : f32 to vector<4x256xf32>
    %153 = arith.select %151, %150, %152 : vector<4x256xi1>, vector<4x256xf32>
    %154 = arith.mulf %153, %145 : vector<4x256xf32>
    %155 = arith.addf %112, %154 : vector<4x256xf32>
    %c45_i32 = arith.constant 45 : i32
    %156 = tpu.dynamic_rotate %51 by %c45_i32 dim 1 : vector<4x256xf32>, i32 -> vector<4x256xf32>
    %c6 = arith.constant 6 : index
    %157 = memref.load %arg2[%c6] : memref<101xf32, #tpu.memory_space<smem>>
    %c55 = arith.constant 55 : index
    %158 = memref.load %arg2[%c55] : memref<101xf32, #tpu.memory_space<smem>>
    %159 = vector.broadcast %157 : f32 to vector<4x256xf32>
    %160 = vector.broadcast %158 : f32 to vector<4x256xf32>
    %161 = arith.select %59, %159, %160 : vector<4x256xi1>, vector<4x256xf32>
    %162 = arith.andi %61, %83 : vector<4x256xi1>
    %cst_35 = arith.constant 0.000000e+00 : f32
    %163 = vector.broadcast %cst_35 : f32 to vector<4x256xf32>
    %164 = arith.select %162, %161, %163 : vector<4x256xi1>, vector<4x256xf32>
    %165 = arith.mulf %164, %156 : vector<4x256xf32>
    %166 = arith.addf %123, %165 : vector<4x256xf32>
    %c35_i32 = arith.constant 35 : i32
    %167 = tpu.dynamic_rotate %51 by %c35_i32 dim 1 : vector<4x256xf32>, i32 -> vector<4x256xf32>
    %c7 = arith.constant 7 : index
    %168 = memref.load %arg2[%c7] : memref<101xf32, #tpu.memory_space<smem>>
    %c56 = arith.constant 56 : index
    %169 = memref.load %arg2[%c56] : memref<101xf32, #tpu.memory_space<smem>>
    %170 = vector.broadcast %168 : f32 to vector<4x256xf32>
    %171 = vector.broadcast %169 : f32 to vector<4x256xf32>
    %172 = arith.select %59, %170, %171 : vector<4x256xi1>, vector<4x256xf32>
    %173 = arith.andi %63, %73 : vector<4x256xi1>
    %cst_36 = arith.constant 0.000000e+00 : f32
    %174 = vector.broadcast %cst_36 : f32 to vector<4x256xf32>
    %175 = arith.select %173, %172, %174 : vector<4x256xi1>, vector<4x256xf32>
    %176 = arith.mulf %175, %167 : vector<4x256xf32>
    %177 = arith.addf %133, %176 : vector<4x256xf32>
    %c34_i32 = arith.constant 34 : i32
    %178 = tpu.dynamic_rotate %51 by %c34_i32 dim 1 : vector<4x256xf32>, i32 -> vector<4x256xf32>
    %c8 = arith.constant 8 : index
    %179 = memref.load %arg2[%c8] : memref<101xf32, #tpu.memory_space<smem>>
    %c57 = arith.constant 57 : index
    %180 = memref.load %arg2[%c57] : memref<101xf32, #tpu.memory_space<smem>>
    %181 = vector.broadcast %179 : f32 to vector<4x256xf32>
    %182 = vector.broadcast %180 : f32 to vector<4x256xf32>
    %183 = arith.select %59, %181, %182 : vector<4x256xi1>, vector<4x256xf32>
    %184 = arith.andi %63, %75 : vector<4x256xi1>
    %cst_37 = arith.constant 0.000000e+00 : f32
    %185 = vector.broadcast %cst_37 : f32 to vector<4x256xf32>
    %186 = arith.select %184, %183, %185 : vector<4x256xi1>, vector<4x256xf32>
    %187 = arith.mulf %186, %178 : vector<4x256xf32>
    %188 = arith.addf %144, %187 : vector<4x256xf32>
    %c33_i32 = arith.constant 33 : i32
    %189 = tpu.dynamic_rotate %51 by %c33_i32 dim 1 : vector<4x256xf32>, i32 -> vector<4x256xf32>
    %c9 = arith.constant 9 : index
    %190 = memref.load %arg2[%c9] : memref<101xf32, #tpu.memory_space<smem>>
    %c58 = arith.constant 58 : index
    %191 = memref.load %arg2[%c58] : memref<101xf32, #tpu.memory_space<smem>>
    %192 = vector.broadcast %190 : f32 to vector<4x256xf32>
    %193 = vector.broadcast %191 : f32 to vector<4x256xf32>
    %194 = arith.select %59, %192, %193 : vector<4x256xi1>, vector<4x256xf32>
    %195 = arith.andi %63, %77 : vector<4x256xi1>
    %cst_38 = arith.constant 0.000000e+00 : f32
    %196 = vector.broadcast %cst_38 : f32 to vector<4x256xf32>
    %197 = arith.select %195, %194, %196 : vector<4x256xi1>, vector<4x256xf32>
    %198 = arith.mulf %197, %189 : vector<4x256xf32>
    %199 = arith.addf %155, %198 : vector<4x256xf32>
    %c32_i32 = arith.constant 32 : i32
    %200 = tpu.dynamic_rotate %51 by %c32_i32 dim 1 : vector<4x256xf32>, i32 -> vector<4x256xf32>
    %c10 = arith.constant 10 : index
    %201 = memref.load %arg2[%c10] : memref<101xf32, #tpu.memory_space<smem>>
    %c59 = arith.constant 59 : index
    %202 = memref.load %arg2[%c59] : memref<101xf32, #tpu.memory_space<smem>>
    %203 = vector.broadcast %201 : f32 to vector<4x256xf32>
    %204 = vector.broadcast %202 : f32 to vector<4x256xf32>
    %205 = arith.select %59, %203, %204 : vector<4x256xi1>, vector<4x256xf32>
    %cst_39 = arith.constant 0.000000e+00 : f32
    %206 = vector.broadcast %cst_39 : f32 to vector<4x256xf32>
    %207 = arith.select %63, %205, %206 : vector<4x256xi1>, vector<4x256xf32>
    %208 = arith.mulf %207, %200 : vector<4x256xf32>
    %209 = arith.addf %166, %208 : vector<4x256xf32>
    %c31_i32 = arith.constant 31 : i32
    %210 = tpu.dynamic_rotate %51 by %c31_i32 dim 1 : vector<4x256xf32>, i32 -> vector<4x256xf32>
    %c11 = arith.constant 11 : index
    %211 = memref.load %arg2[%c11] : memref<101xf32, #tpu.memory_space<smem>>
    %c60 = arith.constant 60 : index
    %212 = memref.load %arg2[%c60] : memref<101xf32, #tpu.memory_space<smem>>
    %213 = vector.broadcast %211 : f32 to vector<4x256xf32>
    %214 = vector.broadcast %212 : f32 to vector<4x256xf32>
    %215 = arith.select %59, %213, %214 : vector<4x256xi1>, vector<4x256xf32>
    %216 = arith.andi %63, %79 : vector<4x256xi1>
    %cst_40 = arith.constant 0.000000e+00 : f32
    %217 = vector.broadcast %cst_40 : f32 to vector<4x256xf32>
    %218 = arith.select %216, %215, %217 : vector<4x256xi1>, vector<4x256xf32>
    %219 = arith.mulf %218, %210 : vector<4x256xf32>
    %220 = arith.addf %177, %219 : vector<4x256xf32>
    %c30_i32 = arith.constant 30 : i32
    %221 = tpu.dynamic_rotate %51 by %c30_i32 dim 1 : vector<4x256xf32>, i32 -> vector<4x256xf32>
    %c12 = arith.constant 12 : index
    %222 = memref.load %arg2[%c12] : memref<101xf32, #tpu.memory_space<smem>>
    %c61 = arith.constant 61 : index
    %223 = memref.load %arg2[%c61] : memref<101xf32, #tpu.memory_space<smem>>
    %224 = vector.broadcast %222 : f32 to vector<4x256xf32>
    %225 = vector.broadcast %223 : f32 to vector<4x256xf32>
    %226 = arith.select %59, %224, %225 : vector<4x256xi1>, vector<4x256xf32>
    %227 = arith.andi %63, %81 : vector<4x256xi1>
    %cst_41 = arith.constant 0.000000e+00 : f32
    %228 = vector.broadcast %cst_41 : f32 to vector<4x256xf32>
    %229 = arith.select %227, %226, %228 : vector<4x256xi1>, vector<4x256xf32>
    %230 = arith.mulf %229, %221 : vector<4x256xf32>
    %231 = arith.addf %188, %230 : vector<4x256xf32>
    %c29_i32 = arith.constant 29 : i32
    %232 = tpu.dynamic_rotate %51 by %c29_i32 dim 1 : vector<4x256xf32>, i32 -> vector<4x256xf32>
    %c13 = arith.constant 13 : index
    %233 = memref.load %arg2[%c13] : memref<101xf32, #tpu.memory_space<smem>>
    %c62 = arith.constant 62 : index
    %234 = memref.load %arg2[%c62] : memref<101xf32, #tpu.memory_space<smem>>
    %235 = vector.broadcast %233 : f32 to vector<4x256xf32>
    %236 = vector.broadcast %234 : f32 to vector<4x256xf32>
    %237 = arith.select %59, %235, %236 : vector<4x256xi1>, vector<4x256xf32>
    %238 = arith.andi %63, %83 : vector<4x256xi1>
    %cst_42 = arith.constant 0.000000e+00 : f32
    %239 = vector.broadcast %cst_42 : f32 to vector<4x256xf32>
    %240 = arith.select %238, %237, %239 : vector<4x256xi1>, vector<4x256xf32>
    %241 = arith.mulf %240, %232 : vector<4x256xf32>
    %242 = arith.addf %199, %241 : vector<4x256xf32>
    %c19_i32 = arith.constant 19 : i32
    %243 = tpu.dynamic_rotate %51 by %c19_i32 dim 1 : vector<4x256xf32>, i32 -> vector<4x256xf32>
    %c14 = arith.constant 14 : index
    %244 = memref.load %arg2[%c14] : memref<101xf32, #tpu.memory_space<smem>>
    %c63 = arith.constant 63 : index
    %245 = memref.load %arg2[%c63] : memref<101xf32, #tpu.memory_space<smem>>
    %246 = vector.broadcast %244 : f32 to vector<4x256xf32>
    %247 = vector.broadcast %245 : f32 to vector<4x256xf32>
    %248 = arith.select %59, %246, %247 : vector<4x256xi1>, vector<4x256xf32>
    %249 = arith.andi %65, %73 : vector<4x256xi1>
    %cst_43 = arith.constant 0.000000e+00 : f32
    %250 = vector.broadcast %cst_43 : f32 to vector<4x256xf32>
    %251 = arith.select %249, %248, %250 : vector<4x256xi1>, vector<4x256xf32>
    %252 = arith.mulf %251, %243 : vector<4x256xf32>
    %253 = arith.addf %209, %252 : vector<4x256xf32>
    %c18_i32 = arith.constant 18 : i32
    %254 = tpu.dynamic_rotate %51 by %c18_i32 dim 1 : vector<4x256xf32>, i32 -> vector<4x256xf32>
    %c15 = arith.constant 15 : index
    %255 = memref.load %arg2[%c15] : memref<101xf32, #tpu.memory_space<smem>>
    %c64 = arith.constant 64 : index
    %256 = memref.load %arg2[%c64] : memref<101xf32, #tpu.memory_space<smem>>
    %257 = vector.broadcast %255 : f32 to vector<4x256xf32>
    %258 = vector.broadcast %256 : f32 to vector<4x256xf32>
    %259 = arith.select %59, %257, %258 : vector<4x256xi1>, vector<4x256xf32>
    %260 = arith.andi %65, %75 : vector<4x256xi1>
    %cst_44 = arith.constant 0.000000e+00 : f32
    %261 = vector.broadcast %cst_44 : f32 to vector<4x256xf32>
    %262 = arith.select %260, %259, %261 : vector<4x256xi1>, vector<4x256xf32>
    %263 = arith.mulf %262, %254 : vector<4x256xf32>
    %264 = arith.addf %220, %263 : vector<4x256xf32>
    %c17_i32 = arith.constant 17 : i32
    %265 = tpu.dynamic_rotate %51 by %c17_i32 dim 1 : vector<4x256xf32>, i32 -> vector<4x256xf32>
    %c16 = arith.constant 16 : index
    %266 = memref.load %arg2[%c16] : memref<101xf32, #tpu.memory_space<smem>>
    %c65 = arith.constant 65 : index
    %267 = memref.load %arg2[%c65] : memref<101xf32, #tpu.memory_space<smem>>
    %268 = vector.broadcast %266 : f32 to vector<4x256xf32>
    %269 = vector.broadcast %267 : f32 to vector<4x256xf32>
    %270 = arith.select %59, %268, %269 : vector<4x256xi1>, vector<4x256xf32>
    %271 = arith.andi %65, %77 : vector<4x256xi1>
    %cst_45 = arith.constant 0.000000e+00 : f32
    %272 = vector.broadcast %cst_45 : f32 to vector<4x256xf32>
    %273 = arith.select %271, %270, %272 : vector<4x256xi1>, vector<4x256xf32>
    %274 = arith.mulf %273, %265 : vector<4x256xf32>
    %275 = arith.addf %231, %274 : vector<4x256xf32>
    %c16_i32 = arith.constant 16 : i32
    %276 = tpu.dynamic_rotate %51 by %c16_i32 dim 1 : vector<4x256xf32>, i32 -> vector<4x256xf32>
    %c17 = arith.constant 17 : index
    %277 = memref.load %arg2[%c17] : memref<101xf32, #tpu.memory_space<smem>>
    %c66 = arith.constant 66 : index
    %278 = memref.load %arg2[%c66] : memref<101xf32, #tpu.memory_space<smem>>
    %279 = vector.broadcast %277 : f32 to vector<4x256xf32>
    %280 = vector.broadcast %278 : f32 to vector<4x256xf32>
    %281 = arith.select %59, %279, %280 : vector<4x256xi1>, vector<4x256xf32>
    %cst_46 = arith.constant 0.000000e+00 : f32
    %282 = vector.broadcast %cst_46 : f32 to vector<4x256xf32>
    %283 = arith.select %65, %281, %282 : vector<4x256xi1>, vector<4x256xf32>
    %284 = arith.mulf %283, %276 : vector<4x256xf32>
    %285 = arith.addf %242, %284 : vector<4x256xf32>
    %c15_i32_47 = arith.constant 15 : i32
    %286 = tpu.dynamic_rotate %51 by %c15_i32_47 dim 1 : vector<4x256xf32>, i32 -> vector<4x256xf32>
    %c18 = arith.constant 18 : index
    %287 = memref.load %arg2[%c18] : memref<101xf32, #tpu.memory_space<smem>>
    %c67 = arith.constant 67 : index
    %288 = memref.load %arg2[%c67] : memref<101xf32, #tpu.memory_space<smem>>
    %289 = vector.broadcast %287 : f32 to vector<4x256xf32>
    %290 = vector.broadcast %288 : f32 to vector<4x256xf32>
    %291 = arith.select %59, %289, %290 : vector<4x256xi1>, vector<4x256xf32>
    %292 = arith.andi %65, %79 : vector<4x256xi1>
    %cst_48 = arith.constant 0.000000e+00 : f32
    %293 = vector.broadcast %cst_48 : f32 to vector<4x256xf32>
    %294 = arith.select %292, %291, %293 : vector<4x256xi1>, vector<4x256xf32>
    %295 = arith.mulf %294, %286 : vector<4x256xf32>
    %296 = arith.addf %253, %295 : vector<4x256xf32>
    %c14_i32_49 = arith.constant 14 : i32
    %297 = tpu.dynamic_rotate %51 by %c14_i32_49 dim 1 : vector<4x256xf32>, i32 -> vector<4x256xf32>
    %c19 = arith.constant 19 : index
    %298 = memref.load %arg2[%c19] : memref<101xf32, #tpu.memory_space<smem>>
    %c68 = arith.constant 68 : index
    %299 = memref.load %arg2[%c68] : memref<101xf32, #tpu.memory_space<smem>>
    %300 = vector.broadcast %298 : f32 to vector<4x256xf32>
    %301 = vector.broadcast %299 : f32 to vector<4x256xf32>
    %302 = arith.select %59, %300, %301 : vector<4x256xi1>, vector<4x256xf32>
    %303 = arith.andi %65, %81 : vector<4x256xi1>
    %cst_50 = arith.constant 0.000000e+00 : f32
    %304 = vector.broadcast %cst_50 : f32 to vector<4x256xf32>
    %305 = arith.select %303, %302, %304 : vector<4x256xi1>, vector<4x256xf32>
    %306 = arith.mulf %305, %297 : vector<4x256xf32>
    %307 = arith.addf %264, %306 : vector<4x256xf32>
    %c13_i32_51 = arith.constant 13 : i32
    %308 = tpu.dynamic_rotate %51 by %c13_i32_51 dim 1 : vector<4x256xf32>, i32 -> vector<4x256xf32>
    %c20 = arith.constant 20 : index
    %309 = memref.load %arg2[%c20] : memref<101xf32, #tpu.memory_space<smem>>
    %c69 = arith.constant 69 : index
    %310 = memref.load %arg2[%c69] : memref<101xf32, #tpu.memory_space<smem>>
    %311 = vector.broadcast %309 : f32 to vector<4x256xf32>
    %312 = vector.broadcast %310 : f32 to vector<4x256xf32>
    %313 = arith.select %59, %311, %312 : vector<4x256xi1>, vector<4x256xf32>
    %314 = arith.andi %65, %83 : vector<4x256xi1>
    %cst_52 = arith.constant 0.000000e+00 : f32
    %315 = vector.broadcast %cst_52 : f32 to vector<4x256xf32>
    %316 = arith.select %314, %313, %315 : vector<4x256xi1>, vector<4x256xf32>
    %317 = arith.mulf %316, %308 : vector<4x256xf32>
    %318 = arith.addf %275, %317 : vector<4x256xf32>
    %c3_i32_53 = arith.constant 3 : i32
    %319 = tpu.dynamic_rotate %51 by %c3_i32_53 dim 1 : vector<4x256xf32>, i32 -> vector<4x256xf32>
    %c21 = arith.constant 21 : index
    %320 = memref.load %arg2[%c21] : memref<101xf32, #tpu.memory_space<smem>>
    %c70 = arith.constant 70 : index
    %321 = memref.load %arg2[%c70] : memref<101xf32, #tpu.memory_space<smem>>
    %322 = vector.broadcast %320 : f32 to vector<4x256xf32>
    %323 = vector.broadcast %321 : f32 to vector<4x256xf32>
    %324 = arith.select %59, %322, %323 : vector<4x256xi1>, vector<4x256xf32>
    %cst_54 = arith.constant 0.000000e+00 : f32
    %325 = vector.broadcast %cst_54 : f32 to vector<4x256xf32>
    %326 = arith.select %73, %324, %325 : vector<4x256xi1>, vector<4x256xf32>
    %327 = arith.mulf %326, %319 : vector<4x256xf32>
    %328 = arith.addf %285, %327 : vector<4x256xf32>
    %c2_i32_55 = arith.constant 2 : i32
    %329 = tpu.dynamic_rotate %51 by %c2_i32_55 dim 1 : vector<4x256xf32>, i32 -> vector<4x256xf32>
    %c22 = arith.constant 22 : index
    %330 = memref.load %arg2[%c22] : memref<101xf32, #tpu.memory_space<smem>>
    %c71 = arith.constant 71 : index
    %331 = memref.load %arg2[%c71] : memref<101xf32, #tpu.memory_space<smem>>
    %332 = vector.broadcast %330 : f32 to vector<4x256xf32>
    %333 = vector.broadcast %331 : f32 to vector<4x256xf32>
    %334 = arith.select %59, %332, %333 : vector<4x256xi1>, vector<4x256xf32>
    %cst_56 = arith.constant 0.000000e+00 : f32
    %335 = vector.broadcast %cst_56 : f32 to vector<4x256xf32>
    %336 = arith.select %75, %334, %335 : vector<4x256xi1>, vector<4x256xf32>
    %337 = arith.mulf %336, %329 : vector<4x256xf32>
    %338 = arith.addf %296, %337 : vector<4x256xf32>
    %c1_i32_57 = arith.constant 1 : i32
    %339 = tpu.dynamic_rotate %51 by %c1_i32_57 dim 1 : vector<4x256xf32>, i32 -> vector<4x256xf32>
    %c23 = arith.constant 23 : index
    %340 = memref.load %arg2[%c23] : memref<101xf32, #tpu.memory_space<smem>>
    %c72 = arith.constant 72 : index
    %341 = memref.load %arg2[%c72] : memref<101xf32, #tpu.memory_space<smem>>
    %342 = vector.broadcast %340 : f32 to vector<4x256xf32>
    %343 = vector.broadcast %341 : f32 to vector<4x256xf32>
    %344 = arith.select %59, %342, %343 : vector<4x256xi1>, vector<4x256xf32>
    %cst_58 = arith.constant 0.000000e+00 : f32
    %345 = vector.broadcast %cst_58 : f32 to vector<4x256xf32>
    %346 = arith.select %77, %344, %345 : vector<4x256xi1>, vector<4x256xf32>
    %347 = arith.mulf %346, %339 : vector<4x256xf32>
    %348 = arith.addf %307, %347 : vector<4x256xf32>
    %c24 = arith.constant 24 : index
    %349 = memref.load %arg2[%c24] : memref<101xf32, #tpu.memory_space<smem>>
    %c73 = arith.constant 73 : index
    %350 = memref.load %arg2[%c73] : memref<101xf32, #tpu.memory_space<smem>>
    %351 = vector.broadcast %349 : f32 to vector<4x256xf32>
    %352 = vector.broadcast %350 : f32 to vector<4x256xf32>
    %353 = arith.select %59, %351, %352 : vector<4x256xi1>, vector<4x256xf32>
    %354 = arith.mulf %353, %51 : vector<4x256xf32>
    %355 = arith.addf %318, %354 : vector<4x256xf32>
    %c255_i32 = arith.constant 255 : i32
    %356 = tpu.dynamic_rotate %51 by %c255_i32 dim 1 : vector<4x256xf32>, i32 -> vector<4x256xf32>
    %c25 = arith.constant 25 : index
    %357 = memref.load %arg2[%c25] : memref<101xf32, #tpu.memory_space<smem>>
    %c74 = arith.constant 74 : index
    %358 = memref.load %arg2[%c74] : memref<101xf32, #tpu.memory_space<smem>>
    %359 = vector.broadcast %357 : f32 to vector<4x256xf32>
    %360 = vector.broadcast %358 : f32 to vector<4x256xf32>
    %361 = arith.select %59, %359, %360 : vector<4x256xi1>, vector<4x256xf32>
    %cst_59 = arith.constant 0.000000e+00 : f32
    %362 = vector.broadcast %cst_59 : f32 to vector<4x256xf32>
    %363 = arith.select %79, %361, %362 : vector<4x256xi1>, vector<4x256xf32>
    %364 = arith.mulf %363, %356 : vector<4x256xf32>
    %365 = arith.addf %328, %364 : vector<4x256xf32>
    %c254_i32 = arith.constant 254 : i32
    %366 = tpu.dynamic_rotate %51 by %c254_i32 dim 1 : vector<4x256xf32>, i32 -> vector<4x256xf32>
    %c26 = arith.constant 26 : index
    %367 = memref.load %arg2[%c26] : memref<101xf32, #tpu.memory_space<smem>>
    %c75 = arith.constant 75 : index
    %368 = memref.load %arg2[%c75] : memref<101xf32, #tpu.memory_space<smem>>
    %369 = vector.broadcast %367 : f32 to vector<4x256xf32>
    %370 = vector.broadcast %368 : f32 to vector<4x256xf32>
    %371 = arith.select %59, %369, %370 : vector<4x256xi1>, vector<4x256xf32>
    %cst_60 = arith.constant 0.000000e+00 : f32
    %372 = vector.broadcast %cst_60 : f32 to vector<4x256xf32>
    %373 = arith.select %81, %371, %372 : vector<4x256xi1>, vector<4x256xf32>
    %374 = arith.mulf %373, %366 : vector<4x256xf32>
    %375 = arith.addf %338, %374 : vector<4x256xf32>
    %c253_i32 = arith.constant 253 : i32
    %376 = tpu.dynamic_rotate %51 by %c253_i32 dim 1 : vector<4x256xf32>, i32 -> vector<4x256xf32>
    %c27 = arith.constant 27 : index
    %377 = memref.load %arg2[%c27] : memref<101xf32, #tpu.memory_space<smem>>
    %c76 = arith.constant 76 : index
    %378 = memref.load %arg2[%c76] : memref<101xf32, #tpu.memory_space<smem>>
    %379 = vector.broadcast %377 : f32 to vector<4x256xf32>
    %380 = vector.broadcast %378 : f32 to vector<4x256xf32>
    %381 = arith.select %59, %379, %380 : vector<4x256xi1>, vector<4x256xf32>
    %cst_61 = arith.constant 0.000000e+00 : f32
    %382 = vector.broadcast %cst_61 : f32 to vector<4x256xf32>
    %383 = arith.select %83, %381, %382 : vector<4x256xi1>, vector<4x256xf32>
    %384 = arith.mulf %383, %376 : vector<4x256xf32>
    %385 = arith.addf %348, %384 : vector<4x256xf32>
    %c243_i32 = arith.constant 243 : i32
    %386 = tpu.dynamic_rotate %51 by %c243_i32 dim 1 : vector<4x256xf32>, i32 -> vector<4x256xf32>
    %c28 = arith.constant 28 : index
    %387 = memref.load %arg2[%c28] : memref<101xf32, #tpu.memory_space<smem>>
    %c77 = arith.constant 77 : index
    %388 = memref.load %arg2[%c77] : memref<101xf32, #tpu.memory_space<smem>>
    %389 = vector.broadcast %387 : f32 to vector<4x256xf32>
    %390 = vector.broadcast %388 : f32 to vector<4x256xf32>
    %391 = arith.select %59, %389, %390 : vector<4x256xi1>, vector<4x256xf32>
    %392 = arith.andi %67, %73 : vector<4x256xi1>
    %cst_62 = arith.constant 0.000000e+00 : f32
    %393 = vector.broadcast %cst_62 : f32 to vector<4x256xf32>
    %394 = arith.select %392, %391, %393 : vector<4x256xi1>, vector<4x256xf32>
    %395 = arith.mulf %394, %386 : vector<4x256xf32>
    %396 = arith.addf %355, %395 : vector<4x256xf32>
    %c242_i32 = arith.constant 242 : i32
    %397 = tpu.dynamic_rotate %51 by %c242_i32 dim 1 : vector<4x256xf32>, i32 -> vector<4x256xf32>
    %c29 = arith.constant 29 : index
    %398 = memref.load %arg2[%c29] : memref<101xf32, #tpu.memory_space<smem>>
    %c78 = arith.constant 78 : index
    %399 = memref.load %arg2[%c78] : memref<101xf32, #tpu.memory_space<smem>>
    %400 = vector.broadcast %398 : f32 to vector<4x256xf32>
    %401 = vector.broadcast %399 : f32 to vector<4x256xf32>
    %402 = arith.select %59, %400, %401 : vector<4x256xi1>, vector<4x256xf32>
    %403 = arith.andi %67, %75 : vector<4x256xi1>
    %cst_63 = arith.constant 0.000000e+00 : f32
    %404 = vector.broadcast %cst_63 : f32 to vector<4x256xf32>
    %405 = arith.select %403, %402, %404 : vector<4x256xi1>, vector<4x256xf32>
    %406 = arith.mulf %405, %397 : vector<4x256xf32>
    %407 = arith.addf %365, %406 : vector<4x256xf32>
    %c241_i32 = arith.constant 241 : i32
    %408 = tpu.dynamic_rotate %51 by %c241_i32 dim 1 : vector<4x256xf32>, i32 -> vector<4x256xf32>
    %c30 = arith.constant 30 : index
    %409 = memref.load %arg2[%c30] : memref<101xf32, #tpu.memory_space<smem>>
    %c79 = arith.constant 79 : index
    %410 = memref.load %arg2[%c79] : memref<101xf32, #tpu.memory_space<smem>>
    %411 = vector.broadcast %409 : f32 to vector<4x256xf32>
    %412 = vector.broadcast %410 : f32 to vector<4x256xf32>
    %413 = arith.select %59, %411, %412 : vector<4x256xi1>, vector<4x256xf32>
    %414 = arith.andi %67, %77 : vector<4x256xi1>
    %cst_64 = arith.constant 0.000000e+00 : f32
    %415 = vector.broadcast %cst_64 : f32 to vector<4x256xf32>
    %416 = arith.select %414, %413, %415 : vector<4x256xi1>, vector<4x256xf32>
    %417 = arith.mulf %416, %408 : vector<4x256xf32>
    %418 = arith.addf %375, %417 : vector<4x256xf32>
    %c240_i32 = arith.constant 240 : i32
    %419 = tpu.dynamic_rotate %51 by %c240_i32 dim 1 : vector<4x256xf32>, i32 -> vector<4x256xf32>
    %c31 = arith.constant 31 : index
    %420 = memref.load %arg2[%c31] : memref<101xf32, #tpu.memory_space<smem>>
    %c80 = arith.constant 80 : index
    %421 = memref.load %arg2[%c80] : memref<101xf32, #tpu.memory_space<smem>>
    %422 = vector.broadcast %420 : f32 to vector<4x256xf32>
    %423 = vector.broadcast %421 : f32 to vector<4x256xf32>
    %424 = arith.select %59, %422, %423 : vector<4x256xi1>, vector<4x256xf32>
    %cst_65 = arith.constant 0.000000e+00 : f32
    %425 = vector.broadcast %cst_65 : f32 to vector<4x256xf32>
    %426 = arith.select %67, %424, %425 : vector<4x256xi1>, vector<4x256xf32>
    %427 = arith.mulf %426, %419 : vector<4x256xf32>
    %428 = arith.addf %385, %427 : vector<4x256xf32>
    %c239_i32 = arith.constant 239 : i32
    %429 = tpu.dynamic_rotate %51 by %c239_i32 dim 1 : vector<4x256xf32>, i32 -> vector<4x256xf32>
    %c32 = arith.constant 32 : index
    %430 = memref.load %arg2[%c32] : memref<101xf32, #tpu.memory_space<smem>>
    %c81 = arith.constant 81 : index
    %431 = memref.load %arg2[%c81] : memref<101xf32, #tpu.memory_space<smem>>
    %432 = vector.broadcast %430 : f32 to vector<4x256xf32>
    %433 = vector.broadcast %431 : f32 to vector<4x256xf32>
    %434 = arith.select %59, %432, %433 : vector<4x256xi1>, vector<4x256xf32>
    %435 = arith.andi %67, %79 : vector<4x256xi1>
    %cst_66 = arith.constant 0.000000e+00 : f32
    %436 = vector.broadcast %cst_66 : f32 to vector<4x256xf32>
    %437 = arith.select %435, %434, %436 : vector<4x256xi1>, vector<4x256xf32>
    %438 = arith.mulf %437, %429 : vector<4x256xf32>
    %439 = arith.addf %396, %438 : vector<4x256xf32>
    %c238_i32 = arith.constant 238 : i32
    %440 = tpu.dynamic_rotate %51 by %c238_i32 dim 1 : vector<4x256xf32>, i32 -> vector<4x256xf32>
    %c33 = arith.constant 33 : index
    %441 = memref.load %arg2[%c33] : memref<101xf32, #tpu.memory_space<smem>>
    %c82 = arith.constant 82 : index
    %442 = memref.load %arg2[%c82] : memref<101xf32, #tpu.memory_space<smem>>
    %443 = vector.broadcast %441 : f32 to vector<4x256xf32>
    %444 = vector.broadcast %442 : f32 to vector<4x256xf32>
    %445 = arith.select %59, %443, %444 : vector<4x256xi1>, vector<4x256xf32>
    %446 = arith.andi %67, %81 : vector<4x256xi1>
    %cst_67 = arith.constant 0.000000e+00 : f32
    %447 = vector.broadcast %cst_67 : f32 to vector<4x256xf32>
    %448 = arith.select %446, %445, %447 : vector<4x256xi1>, vector<4x256xf32>
    %449 = arith.mulf %448, %440 : vector<4x256xf32>
    %450 = arith.addf %407, %449 : vector<4x256xf32>
    %c237_i32 = arith.constant 237 : i32
    %451 = tpu.dynamic_rotate %51 by %c237_i32 dim 1 : vector<4x256xf32>, i32 -> vector<4x256xf32>
    %c34 = arith.constant 34 : index
    %452 = memref.load %arg2[%c34] : memref<101xf32, #tpu.memory_space<smem>>
    %c83 = arith.constant 83 : index
    %453 = memref.load %arg2[%c83] : memref<101xf32, #tpu.memory_space<smem>>
    %454 = vector.broadcast %452 : f32 to vector<4x256xf32>
    %455 = vector.broadcast %453 : f32 to vector<4x256xf32>
    %456 = arith.select %59, %454, %455 : vector<4x256xi1>, vector<4x256xf32>
    %457 = arith.andi %67, %83 : vector<4x256xi1>
    %cst_68 = arith.constant 0.000000e+00 : f32
    %458 = vector.broadcast %cst_68 : f32 to vector<4x256xf32>
    %459 = arith.select %457, %456, %458 : vector<4x256xi1>, vector<4x256xf32>
    %460 = arith.mulf %459, %451 : vector<4x256xf32>
    %461 = arith.addf %418, %460 : vector<4x256xf32>
    %c227_i32 = arith.constant 227 : i32
    %462 = tpu.dynamic_rotate %51 by %c227_i32 dim 1 : vector<4x256xf32>, i32 -> vector<4x256xf32>
    %c35 = arith.constant 35 : index
    %463 = memref.load %arg2[%c35] : memref<101xf32, #tpu.memory_space<smem>>
    %c84 = arith.constant 84 : index
    %464 = memref.load %arg2[%c84] : memref<101xf32, #tpu.memory_space<smem>>
    %465 = vector.broadcast %463 : f32 to vector<4x256xf32>
    %466 = vector.broadcast %464 : f32 to vector<4x256xf32>
    %467 = arith.select %59, %465, %466 : vector<4x256xi1>, vector<4x256xf32>
    %468 = arith.andi %69, %73 : vector<4x256xi1>
    %cst_69 = arith.constant 0.000000e+00 : f32
    %469 = vector.broadcast %cst_69 : f32 to vector<4x256xf32>
    %470 = arith.select %468, %467, %469 : vector<4x256xi1>, vector<4x256xf32>
    %471 = arith.mulf %470, %462 : vector<4x256xf32>
    %472 = arith.addf %428, %471 : vector<4x256xf32>
    %c226_i32 = arith.constant 226 : i32
    %473 = tpu.dynamic_rotate %51 by %c226_i32 dim 1 : vector<4x256xf32>, i32 -> vector<4x256xf32>
    %c36 = arith.constant 36 : index
    %474 = memref.load %arg2[%c36] : memref<101xf32, #tpu.memory_space<smem>>
    %c85 = arith.constant 85 : index
    %475 = memref.load %arg2[%c85] : memref<101xf32, #tpu.memory_space<smem>>
    %476 = vector.broadcast %474 : f32 to vector<4x256xf32>
    %477 = vector.broadcast %475 : f32 to vector<4x256xf32>
    %478 = arith.select %59, %476, %477 : vector<4x256xi1>, vector<4x256xf32>
    %479 = arith.andi %69, %75 : vector<4x256xi1>
    %cst_70 = arith.constant 0.000000e+00 : f32
    %480 = vector.broadcast %cst_70 : f32 to vector<4x256xf32>
    %481 = arith.select %479, %478, %480 : vector<4x256xi1>, vector<4x256xf32>
    %482 = arith.mulf %481, %473 : vector<4x256xf32>
    %483 = arith.addf %439, %482 : vector<4x256xf32>
    %c225_i32 = arith.constant 225 : i32
    %484 = tpu.dynamic_rotate %51 by %c225_i32 dim 1 : vector<4x256xf32>, i32 -> vector<4x256xf32>
    %c37 = arith.constant 37 : index
    %485 = memref.load %arg2[%c37] : memref<101xf32, #tpu.memory_space<smem>>
    %c86 = arith.constant 86 : index
    %486 = memref.load %arg2[%c86] : memref<101xf32, #tpu.memory_space<smem>>
    %487 = vector.broadcast %485 : f32 to vector<4x256xf32>
    %488 = vector.broadcast %486 : f32 to vector<4x256xf32>
    %489 = arith.select %59, %487, %488 : vector<4x256xi1>, vector<4x256xf32>
    %490 = arith.andi %69, %77 : vector<4x256xi1>
    %cst_71 = arith.constant 0.000000e+00 : f32
    %491 = vector.broadcast %cst_71 : f32 to vector<4x256xf32>
    %492 = arith.select %490, %489, %491 : vector<4x256xi1>, vector<4x256xf32>
    %493 = arith.mulf %492, %484 : vector<4x256xf32>
    %494 = arith.addf %450, %493 : vector<4x256xf32>
    %c224_i32 = arith.constant 224 : i32
    %495 = tpu.dynamic_rotate %51 by %c224_i32 dim 1 : vector<4x256xf32>, i32 -> vector<4x256xf32>
    %c38 = arith.constant 38 : index
    %496 = memref.load %arg2[%c38] : memref<101xf32, #tpu.memory_space<smem>>
    %c87 = arith.constant 87 : index
    %497 = memref.load %arg2[%c87] : memref<101xf32, #tpu.memory_space<smem>>
    %498 = vector.broadcast %496 : f32 to vector<4x256xf32>
    %499 = vector.broadcast %497 : f32 to vector<4x256xf32>
    %500 = arith.select %59, %498, %499 : vector<4x256xi1>, vector<4x256xf32>
    %cst_72 = arith.constant 0.000000e+00 : f32
    %501 = vector.broadcast %cst_72 : f32 to vector<4x256xf32>
    %502 = arith.select %69, %500, %501 : vector<4x256xi1>, vector<4x256xf32>
    %503 = arith.mulf %502, %495 : vector<4x256xf32>
    %504 = arith.addf %461, %503 : vector<4x256xf32>
    %c223_i32 = arith.constant 223 : i32
    %505 = tpu.dynamic_rotate %51 by %c223_i32 dim 1 : vector<4x256xf32>, i32 -> vector<4x256xf32>
    %c39 = arith.constant 39 : index
    %506 = memref.load %arg2[%c39] : memref<101xf32, #tpu.memory_space<smem>>
    %c88 = arith.constant 88 : index
    %507 = memref.load %arg2[%c88] : memref<101xf32, #tpu.memory_space<smem>>
    %508 = vector.broadcast %506 : f32 to vector<4x256xf32>
    %509 = vector.broadcast %507 : f32 to vector<4x256xf32>
    %510 = arith.select %59, %508, %509 : vector<4x256xi1>, vector<4x256xf32>
    %511 = arith.andi %69, %79 : vector<4x256xi1>
    %cst_73 = arith.constant 0.000000e+00 : f32
    %512 = vector.broadcast %cst_73 : f32 to vector<4x256xf32>
    %513 = arith.select %511, %510, %512 : vector<4x256xi1>, vector<4x256xf32>
    %514 = arith.mulf %513, %505 : vector<4x256xf32>
    %515 = arith.addf %472, %514 : vector<4x256xf32>
    %c222_i32 = arith.constant 222 : i32
    %516 = tpu.dynamic_rotate %51 by %c222_i32 dim 1 : vector<4x256xf32>, i32 -> vector<4x256xf32>
    %c40 = arith.constant 40 : index
    %517 = memref.load %arg2[%c40] : memref<101xf32, #tpu.memory_space<smem>>
    %c89 = arith.constant 89 : index
    %518 = memref.load %arg2[%c89] : memref<101xf32, #tpu.memory_space<smem>>
    %519 = vector.broadcast %517 : f32 to vector<4x256xf32>
    %520 = vector.broadcast %518 : f32 to vector<4x256xf32>
    %521 = arith.select %59, %519, %520 : vector<4x256xi1>, vector<4x256xf32>
    %522 = arith.andi %69, %81 : vector<4x256xi1>
    %cst_74 = arith.constant 0.000000e+00 : f32
    %523 = vector.broadcast %cst_74 : f32 to vector<4x256xf32>
    %524 = arith.select %522, %521, %523 : vector<4x256xi1>, vector<4x256xf32>
    %525 = arith.mulf %524, %516 : vector<4x256xf32>
    %526 = arith.addf %483, %525 : vector<4x256xf32>
    %c221_i32 = arith.constant 221 : i32
    %527 = tpu.dynamic_rotate %51 by %c221_i32 dim 1 : vector<4x256xf32>, i32 -> vector<4x256xf32>
    %c41 = arith.constant 41 : index
    %528 = memref.load %arg2[%c41] : memref<101xf32, #tpu.memory_space<smem>>
    %c90 = arith.constant 90 : index
    %529 = memref.load %arg2[%c90] : memref<101xf32, #tpu.memory_space<smem>>
    %530 = vector.broadcast %528 : f32 to vector<4x256xf32>
    %531 = vector.broadcast %529 : f32 to vector<4x256xf32>
    %532 = arith.select %59, %530, %531 : vector<4x256xi1>, vector<4x256xf32>
    %533 = arith.andi %69, %83 : vector<4x256xi1>
    %cst_75 = arith.constant 0.000000e+00 : f32
    %534 = vector.broadcast %cst_75 : f32 to vector<4x256xf32>
    %535 = arith.select %533, %532, %534 : vector<4x256xi1>, vector<4x256xf32>
    %536 = arith.mulf %535, %527 : vector<4x256xf32>
    %537 = arith.addf %494, %536 : vector<4x256xf32>
    %c211_i32 = arith.constant 211 : i32
    %538 = tpu.dynamic_rotate %51 by %c211_i32 dim 1 : vector<4x256xf32>, i32 -> vector<4x256xf32>
    %c42 = arith.constant 42 : index
    %539 = memref.load %arg2[%c42] : memref<101xf32, #tpu.memory_space<smem>>
    %c91 = arith.constant 91 : index
    %540 = memref.load %arg2[%c91] : memref<101xf32, #tpu.memory_space<smem>>
    %541 = vector.broadcast %539 : f32 to vector<4x256xf32>
    %542 = vector.broadcast %540 : f32 to vector<4x256xf32>
    %543 = arith.select %59, %541, %542 : vector<4x256xi1>, vector<4x256xf32>
    %544 = arith.andi %71, %73 : vector<4x256xi1>
    %cst_76 = arith.constant 0.000000e+00 : f32
    %545 = vector.broadcast %cst_76 : f32 to vector<4x256xf32>
    %546 = arith.select %544, %543, %545 : vector<4x256xi1>, vector<4x256xf32>
    %547 = arith.mulf %546, %538 : vector<4x256xf32>
    %548 = arith.addf %504, %547 : vector<4x256xf32>
    %c210_i32 = arith.constant 210 : i32
    %549 = tpu.dynamic_rotate %51 by %c210_i32 dim 1 : vector<4x256xf32>, i32 -> vector<4x256xf32>
    %c43 = arith.constant 43 : index
    %550 = memref.load %arg2[%c43] : memref<101xf32, #tpu.memory_space<smem>>
    %c92 = arith.constant 92 : index
    %551 = memref.load %arg2[%c92] : memref<101xf32, #tpu.memory_space<smem>>
    %552 = vector.broadcast %550 : f32 to vector<4x256xf32>
    %553 = vector.broadcast %551 : f32 to vector<4x256xf32>
    %554 = arith.select %59, %552, %553 : vector<4x256xi1>, vector<4x256xf32>
    %555 = arith.andi %71, %75 : vector<4x256xi1>
    %cst_77 = arith.constant 0.000000e+00 : f32
    %556 = vector.broadcast %cst_77 : f32 to vector<4x256xf32>
    %557 = arith.select %555, %554, %556 : vector<4x256xi1>, vector<4x256xf32>
    %558 = arith.mulf %557, %549 : vector<4x256xf32>
    %559 = arith.addf %515, %558 : vector<4x256xf32>
    %c209_i32 = arith.constant 209 : i32
    %560 = tpu.dynamic_rotate %51 by %c209_i32 dim 1 : vector<4x256xf32>, i32 -> vector<4x256xf32>
    %c44 = arith.constant 44 : index
    %561 = memref.load %arg2[%c44] : memref<101xf32, #tpu.memory_space<smem>>
    %c93 = arith.constant 93 : index
    %562 = memref.load %arg2[%c93] : memref<101xf32, #tpu.memory_space<smem>>
    %563 = vector.broadcast %561 : f32 to vector<4x256xf32>
    %564 = vector.broadcast %562 : f32 to vector<4x256xf32>
    %565 = arith.select %59, %563, %564 : vector<4x256xi1>, vector<4x256xf32>
    %566 = arith.andi %71, %77 : vector<4x256xi1>
    %cst_78 = arith.constant 0.000000e+00 : f32
    %567 = vector.broadcast %cst_78 : f32 to vector<4x256xf32>
    %568 = arith.select %566, %565, %567 : vector<4x256xi1>, vector<4x256xf32>
    %569 = arith.mulf %568, %560 : vector<4x256xf32>
    %570 = arith.addf %526, %569 : vector<4x256xf32>
    %c208_i32 = arith.constant 208 : i32
    %571 = tpu.dynamic_rotate %51 by %c208_i32 dim 1 : vector<4x256xf32>, i32 -> vector<4x256xf32>
    %c45 = arith.constant 45 : index
    %572 = memref.load %arg2[%c45] : memref<101xf32, #tpu.memory_space<smem>>
    %c94 = arith.constant 94 : index
    %573 = memref.load %arg2[%c94] : memref<101xf32, #tpu.memory_space<smem>>
    %574 = vector.broadcast %572 : f32 to vector<4x256xf32>
    %575 = vector.broadcast %573 : f32 to vector<4x256xf32>
    %576 = arith.select %59, %574, %575 : vector<4x256xi1>, vector<4x256xf32>
    %cst_79 = arith.constant 0.000000e+00 : f32
    %577 = vector.broadcast %cst_79 : f32 to vector<4x256xf32>
    %578 = arith.select %71, %576, %577 : vector<4x256xi1>, vector<4x256xf32>
    %579 = arith.mulf %578, %571 : vector<4x256xf32>
    %580 = arith.addf %537, %579 : vector<4x256xf32>
    %c207_i32 = arith.constant 207 : i32
    %581 = tpu.dynamic_rotate %51 by %c207_i32 dim 1 : vector<4x256xf32>, i32 -> vector<4x256xf32>
    %c46 = arith.constant 46 : index
    %582 = memref.load %arg2[%c46] : memref<101xf32, #tpu.memory_space<smem>>
    %c95 = arith.constant 95 : index
    %583 = memref.load %arg2[%c95] : memref<101xf32, #tpu.memory_space<smem>>
    %584 = vector.broadcast %582 : f32 to vector<4x256xf32>
    %585 = vector.broadcast %583 : f32 to vector<4x256xf32>
    %586 = arith.select %59, %584, %585 : vector<4x256xi1>, vector<4x256xf32>
    %587 = arith.andi %71, %79 : vector<4x256xi1>
    %cst_80 = arith.constant 0.000000e+00 : f32
    %588 = vector.broadcast %cst_80 : f32 to vector<4x256xf32>
    %589 = arith.select %587, %586, %588 : vector<4x256xi1>, vector<4x256xf32>
    %590 = arith.mulf %589, %581 : vector<4x256xf32>
    %591 = arith.addf %548, %590 : vector<4x256xf32>
    %c206_i32 = arith.constant 206 : i32
    %592 = tpu.dynamic_rotate %51 by %c206_i32 dim 1 : vector<4x256xf32>, i32 -> vector<4x256xf32>
    %c47 = arith.constant 47 : index
    %593 = memref.load %arg2[%c47] : memref<101xf32, #tpu.memory_space<smem>>
    %c96 = arith.constant 96 : index
    %594 = memref.load %arg2[%c96] : memref<101xf32, #tpu.memory_space<smem>>
    %595 = vector.broadcast %593 : f32 to vector<4x256xf32>
    %596 = vector.broadcast %594 : f32 to vector<4x256xf32>
    %597 = arith.select %59, %595, %596 : vector<4x256xi1>, vector<4x256xf32>
    %598 = arith.andi %71, %81 : vector<4x256xi1>
    %cst_81 = arith.constant 0.000000e+00 : f32
    %599 = vector.broadcast %cst_81 : f32 to vector<4x256xf32>
    %600 = arith.select %598, %597, %599 : vector<4x256xi1>, vector<4x256xf32>
    %601 = arith.mulf %600, %592 : vector<4x256xf32>
    %602 = arith.addf %559, %601 : vector<4x256xf32>
    %c205_i32 = arith.constant 205 : i32
    %603 = tpu.dynamic_rotate %51 by %c205_i32 dim 1 : vector<4x256xf32>, i32 -> vector<4x256xf32>
    %c48 = arith.constant 48 : index
    %604 = memref.load %arg2[%c48] : memref<101xf32, #tpu.memory_space<smem>>
    %c97 = arith.constant 97 : index
    %605 = memref.load %arg2[%c97] : memref<101xf32, #tpu.memory_space<smem>>
    %606 = vector.broadcast %604 : f32 to vector<4x256xf32>
    %607 = vector.broadcast %605 : f32 to vector<4x256xf32>
    %608 = arith.select %59, %606, %607 : vector<4x256xi1>, vector<4x256xf32>
    %609 = arith.andi %71, %83 : vector<4x256xi1>
    %cst_82 = arith.constant 0.000000e+00 : f32
    %610 = vector.broadcast %cst_82 : f32 to vector<4x256xf32>
    %611 = arith.select %609, %608, %610 : vector<4x256xi1>, vector<4x256xf32>
    %612 = arith.mulf %611, %603 : vector<4x256xf32>
    %613 = arith.addf %570, %612 : vector<4x256xf32>
    %614 = arith.addf %613, %580 : vector<4x256xf32>
    %615 = arith.addf %591, %602 : vector<4x256xf32>
    %616 = arith.addf %614, %615 : vector<4x256xf32>
    %617 = vector.extract_strided_slice %616 {offsets = [0, 0], sizes = [2, 256], strides = [1, 1]} : vector<4x256xf32> to vector<2x256xf32>
    %618 = vector.extract_strided_slice %616 {offsets = [2, 0], sizes = [2, 256], strides = [1, 1]} : vector<4x256xf32> to vector<2x256xf32>
    %619 = arith.addf %617, %618 : vector<2x256xf32>
    %620 = vector.broadcast %84 : f32 to vector<2x256xf32>
    %621 = arith.addf %619, %620 : vector<2x256xf32>
    %622 = vector.shape_cast %621 : vector<2x256xf32> to vector<1x2x256xf32>
    %cst_83 = arith.constant dense<0.000000e+00> : vector<1xf32>
    %623 = vector.multi_reduction <add>, %622, %cst_83 [1, 2] : vector<1x2x256xf32> to vector<1xf32>
    %624 = vector.shape_cast %623 : vector<1xf32> to vector<1x1x1xf32>
    %625 = vector.extract %624[0, 0, 0] : f32 from vector<1x1x1xf32>
    %626 = vector.broadcast %625 : f32 to vector<1x1xf32>
    %cst_84 = arith.constant 5.120000e+02 : f32
    %627 = vector.broadcast %cst_84 : f32 to vector<1x1xf32>
    %628 = arith.divf %626, %627 : vector<1x1xf32>
    %629 = vector.broadcast %628 : vector<1x1xf32> to vector<2x256xf32>
    %630 = arith.subf %621, %629 : vector<2x256xf32>
    %631 = arith.mulf %630, %630 : vector<2x256xf32>
    %632 = vector.shape_cast %631 : vector<2x256xf32> to vector<1x2x256xf32>
    %cst_85 = arith.constant dense<0.000000e+00> : vector<1xf32>
    %633 = vector.multi_reduction <add>, %632, %cst_85 [1, 2] : vector<1x2x256xf32> to vector<1xf32>
    %634 = vector.shape_cast %633 : vector<1xf32> to vector<1x1x1xf32>
    %635 = vector.extract %634[0, 0, 0] : f32 from vector<1x1x1xf32>
    %636 = vector.broadcast %635 : f32 to vector<1x1xf32>
    %cst_86 = arith.constant 5.120000e+02 : f32
    %637 = vector.broadcast %cst_86 : f32 to vector<1x1xf32>
    %638 = arith.divf %636, %637 : vector<1x1xf32>
    %639 = vector.broadcast %628 : vector<1x1xf32> to vector<2x256xf32>
    %640 = arith.subf %621, %639 : vector<2x256xf32>
    %cst_87 = arith.constant 9.99999974E-6 : f32
    %641 = vector.broadcast %cst_87 : f32 to vector<1x1xf32>
    %642 = arith.addf %638, %641 : vector<1x1xf32>
    %643 = math.rsqrt %642 : vector<1x1xf32>
    %644 = vector.broadcast %643 : vector<1x1xf32> to vector<2x256xf32>
    %645 = arith.mulf %640, %644 : vector<2x256xf32>
    %646 = vector.broadcast %85 : f32 to vector<2x256xf32>
    %647 = arith.mulf %646, %645 : vector<2x256xf32>
    %648 = vector.broadcast %86 : f32 to vector<2x256xf32>
    %649 = arith.addf %647, %648 : vector<2x256xf32>
    %650 = arith.negf %649 : vector<2x256xf32>
    %651 = math.exp %650 : vector<2x256xf32>
    %cst_88 = arith.constant 1.000000e+00 : f32
    %652 = vector.broadcast %cst_88 : f32 to vector<2x256xf32>
    %653 = arith.addf %652, %651 : vector<2x256xf32>
    %654 = arith.divf %652, %653 : vector<2x256xf32>
    %655 = vector.shape_cast %654 : vector<2x256xf32> to vector<2x1x256xf32>
    %656 = vector.broadcast %655 : vector<2x1x256xf32> to vector<2x4x256xf32>
    %657 = arith.mulf %46, %656 : vector<2x4x256xf32>
    %c0_89 = arith.constant 0 : index
    %c0_90 = arith.constant 0 : index
    %c0_91 = arith.constant 0 : index
    %658 = vector.load %arg3[%c0_89, %c0_90, %c0_91] : memref<2x4x256xf32, #tpu.memory_space<vmem>>, vector<2x4x256xf32>
    tpu.vector_store %arg3[%c0_89, %c0_90, %c0_91], %657 {strides = array<i32>} : memref<2x4x256xf32, #tpu.memory_space<vmem>>, vector<2x4x256xf32>,
    return
  }
}

</mosaic_0001>

<bundles_post_ra>
// kernel: tpu_custom_call.1
= control target key start
LH: loop header
LB: loop body
LE: loop exit
PB: predicated region body
PF: predicated region fallthrough
CT: control target
= control target key end

     0   :  { %8 = vsyncpa [#allocation4], 0  ;;  %s3851_s0 = inlined_call_operand.vmem [shape: f32[2,4,256], index: 0, kind: input, shape index: {}]   ;;  %s3852_s1 = inlined_call_operand.vmem [shape: f32[32,8], index: 1, kind: input, shape index: {}]   ;;  %s3853_s2 = inlined_call_operand.vmem [shape: f32[101], index: 2, kind: input, shape index: {}]   ;;  %s3854_s3 = inlined_call_operand.hbm [shape: f32[2,4,256], index: 3, kind: output, shape index: {}]  }
   0x1   :  { %9 = vsyncpa [#allocation3], 0  ;;  %s20_s14 = sshll.u32 %s3853_s2, 4  ;;  %s21_s14 = int_to_ptr.vmem [resolvable:$true] %s20_s14 }
   0x2   :  { %s1683_s15 = scalar_lea.vmem %s21_s14, 16  ;;  %p1688_p1 = scmp.lt.s32.totalorder %s21_s14, %s21_s14 }
   0x3   :  { %p1684_p0 = scmp.ne.s32.totalorder %s21_s14, %s1683_s15  ;;  %p1689_p2 = scmp.lt.s32.totalorder %s1683_s15, %s1683_s15 }
   0x5   :  { %p1690_p3 = por %p1689_p2, %p1688_p1 }
   0x7   :  { %p1691_p4 = pnand %p1690_p3, %p1684_p0 }
   0x9   :  { %1694 = shalt.err (!%p1691_p4)
}
   0xa   :  { %s1721_s16 = smov [#allocation2]  }
   0xb   :  { %23 = dma.vmem_to_smem %s21_s14, 16, %s1721_s16, [#allocation4]  }
   0xc   :  { %1717 = dma.done.wait [#allocation4], 16  }
   0xd   :  { %1718 = vsyncadd [#allocation4], 4294967280 }
   0xe   :  { %27 = sfence }
   0xf   :  { %v1801_v0 = vld [vmem:[%s3851_s0] sm:$0xff]  ;;  %vm36_vm0 = vcmask 1043456   ;;  %v1806_v1 = vld [vmem:[%s3851_s0 + $0x8] sm:$0xff]  ;;  %v61_v16 = vlaneseq  ;;  %vm84_vm1 = vcmask 1043459   ;;  %vm71_vm2 = vcmask 1041409   ;;  %s1724_s27 = smov 47  }
  0x10   :  { %v32_v2 = vcombine.high %v1801_v0, %v1801_v0  ;;  %v49_v3 = vsel %vm36_vm0, %v1801_v0, -inf  ;;  %v37_v4 = vsel %vm36_vm0, %v1801_v0, 0.0  ;;  %v33_v5 = vcombine.high %v1806_v1, %v1806_v1  ;;  %v89_v41 = vld [vmem:[%s3852_s1] sm:$0xff]  ;;  %v90_v59 = vld [vmem:[%s3852_s1 + $0x8] sm:$0xff]  ;;  %s1725_s28 = smov 50   ;;  %s1726_s29 = smov 49  }
  0x11   :  { %v54_v6 = vsel %vm36_vm0, %v1806_v1, -inf  ;;  %v42_v7 = vsel %vm36_vm0, %v1806_v1, 0.0  ;;  %v1824_v17 = vand.u32 127, %v61_v16  ;;  %v1826_v18 = vshrl.u32 %v61_v16, 7  ;;  %s1727_s30 = smov 48   ;;  %s1728_s4 = smov 46  }
  0x12   :  { %v50_v8 = vsel %vm36_vm0, %v32_v2, -inf  ;;  %v38_v9 = vsel %vm36_vm0, %v32_v2, 0.0  ;;  %v55_v10 = vsel %vm36_vm0, %v33_v5, -inf  ;;  %v43_v11 = vsel %vm36_vm0, %v33_v5, 0.0  ;;  %s1729_s5 = smov 45   ;;  %s1730_s6 = smov 35  }
  0x13   :  { %v51_v12 = vmax.f32 %v49_v3, %v50_v8  ;;  %v39_v13 = vadd.f32 %v38_v9, %v37_v4  ;;  %v56_v14 = vmax.f32 %v54_v6, %v55_v10  ;;  %v44_v15 = vadd.f32 %v43_v11, %v42_v7  ;;  %s1731_s7 = smov 34   ;;  %s1732_s8 = smov 33  }
  0x14   :  { %v65_v21 = vsub.s32 %v1824_v17, %v1826_v18  ;;  %vm3855_vm3 = vcmask 1041408   ;;  %v1831_v27 = vsub.s32 1, %v1826_v18  ;;  %v1834_v31 = vsub.s32 0, %v1826_v18  ;;  %s1733_s9 = smov 32   ;;  %s1734_s10 = smov 31  }
  0x15   :  { %52 = vmax.xlane.f32.xlu1 %v51_v12  ;;  %40 = vadd.xlane.f32.xlu0 %v39_v13  ;;  %v109_v37 = vsub.s32 2, %v1826_v18  ;;  %v116_v39 = vsub.s32 3, %v1826_v18  ;;  %vm125_vm4 = vcmask 60416   ;;  %vm214_vm5 = vcmask 31744   ;;  %s1735_s11 = smov 30   ;;  %s1736_s12 = smov 29  }
  0x16   :  { %3924 = vst [vmem:[#allocation8_spill] sm:$0xff] %v1831_v27  ;;  %3925 = vst [vmem:[#allocation9_spill] sm:$0xff] %v1834_v31  ;;  %v157_v3 = vrot.slane %v90_v59, %v1834_v31  ;;  %s1737_s13 = smov 19   ;;  %s1738_s14 = smov 18   ;;  %vm422_vm13 = vcmp.lt.s32.totalorder %v1824_v17, 51  ;;  %vm3870_vm15 = vcmp.lt.s32.totalorder %v1826_v18, 2 }
  0x17   :  { %s1739_s15 = smov 17   ;;  %s1740_s16 = smov 16  }
  0x18   :  { %s1741_s17 = smov 15   ;;  %s1742_s18 = smov 14  }
  0x19   :  { %57 = vmax.xlane.f32.xlu1 %v56_v14  ;;  %45 = vadd.xlane.f32.xlu0 %v44_v15  ;;  %s1743_s2 = smov 13   ;;  %s1744_s19 = smov 3  }
  0x1a   :  { %s1745_s0 = smov 2   ;;  %s1746_s20 = smov 1  }
  0x1b   :  { %s1747_s21 = smov 127   ;;  %s1748_s22 = smov 126  }
  0x1c   :  { %s1749_s23 = smov 125   ;;  %s1958_s24 = sld [smem:[#allocation2]] }
  0x1d   :  { %s1960_s25 = sld [smem:[#allocation2 + $0x31]]  ;;  %s1962_s26 = sld [smem:[#allocation2 + $0x4]] }
  0xa2   :  { %v53_v19 = vpop.xlane.xlu1 %52  ;;  %v41_v20 = vpop.xlane.xlu0 %40 }
  0xa3   :  { %v47_v22 = vmul.f32 0.00390625, %v41_v20  ;;  %v79_v28 = vrot.slane %v53_v19, %v65_v21 }
  0xa5   :  { %v66_v29 = vrot.slane %v47_v22, %v65_v21 }
  0xa6   :  { %v58_v23 = vpop.xlane.xlu1 %57  ;;  %v46_v24 = vpop.xlane.xlu0 %45 }
  0xa7   :  { %v83_v25 = vrot.slane %v58_v23, %v65_v21  ;;  %v48_v26 = vmul.f32 0.00390625, %v46_v24 }
  0xa9   :  { %v70_v30 = vrot.slane %v48_v26, %v65_v21  ;;  %v85_v32 = vsel %vm84_vm1, %v83_v25, %v79_v28 }
  0xab   :  { %v72_v33 = vsel %vm71_vm2, %v70_v30, %v66_v29 }
  0xac   :  { %v88_v34 = vsel %vm3855_vm3, %v72_v33, %v85_v32 }
  0xad   :  { %v103_v35 = vrot.slane %v88_v34, %v1831_v27  ;;  %v96_v36 = vrot.slane %v88_v34, %v1834_v31  ;;  %v110_v38 = vrot.slane %v88_v34, %v109_v37  ;;  %v117_v40 = vrot.slane %v88_v34, %v116_v39 }
  0xaf   :  { %105 = vbcast.lane.b32.xlu1 %v103_v35, 256  ;;  %98 = vbcast.lane.b32.xlu0 %v96_v36, 256 }
  0xb3   :  { %112 = vbcast.lane.b32.xlu1 %v110_v38, 256 }
  0xb7   :  { %119 = vbcast.lane.b32.xlu1 %v117_v40, 256 }
 0x121   :  { %v106_v42 = vpop.permute.xlu1 %105  ;;  %v99_v43 = vpop.permute.xlu0 %98 }
 0x122   :  { %v122_v44 = vmul.f32 %v106_v42, %v89_v41  ;;  %v121_v45 = vmul.f32 %v99_v43, %v89_v41 }
 0x124   :  { %v133_v46 = vsel %vm125_vm4, %v122_v44, 0.0  ;;  %v126_v47 = vsel %vm125_vm4, %v121_v45, 0.0 }
 0x125   :  { %v134_v48 = vrot.slane %v133_v46, 4  ;;  %v127_v49 = vrot.slane %v126_v47, 4  ;;  %v113_v50 = vpop.permute.xlu1 %112 }
 0x126   :  { %v123_v51 = vmul.f32 %v113_v50, %v89_v41  ;;  %v91_v50 = vld [vmem:[%s3852_s1 + $0x10] sm:$0xff] }
 0x127   :  { %v135_v52 = vadd.f32 %v134_v48, %v133_v46  ;;  %v128_v53 = vadd.f32 %v127_v49, %v126_v47 }
 0x128   :  { %v140_v54 = vsel %vm125_vm4, %v123_v51, 0.0 }
 0x129   :  { %v136_v55 = vrot.slane %v135_v52, 2  ;;  %v129_v56 = vrot.slane %v128_v53, 2  ;;  %v141_v57 = vrot.slane %v140_v54, 4  ;;  %v120_v58 = vpop.permute.xlu1 %119 }
 0x12a   :  { %v124_v60 = vmul.f32 %v120_v58, %v89_v41 }
 0x12b   :  { %v137_v61 = vadd.f32 %v136_v55, %v135_v52  ;;  %v130_v62 = vadd.f32 %v129_v56, %v128_v53  ;;  %v142_v63 = vadd.f32 %v141_v57, %v140_v54 }
 0x12c   :  { %v147_v2 = vsel %vm125_vm4, %v124_v60, 0.0  ;;  %vm442_vm4 = vcmp.lt.s32.totalorder %v1824_v17, 50 }
 0x12d   :  { %v138_v4 = vrot.slane %v137_v61, 1  ;;  %v131_v5 = vrot.slane %v130_v62, 1  ;;  %v143_v6 = vrot.slane %v142_v63, 2  ;;  %v148_v7 = vrot.slane %v147_v2, 4 }
 0x12f   :  { %v144_v8 = vadd.f32 %v143_v6, %v142_v63  ;;  %v149_v9 = vadd.f32 %v148_v7, %v147_v2  ;;  %v139_v10 = vadd.f32 %v138_v4, %v137_v61  ;;  %v132_v11 = vadd.f32 %v131_v5, %v130_v62 }
 0x131   :  { %v145_v12 = vrot.slane %v144_v8, 1  ;;  %v150_v13 = vrot.slane %v149_v9, 2  ;;  %v159_v14 = vadd.f32 %v157_v3, %v139_v10  ;;  %v158_v15 = vadd.f32 %v157_v3, %v132_v11  ;;  %v92_v10 = vld [vmem:[%s3852_s1 + $0x18] sm:$0xff]  ;;  %s1723_s1 = smov 51  }
 0x133   :  { %v151_v16 = vadd.f32 %v150_v13, %v149_v9  ;;  %v163_v19 = vadd.f32 3.0, %v159_v14  ;;  %v162_v20 = vadd.f32 3.0, %v158_v15  ;;  %v146_v21 = vadd.f32 %v145_v12, %v144_v8 }
 0x135   :  { %v152_v22 = vrot.slane %v151_v16, 1  ;;  %v167_v23 = vmax.f32 %v163_v19, 0.0  ;;  %v166_v24 = vmax.f32 %v162_v20, 0.0  ;;  %v160_v25 = vadd.f32 %v157_v3, %v146_v21 }
 0x136   :  { %v246_v19 = vrot.slane %v92_v10, %v1834_v31 }
 0x137   :  { %v171_v26 = vmin.f32 %v167_v23, 6.0  ;;  %v170_v28 = vmin.f32 %v166_v24, 6.0  ;;  %v164_v29 = vadd.f32 3.0, %v160_v25  ;;  %v153_v30 = vadd.f32 %v152_v22, %v151_v16 }
 0x139   :  { %v175_v32 = vmul.f32 %v171_v26, %v159_v14  ;;  %v174_v33 = vmul.f32 %v170_v28, %v158_v15  ;;  %v168_v34 = vmax.f32 %v164_v29, 0.0  ;;  %v161_v35 = vadd.f32 %v157_v3, %v153_v30 }
 0x13b   :  { %v179_v36 = vmul.f32 0.16666667, %v175_v32  ;;  %v178_v37 = vmul.f32 0.16666667, %v174_v33  ;;  %v172_v38 = vmin.f32 %v168_v34, 6.0  ;;  %v165_v39 = vadd.f32 3.0, %v161_v35 }
 0x13d   :  { %v192_v40 = vrot.slane %v179_v36, %v1834_v31  ;;  %v185_v41 = vrot.slane %v178_v37, %v1834_v31  ;;  %v176_v42 = vmul.f32 %v172_v38, %v160_v25  ;;  %v169_v43 = vmax.f32 %v165_v39, 0.0 }
 0x13f   :  { %194 = vbcast.lane.b32.xlu1 %v192_v40, 256  ;;  %187 = vbcast.lane.b32.xlu0 %v185_v41, 256  ;;  %v180_v44 = vmul.f32 0.16666667, %v176_v42  ;;  %v173_v45 = vmin.f32 %v169_v43, 6.0 }
 0x141   :  { %v199_v46 = vrot.slane %v180_v44, %v1834_v31  ;;  %v177_v47 = vmul.f32 %v173_v45, %v161_v35 }
 0x143   :  { %201 = vbcast.lane.b32.xlu0 %v199_v46, 256  ;;  %v181_v48 = vmul.f32 0.16666667, %v177_v47  ;;  %v1722_v47 = vmov 839922192  }
 0x145   :  { %v206_v49 = vrot.slane %v181_v48, %v1834_v31  ;;  %v282_v48 = vunpack.c.l.s4 %v1722_v47 }
 0x147   :  { %208 = vbcast.lane.b32.xlu1 %v206_v49, 256  ;;  %v283_v49 = vunpack.c.0.s8 %v282_v48 }
 0x1b1   :  { %v195_v51 = vpop.permute.xlu1 %194  ;;  %v188_v52 = vpop.permute.xlu0 %187 }
 0x1b2   :  { %v211_v53 = vmul.f32 %v195_v51, %v91_v50  ;;  %v210_v54 = vmul.f32 %v188_v52, %v91_v50 }
 0x1b4   :  { %v222_v55 = vsel %vm214_vm5, %v211_v53, 0.0  ;;  %v215_v56 = vsel %vm214_vm5, %v210_v54, 0.0 }
 0x1b5   :  { %v223_v57 = vrot.slane %v222_v55, 4  ;;  %v216_v58 = vrot.slane %v215_v56, 4  ;;  %v202_v59 = vpop.permute.xlu0 %201 }
 0x1b6   :  { %v212_v60 = vmul.f32 %v202_v59, %v91_v50 }
 0x1b7   :  { %v224_v61 = vadd.f32 %v223_v57, %v222_v55  ;;  %v217_v62 = vadd.f32 %v216_v58, %v215_v56 }
 0x1b8   :  { %v229_v63 = vsel %vm214_vm5, %v212_v60, 0.0 }
 0x1b9   :  { %v225_v2 = vrot.slane %v224_v61, 2  ;;  %v218_v3 = vrot.slane %v217_v62, 2  ;;  %v230_v4 = vrot.slane %v229_v63, 4  ;;  %v209_v5 = vpop.permute.xlu1 %208 }
 0x1ba   :  { %v213_v6 = vmul.f32 %v209_v5, %v91_v50  ;;  %v286_v50 = vsub.s32 %v283_v49, %v1826_v18 }
 0x1bb   :  { %v219_v7 = vadd.f32 %v218_v3, %v217_v62  ;;  %v231_v8 = vadd.f32 %v230_v4, %v229_v63  ;;  %v226_v11 = vadd.f32 %v225_v2, %v224_v61 }
 0x1bc   :  { %v236_v9 = vsel %vm214_vm5, %v213_v6, 0.0 }
 0x1bd   :  { %v220_v12 = vrot.slane %v219_v7, 1  ;;  %v232_v13 = vrot.slane %v231_v8, 2  ;;  %v237_v14 = vrot.slane %v236_v9, 4  ;;  %v227_v20 = vrot.slane %v226_v11, 1 }
 0x1bf   :  { %v233_v15 = vadd.f32 %v232_v13, %v231_v8  ;;  %v238_v16 = vadd.f32 %v237_v14, %v236_v9  ;;  %v221_v21 = vadd.f32 %v220_v12, %v219_v7  ;;  %v228_v26 = vadd.f32 %v227_v20, %v226_v11 }
 0x1c1   :  { %v234_v22 = vrot.slane %v233_v15, 1  ;;  %v239_v23 = vrot.slane %v238_v16, 2  ;;  %v247_v28 = vadd.f32 %v246_v19, %v221_v21  ;;  %v248_v34 = vadd.f32 %v246_v19, %v228_v26 }
 0x1c3   :  { %v235_v24 = vadd.f32 %v234_v22, %v233_v15  ;;  %v240_v25 = vadd.f32 %v239_v23, %v238_v16 }
 0x1c5   :  { %v249_v29 = vadd.f32 %v246_v19, %v235_v24  ;;  %v241_v30 = vrot.slane %v240_v25, 1 }
 0x1c7   :  { %v251_v32 = vadd.f32 %v249_v29, %v247_v28  ;;  %v242_v33 = vadd.f32 %v241_v30, %v240_v25 }
 0x1c9   :  { %v1501_v35 = vmul.f32 -1.442695, %v251_v32  ;;  %v250_v36 = vadd.f32 %v246_v19, %v242_v33 }
 0x1cb   :  { %1665 = vpow2.f32 %v1501_v35  ;;  %v252_v37 = vadd.f32 %v250_v36, %v248_v34 }
 0x1cd   :  { %v1502_v38 = vmul.f32 -1.442695, %v252_v37 }
 0x1cf   :  { %1667 = vpow2.f32 %v1502_v38 }
 0x1d5   :  { %v1666_v39 = vpop.eup %1665 }
 0x1d6   :  { %v259_v40 = vadd.f32 1.0, %v1666_v39 }
 0x1d8   :  { %1669 = vrcp.f32 %v259_v40 }
 0x1d9   :  { %v1668_v41 = vpop.eup %1667 }
 0x1da   :  { %v260_v42 = vadd.f32 1.0, %v1668_v41 }
 0x1dc   :  { %1671 = vrcp.f32 %v260_v42 }
 0x1e2   :  { %v1670_v43 = vpop.eup %1669 }
 0x1e3   :  { %v268_v44 = vrot.slane %v1670_v43, %v1834_v31 }
 0x1e5   :  { %270 = vbcast.lane.b32.xlu0 %v268_v44, 256 }
 0x1e6   :  { %v1672_v45 = vpop.eup %1671 }
 0x1e7   :  { %v275_v46 = vrot.slane %v1672_v45, %v1834_v31  ;;  %v4095_v31 = vmov 0 }
 0x1e9   :  { %277 = vbcast.lane.b32.xlu1 %v275_v46, 256 }
 0x257   :  { %v271_v51 = vpop.permute.xlu0 %270 }
 0x258   :  { %v287_v52 = vrot.slane %v271_v51, %v286_v50 }
 0x25a   :  { %v1873_v53 = vmul.f32 %v287_v52, %v1801_v0 }
 0x25b   :  { %v278_v54 = vpop.permute.xlu1 %277 }
 0x25c   :  { %3926 = vst [vmem:[#allocation10_spill] sm:$0xff] %v1873_v53  ;;  %v301_v55 = vcombine.high %v1873_v53, %v1873_v53  ;;  %v305_v56 = vsel %vm36_vm0, %v1873_v53, -inf  ;;  %v333_v57 = vsel %vm36_vm0, %v1873_v53, 0.0  ;;  %v294_v58 = vrot.slane %v278_v54, %v286_v50 }
 0x25d   :  { %v306_v59 = vrot.slane %v305_v56, 4  ;;  %v334_v60 = vrot.slane %v333_v57, 4 }
 0x25e   :  { %v312_v61 = vsel %vm36_vm0, %v301_v55, -inf  ;;  %v340_v62 = vsel %vm36_vm0, %v301_v55, 0.0  ;;  %v1884_v0 = vmul.f32 %v294_v58, %v1806_v1 }
 0x25f   :  { %v307_v63 = vmax.f32 %v305_v56, %v306_v59  ;;  %v313_v2 = vrot.slane %v312_v61, 4  ;;  %v335_v3 = vadd.f32 %v334_v60, %v333_v57  ;;  %v341_v4 = vrot.slane %v340_v62, 4 }
 0x260   :  { %3927 = vst [vmem:[#allocation11_spill] sm:$0xff] %v1884_v0  ;;  %v302_v5 = vcombine.high %v1884_v0, %v1884_v0  ;;  %v319_v6 = vsel %vm36_vm0, %v1884_v0, -inf  ;;  %v347_v7 = vsel %vm36_vm0, %v1884_v0, 0.0 }
 0x261   :  { %v308_v8 = vrot.slane %v307_v63, 2  ;;  %v314_v9 = vmax.f32 %v312_v61, %v313_v2  ;;  %v336_v10 = vrot.slane %v335_v3, 2  ;;  %v342_v11 = vadd.f32 %v341_v4, %v340_v62 }
 0x262   :  { %v320_v12 = vrot.slane %v319_v6, 4  ;;  %v326_v1 = vsel %vm36_vm0, %v302_v5, -inf  ;;  %v348_v13 = vrot.slane %v347_v7, 4  ;;  %v354_v14 = vsel %vm36_vm0, %v302_v5, 0.0 }
 0x263   :  { %v315_v15 = vrot.slane %v314_v9, 2  ;;  %v337_v16 = vadd.f32 %v336_v10, %v335_v3  ;;  %v343_v19 = vrot.slane %v342_v11, 2  ;;  %v327_v21 = vrot.slane %v326_v1, 4 }
 0x264   :  { %v321_v20 = vmax.f32 %v319_v6, %v320_v12  ;;  %v349_v22 = vadd.f32 %v348_v13, %v347_v7  ;;  %v355_v23 = vrot.slane %v354_v14, 4  ;;  %v309_v24 = vmax.f32 %v307_v63, %v308_v8 }
 0x265   :  { %v338_v25 = vrot.slane %v337_v16, 1  ;;  %v344_v26 = vadd.f32 %v343_v19, %v342_v11  ;;  %v328_v29 = vmax.f32 %v326_v1, %v327_v21  ;;  %v316_v33 = vmax.f32 %v314_v9, %v315_v15 }
 0x266   :  { %v322_v28 = vrot.slane %v321_v20, 2  ;;  %v350_v30 = vrot.slane %v349_v22, 2  ;;  %v356_v32 = vadd.f32 %v355_v23, %v354_v14  ;;  %v310_v39 = vrot.slane %v309_v24, 1 }
 0x267   :  { %v345_v34 = vrot.slane %v344_v26, 1  ;;  %v329_v36 = vrot.slane %v328_v29, 2  ;;  %v339_v40 = vadd.f32 %v338_v25, %v337_v16  ;;  %v317_v45 = vrot.slane %v316_v33, 1 }
 0x268   :  { %v323_v35 = vmax.f32 %v321_v20, %v322_v28  ;;  %v351_v37 = vadd.f32 %v350_v30, %v349_v22  ;;  %v357_v38 = vrot.slane %v356_v32, 2  ;;  %v311_v51 = vmax.f32 %v309_v24, %v310_v39 }
 0x269   :  { %v330_v42 = vmax.f32 %v328_v29, %v329_v36  ;;  %v346_v46 = vadd.f32 %v345_v34, %v344_v26  ;;  %v361_v52 = vmul.f32 0.25, %v339_v40  ;;  %v318_v57 = vmax.f32 %v316_v33, %v317_v45 }
 0x26a   :  { %v324_v41 = vrot.slane %v323_v35, 1  ;;  %v352_v43 = vrot.slane %v351_v37, 1  ;;  %v358_v44 = vadd.f32 %v357_v38, %v356_v32  ;;  %v383_v4 = vadd.s32 128, %v1824_v17 }
 0x26b   :  { %v331_v48 = vrot.slane %v330_v42, 1  ;;  %v362_v58 = vmul.f32 0.25, %v346_v46  ;;  %v1968_v5 = vand.u32 15, %v1824_v17  ;;  %v1971_v6 = vshra.s32 %v1824_v17, 4 }
 0x26c   :  { %v325_v47 = vmax.f32 %v323_v35, %v324_v41  ;;  %v353_v49 = vadd.f32 %v352_v43, %v351_v37  ;;  %v359_v50 = vrot.slane %v358_v44, 1  ;;  %v1973_v7 = vand.u32 15, %v383_v4 }
 0x26d   :  { %v332_v54 = vmax.f32 %v330_v42, %v331_v48  ;;  %v1975_v8 = vshra.s32 %v383_v4, 4  ;;  %vm391_vm6 = vcmp.ge.s32.totalorder %v1971_v6, 3  ;;  %vm3865_vm7 = vcmp.ge.s32.totalorder %v1968_v5, 3 }
 0x26e   :  { %v360_v55 = vadd.f32 %v359_v50, %v358_v44  ;;  %v363_v56 = vmul.f32 0.25, %v353_v49  ;;  %v369_v60 = vsel %vm71_vm2, %v325_v47, %v311_v51  ;;  %vm3866_vm9 = vcmp.ge.s32.totalorder %v1973_v7, 3  ;;  %vm1991_vm11 = vmand %vm391_vm6, %vm3865_vm7 }
 0x26f   :  { %v370_v63 = vsel %vm71_vm2, %v332_v54, %v318_v57  ;;  %vm392_vm8 = vcmp.ge.s32.totalorder %v1975_v8, 3  ;;  %v427_v9 = vstv %s1958_s24  ;;  %vm3857_vm10 = vcmp.lt.s32.totalorder %v1968_v5, 15  ;;  %s2264_s24 = sld [smem:[#allocation2 + $0x3b]] }
 0x270   :  { %v364_v59 = vmul.f32 0.25, %v360_v55  ;;  %v377_v61 = vsel %vm84_vm1, %v363_v56, %v361_v52  ;;  %v428_v10 = vstv %s1960_s25  ;;  %vm3856_vm12 = vcmp.lt.s32.totalorder %v1973_v7, 15  ;;  %vm2004_vm14 = vmand %vm392_vm8, %vm3866_vm9  ;;  %s1759_s25 = smov 97  }
 0x271   :  { %v1897_v62 = vsel %vm3855_vm3, %v369_v60, %v377_v61  ;;  %v505_v12 = vstv %s1962_s26  ;;  %vm2013_vm0 = vmand %vm391_vm6, %vm3857_vm10  ;;  %v429_v16 = vsel %vm3870_vm15, %v427_v9, %v428_v10  ;;  %vm500_vm2 = vcmp.lt.s32.totalorder %v1824_v17, 47  ;;  %s2307_s26 = sld [smem:[#allocation2 + $0xb]] }
 0x272   :  { %v378_v2 = vsel %vm84_vm1, %v364_v59, %v362_v58  ;;  %418 = vrot.lane.b32.xlu0 %v1897_v62, %s1723_s1  ;;  %vm2026_vm1 = vmand %vm392_vm8, %vm3856_vm12  ;;  %v432_v25 = vsel %vm1991_vm11, %v429_v16, 0.0  ;;  %v433_v26 = vsel %vm2004_vm14, %v429_v16, 0.0  ;;  %vm3868_vm5 = vcmp.ge.s32.totalorder %v1968_v5, 2 }
 0x273   :  { %v1903_v3 = vsel %vm3855_vm3, %v370_v63, %v378_v2  ;;  %vm3860_vm11 = vcmp.ge.s32.totalorder %v1973_v7, 2  ;;  %vm3858_vm14 = vcmp.ge.s32.totalorder %v1968_v5, 1  ;;  %vm482_vm12 = vcmp.lt.s32.totalorder %v1824_v17, 48 }
 0x274   :  { %420 = vrot.lane.b32.xlu1 %v1903_v3, %s1723_s1  ;;  %s1964_s1 = sld [smem:[#allocation2 + $0x35]]  ;;  %vm2122_vm3 = vmand %vm391_vm6, %vm3858_vm14 }
 0x276   :  { %496 = vrot.lane.b32.xlu0 %v1897_v62, %s1724_s27 }
 0x278   :  { %498 = vrot.lane.b32.xlu1 %v1903_v3, %s1724_s27  ;;  %s1750_s27 = smov 115  }
 0x27a   :  { %438 = vrot.lane.b32.xlu0 %v1897_v62, %s1725_s28  ;;  %v506_v1 = vstv %s1964_s1  ;;  %s2309_s1 = sld [smem:[#allocation2 + $0x3c]] }
 0x27b   :  { %v507_v20 = vsel %vm3870_vm15, %v505_v12, %v506_v1 }
 0x27c   :  { %440 = vrot.lane.b32.xlu1 %v1903_v3, %s1725_s28  ;;  %s1751_s28 = smov 114   ;;  %v510_v28 = vsel %vm2013_vm0, %v507_v20, 0.0  ;;  %v511_v29 = vsel %vm2026_vm1, %v507_v20, 0.0  ;;  %vm2087_vm0 = vmand %vm391_vm6, %vm3868_vm5  ;;  %vm3859_vm1 = vcmp.lt.s32.totalorder %v1968_v5, 14 }
 0x27d   :  { %vm2140_vm10 = vmand %vm391_vm6, %vm3859_vm1  ;;  %vm3862_vm1 = vcmp.lt.s32.totalorder %v1968_v5, 13 }
 0x27e   :  { %458 = vrot.lane.b32.xlu0 %v1897_v62, %s1726_s29 }
 0x280   :  { %460 = vrot.lane.b32.xlu1 %v1903_v3, %s1726_s29  ;;  %s1752_s29 = smov 113  }
 0x282   :  { %478 = vrot.lane.b32.xlu0 %v1897_v62, %s1727_s30 }
 0x284   :  { %480 = vrot.lane.b32.xlu1 %v1903_v3, %s1727_s30  ;;  %s2032_s30 = sld [smem:[#allocation2 + $0x1]] }
 0x286   :  { %516 = vrot.lane.b32.xlu0 %v1897_v62, %s1728_s4 }
 0x288   :  { %518 = vrot.lane.b32.xlu1 %v1903_v3, %s1728_s4  ;;  %s2034_s4 = sld [smem:[#allocation2 + $0x32]] }
 0x28a   :  { %536 = vrot.lane.b32.xlu0 %v1897_v62, %s1729_s5  ;;  %v447_v45 = vstv %s2032_s30  ;;  %s1761_s30 = smov 95  }
 0x28c   :  { %538 = vrot.lane.b32.xlu1 %v1903_v3, %s1729_s5  ;;  %s2044_s5 = sld [smem:[#allocation2 + $0x2]] }
 0x28e   :  { %556 = vrot.lane.b32.xlu0 %v1897_v62, %s1730_s6  ;;  %v448_v46 = vstv %s2034_s4  ;;  %s2373_s4 = sld [smem:[#allocation2 + $0xd]] }
 0x28f   :  { %v449_v59 = vsel %vm3870_vm15, %v447_v45, %v448_v46 }
 0x290   :  { %558 = vrot.lane.b32.xlu1 %v1903_v3, %s1730_s6  ;;  %s1753_s6 = smov 112   ;;  %v452_v14 = vsel %vm2087_vm0, %v449_v59, 0.0  ;;  %vm2199_vm0 = vmand %vm391_vm6, %vm3862_vm1 }
 0x292   :  { %576 = vrot.lane.b32.xlu0 %v1897_v62, %s1731_s7  ;;  %v467_v48 = vstv %s2044_s5  ;;  %s2375_s5 = sld [smem:[#allocation2 + $0x3e]] }
 0x294   :  { %578 = vrot.lane.b32.xlu1 %v1903_v3, %s1731_s7  ;;  %s2047_s7 = sld [smem:[#allocation2 + $0x33]] }
 0x296   :  { %596 = vrot.lane.b32.xlu0 %v1897_v62, %s1732_s8 }
 0x298   :  { %598 = vrot.lane.b32.xlu1 %v1903_v3, %s1732_s8  ;;  %s2050_s8 = sld [smem:[#allocation2 + $0x5]] }
 0x29a   :  { %616 = vrot.lane.b32.xlu0 %v1897_v62, %s1733_s9  ;;  %v468_v49 = vstv %s2047_s7  ;;  %s2410_s7 = sld [smem:[#allocation2 + $0xe]] }
 0x29b   :  { %v2133_v60 = vsel %vm3870_vm15, %v467_v48, %v468_v49 }
 0x29c   :  { %618 = vrot.lane.b32.xlu1 %v1903_v3, %s1733_s9  ;;  %s2052_s9 = sld [smem:[#allocation2 + $0x36]]  ;;  %v472_v20 = vsel %vm2122_vm3, %v2133_v60, 0.0 }
 0x29e   :  { %634 = vrot.lane.b32.xlu0 %v1897_v62, %s1734_s10  ;;  %v525_v55 = vstv %s2050_s8  ;;  %s2412_s8 = sld [smem:[#allocation2 + $0x3f]] }
 0x2a0   :  { %636 = vrot.lane.b32.xlu1 %v1903_v3, %s1734_s10  ;;  %s2055_s10 = sld [smem:[#allocation2 + $0x3]] }
 0x2a2   :  { %654 = vrot.lane.b32.xlu0 %v1897_v62, %s1735_s11  ;;  %v526_v56 = vstv %s2052_s9  ;;  %s1763_s9 = smov 93  }
 0x2a3   :  { %v527_v9 = vsel %vm3870_vm15, %v525_v55, %v526_v56 }
 0x2a4   :  { %656 = vrot.lane.b32.xlu1 %v1903_v3, %s1735_s11  ;;  %s1754_s11 = smov 111  }
 0x2a6   :  { %674 = vrot.lane.b32.xlu0 %v1897_v62, %s1736_s12  ;;  %v487_v61 = vstv %s2055_s10  ;;  %s2451_s10 = sld [smem:[#allocation2 + $0xf]] }
 0x2a8   :  { %676 = vrot.lane.b32.xlu1 %v1903_v3, %s1736_s12  ;;  %s2062_s12 = sld [smem:[#allocation2 + $0x34]] }
 0x2aa   :  { %694 = vrot.lane.b32.xlu0 %v1897_v62, %s1737_s13 }
 0x2ac   :  { %696 = vrot.lane.b32.xlu1 %v1903_v3, %s1737_s13  ;;  %s2073_s13 = sld [smem:[#allocation2 + $0x6]] }
 0x2ae   :  { %714 = vrot.lane.b32.xlu0 %v1897_v62, %s1738_s14  ;;  %v488_v2 = vstv %s2062_s12  ;;  %s1764_s12 = smov 83  }
 0x2af   :  { %v489_v21 = vsel %vm3870_vm15, %v487_v61, %v488_v2 }
 0x2b0   :  { %716 = vrot.lane.b32.xlu1 %v1903_v3, %s1738_s14  ;;  %s2075_s14 = sld [smem:[#allocation2 + $0x37]]  ;;  %v490_v55 = vsel %vm391_vm6, %v489_v21, 0.0  ;;  %v491_v2 = vsel %vm392_vm8, %v489_v21, 0.0 }
 0x2b2   :  { %734 = vrot.lane.b32.xlu0 %v1897_v62, %s1739_s15  ;;  %v545_v1 = vstv %s2073_s13  ;;  %s2493_s13 = sld [smem:[#allocation2 + $0x10]] }
 0x2b4   :  { %736 = vrot.lane.b32.xlu1 %v1903_v3, %s1739_s15  ;;  %s1755_s15 = smov 110  }
 0x2b6   :  { %754 = vrot.lane.b32.xlu0 %v1897_v62, %s1740_s16 }
 0x2b8   :  { %756 = vrot.lane.b32.xlu1 %v1903_v3, %s1740_s16  ;;  %s2096_s16 = sld [smem:[#allocation2 + $0x7]] }
 0x2ba   :  { %772 = vrot.lane.b32.xlu0 %v1897_v62, %s1741_s17 }
 0x2bc   :  { %774 = vrot.lane.b32.xlu1 %v1903_v3, %s1741_s17  ;;  %s2098_s17 = sld [smem:[#allocation2 + $0x38]] }
 0x2be   :  { %792 = vrot.lane.b32.xlu0 %v1897_v62, %s1742_s18 }
 0x2c0   :  { %794 = vrot.lane.b32.xlu1 %v1903_v3, %s1742_s18  ;;  %s1756_s18 = smov 109  }
 0x2c2   :  { %812 = vrot.lane.b32.xlu0 %v1897_v62, %s1743_s2 }
 0x2c4   :  { %814 = vrot.lane.b32.xlu1 %v1903_v3, %s1743_s2  ;;  %s2158_s2 = sld [smem:[#allocation2 + $0x8]] }
 0x2c6   :  { %832 = vrot.lane.b32.xlu0 %v1897_v62, %s1744_s19 }
 0x2c8   :  { %834 = vrot.lane.b32.xlu1 %v1903_v3, %s1744_s19  ;;  %s2160_s19 = sld [smem:[#allocation2 + $0x39]] }
 0x2ca   :  { %850 = vrot.lane.b32.xlu0 %v1897_v62, %s1745_s0 }
 0x2cc   :  { %852 = vrot.lane.b32.xlu1 %v1903_v3, %s1745_s0  ;;  %s1757_s0 = smov 99  }
 0x2ce   :  { %868 = vrot.lane.b32.xlu0 %v1897_v62, %s1746_s20  ;;  %v586_v51 = vstv %s2160_s19  ;;  %s2578_s19 = sld [smem:[#allocation2 + $0x43]] }
 0x2d0   :  { %870 = vrot.lane.b32.xlu1 %v1903_v3, %s1746_s20  ;;  %s2217_s20 = sld [smem:[#allocation2 + $0x9]] }
 0x2d2   :  { %895 = vrot.lane.b32.xlu0 %v1897_v62, %s1747_s21 }
 0x2d4   :  { %897 = vrot.lane.b32.xlu1 %v1903_v3, %s1747_s21  ;;  %s2219_s21 = sld [smem:[#allocation2 + $0x3a]] }
 0x2d6   :  { %913 = vrot.lane.b32.xlu0 %v1897_v62, %s1748_s22 }
 0x2d8   :  { %915 = vrot.lane.b32.xlu1 %v1903_v3, %s1748_s22  ;;  %s1758_s22 = smov 98  }
 0x2da   :  { %931 = vrot.lane.b32.xlu0 %v1897_v62, %s1749_s23  ;;  %v606_v16 = vstv %s2219_s21  ;;  %s2619_s21 = sld [smem:[#allocation2 + $0x44]] }
 0x2dc   :  { %933 = vrot.lane.b32.xlu1 %v1903_v3, %s1749_s23  ;;  %s2262_s23 = sld [smem:[#allocation2 + $0xa]] }
 0x2de   :  { %949 = vrot.lane.b32.xlu0 %v1897_v62, %s1750_s27 }
 0x2e0   :  { %951 = vrot.lane.b32.xlu1 %v1903_v3, %s1750_s27  ;;  %s1760_s27 = smov 96  }
 0x2e2   :  { %969 = vrot.lane.b32.xlu0 %v1897_v62, %s1751_s28 }
 0x2e4   :  { %v419_v13 = vpop.permute.xlu0 %418  ;;  %971 = vrot.lane.b32.xlu1 %v1903_v3, %s1751_s28  ;;  %s2348_s28 = sld [smem:[#allocation2 + $0xc]] }
 0x2e6   :  { %989 = vrot.lane.b32.xlu0 %v1897_v62, %s1752_s29  ;;  %v421_v19 = vpop.permute.xlu1 %420 }
 0x2e7   :  { %v423_v22 = vsel %vm422_vm13, %v419_v13, %v421_v19  ;;  %v424_v23 = vsel %vm422_vm13, %v421_v19, %v419_v13  ;;  %vm462_vm13 = vcmp.lt.s32.totalorder %v1824_v17, 49  ;;  %v546_v13 = vstv %s2075_s14  ;;  %s2495_s14 = sld [smem:[#allocation2 + $0x41]] }
 0x2e8   :  { %v497_v24 = vpop.permute.xlu0 %496  ;;  %991 = vrot.lane.b32.xlu1 %v1903_v3, %s1752_s29  ;;  %v434_v34 = vmul.f32 %v432_v25, %v424_v23  ;;  %v435_v35 = vmul.f32 %v433_v26, %v423_v22  ;;  %v530_v22 = vsel %vm2140_vm10, %v527_v9, 0.0  ;;  %v547_v26 = vsel %vm3870_vm15, %v545_v1, %v546_v13  ;;  %s2350_s29 = sld [smem:[#allocation2 + $0x3d]] }
 0x2e9   :  { %vm393_vm10 = vcmp.ge.s32.totalorder %v1971_v6, 2 }
 0x2ea   :  { %1009 = vrot.lane.b32.xlu0 %v1897_v62, %s1753_s6  ;;  %v499_v30 = vpop.permute.xlu1 %498  ;;  %vm2288_vm6 = vmand %vm393_vm10, %vm3868_vm5 }
 0x2eb   :  { %v501_v32 = vsel %vm500_vm2, %v497_v24, %v499_v30  ;;  %v502_v33 = vsel %vm500_vm2, %v499_v30, %v497_v24  ;;  %vm3861_vm2 = vcmp.lt.s32.totalorder %v1973_v7, 14  ;;  %v566_v30 = vstv %s2098_s17  ;;  %s2537_s17 = sld [smem:[#allocation2 + $0x42]] }
 0x2ec   :  { %v512_v36 = vmul.f32 %v510_v28, %v502_v33  ;;  %v513_v37 = vmul.f32 %v511_v29, %v501_v32  ;;  %v439_v38 = vpop.permute.xlu0 %438  ;;  %1011 = vrot.lane.b32.xlu1 %v1903_v3, %s1753_s6  ;;  %vm2152_vm14 = vmand %vm392_vm8, %vm3861_vm2  ;;  %v565_v29 = vstv %s2096_s16  ;;  %s1762_s6 = smov 94   ;;  %s2535_s16 = sld [smem:[#allocation2 + $0x11]] }
 0x2ed   :  { %v531_v23 = vsel %vm2152_vm14, %v527_v9, 0.0  ;;  %vm540_vm14 = vcmp.lt.s32.totalorder %v1824_v17, 45 }
 0x2ee   :  { %v2057_v39 = vadd.f32 %v512_v36, %v434_v34  ;;  %v2059_v40 = vadd.f32 %v513_v37, %v435_v35  ;;  %1027 = vrot.lane.b32.xlu0 %v1897_v62, %s1754_s11  ;;  %v441_v41 = vpop.permute.xlu1 %440 }
 0x2ef   :  { %v2067_v42 = vsel %vm442_vm4, %v439_v38, %v441_v41  ;;  %v2071_v43 = vsel %vm442_vm4, %v441_v41, %v439_v38  ;;  %vm2104_vm4 = vmand %vm392_vm8, %vm3860_vm11  ;;  %vm3864_vm11 = vcmp.lt.s32.totalorder %v1973_v7, 13 }
 0x2f0   :  { %v459_v44 = vpop.permute.xlu0 %458  ;;  %1029 = vrot.lane.b32.xlu1 %v1903_v3, %s1754_s11  ;;  %v453_v15 = vsel %vm2104_vm4, %v449_v59, 0.0  ;;  %vm2210_vm3 = vmand %vm392_vm8, %vm3864_vm11  ;;  %vm394_vm4 = vcmp.ge.s32.totalorder %v1975_v8, 2  ;;  %v454_v34 = vmul.f32 %v452_v14, %v2071_v43  ;;  %s2453_s11 = sld [smem:[#allocation2 + $0x40]] }
 0x2f1   :  { %v455_v35 = vmul.f32 %v453_v15, %v2067_v42  ;;  %v551_v45 = vsel %vm2210_vm3, %v547_v26, 0.0  ;;  %v567_v42 = vsel %vm3870_vm15, %v565_v29, %v566_v30  ;;  %v605_v15 = vstv %s2217_s20  ;;  %s2617_s20 = sld [smem:[#allocation2 + $0x13]] }
 0x2f2   :  { %1047 = vrot.lane.b32.xlu0 %v1897_v62, %s1755_s15  ;;  %v461_v50 = vpop.permute.xlu1 %460  ;;  %v607_v29 = vsel %vm3870_vm15, %v605_v15, %v606_v16 }
 0x2f3   :  { %v2110_v52 = vsel %vm462_vm13, %v459_v44, %v461_v50  ;;  %v2114_v54 = vsel %vm462_vm13, %v461_v50, %v459_v44  ;;  %vm3863_vm13 = vcmp.ge.s32.totalorder %v1973_v7, 1  ;;  %v550_v44 = vsel %vm2199_vm0, %v547_v26, 0.0 }
 0x2f4   :  { %v479_v58 = vpop.permute.xlu0 %478  ;;  %1049 = vrot.lane.b32.xlu1 %v1903_v3, %s1755_s15  ;;  %vm2180_vm2 = vmand %vm392_vm8, %vm3863_vm13  ;;  %v585_v50 = vstv %s2158_s2  ;;  %vm560_vm0 = vcmp.lt.s32.totalorder %v1824_v17, 35  ;;  %vm3958_vm8 = vcmp.ge.s32.totalorder %v1973_v7, 2  ;;  %s1765_s15 = smov 82   ;;  %s2576_s2 = sld [smem:[#allocation2 + $0x12]] }
 0x2f5   :  { %v473_v41 = vsel %vm2180_vm2, %v2133_v60, 0.0  ;;  %vm2256_vm2 = vmand %vm394_vm4, %vm3866_vm9 }
 0x2f6   :  { %1067 = vrot.lane.b32.xlu0 %v1897_v62, %s1756_s18  ;;  %v481_v4 = vpop.permute.xlu1 %480  ;;  %v475_v59 = vmul.f32 %v473_v41, %v2110_v52  ;;  %v571_v9 = vsel %vm2256_vm2, %v567_v42, 0.0  ;;  %vm2301_vm3 = vmand %vm394_vm4, %vm3958_vm8  ;;  %vm620_vm8 = vcmp.lt.s32.totalorder %v1824_v17, 32  ;;  %v663_v52 = vstv %s2348_s28  ;;  %s2720_s28 = sld [smem:[#allocation2 + $0x16]] }
 0x2f7   :  { %v2164_v11 = vsel %vm482_vm12, %v479_v58, %v481_v4  ;;  %v2168_v12 = vsel %vm482_vm12, %v481_v4, %v479_v58  ;;  %vm520_vm12 = vcmp.lt.s32.totalorder %v1824_v17, 46  ;;  %v474_v58 = vmul.f32 %v472_v20, %v2114_v54 }
 0x2f8   :  { %v517_v19 = vpop.permute.xlu0 %516  ;;  %1069 = vrot.lane.b32.xlu1 %v1903_v3, %s1756_s18  ;;  %v587_v54 = vsel %vm3870_vm15, %v585_v50, %v586_v51  ;;  %v492_v21 = vmul.f32 %v490_v55, %v2168_v12  ;;  %v643_v51 = vstv %s2307_s26  ;;  %v644_v55 = vstv %s2309_s1  ;;  %s1766_s18 = smov 81   ;;  %s2679_s26 = sld [smem:[#allocation2 + $0x15]] }
 0x2f9   :  { %v590_v26 = vsel %vm2288_vm6, %v587_v54, 0.0  ;;  %v591_v28 = vsel %vm2301_vm3, %v587_v54, 0.0  ;;  %vm600_vm6 = vcmp.lt.s32.totalorder %v1824_v17, 33  ;;  %vm3966_vm3 = vcmp.lt.s32.totalorder %v1968_v5, 15  ;;  %s2681_s1 = sld [smem:[#allocation2 + $0x46]] }
 0x2fa   :  { %1087 = vrot.lane.b32.xlu0 %v1897_v62, %s1757_s0  ;;  %v519_v25 = vpop.permute.xlu1 %518 }
 0x2fb   :  { %v521_v32 = vsel %vm520_vm12, %v517_v19, %v519_v25  ;;  %v522_v33 = vsel %vm520_vm12, %v519_v25, %v517_v19  ;;  %vm2243_vm12 = vmand %vm393_vm10, %vm3865_vm7 }
 0x2fc   :  { %v532_v36 = vmul.f32 %v530_v22, %v522_v33  ;;  %v533_v37 = vmul.f32 %v531_v23, %v521_v32  ;;  %v537_v38 = vpop.permute.xlu0 %536  ;;  %1089 = vrot.lane.b32.xlu1 %v1903_v3, %s1757_s0  ;;  %v570_v4 = vsel %vm2243_vm12, %v567_v42, 0.0  ;;  %v493_v22 = vmul.f32 %v491_v2, %v2164_v11  ;;  %s1767_s0 = smov 80  }
 0x2fd   :  { %vm3961_vm12 = vcmp.ge.s32.totalorder %v1968_v5, 1 }
 0x2fe   :  { %v2247_v46 = vadd.f32 %v532_v36, %v454_v34  ;;  %v2249_v47 = vadd.f32 %v533_v37, %v455_v35  ;;  %1107 = vrot.lane.b32.xlu0 %v1897_v62, %s1758_s22  ;;  %v539_v48 = vpop.permute.xlu1 %538  ;;  %vm2329_vm2 = vmand %vm393_vm10, %vm3961_vm12  ;;  %v625_v34 = vstv %s2262_s23  ;;  %v626_v35 = vstv %s2264_s24  ;;  %s2642_s23 = sld [smem:[#allocation2 + $0x14]]  ;;  %s2644_s24 = sld [smem:[#allocation2 + $0x45]] }
 0x2ff   :  { %v541_v56 = vsel %vm540_vm14, %v537_v38, %v539_v48  ;;  %v542_v57 = vsel %vm540_vm14, %v539_v48, %v537_v38  ;;  %vm580_vm14 = vcmp.lt.s32.totalorder %v1824_v17, 34  ;;  %v627_v43 = vsel %vm3870_vm15, %v625_v34, %v626_v35 }
 0x300   :  { %v552_v60 = vmul.f32 %v550_v44, %v542_v57  ;;  %v553_v61 = vmul.f32 %v551_v45, %v541_v56  ;;  %v557_v63 = vpop.permute.xlu0 %556  ;;  %1109 = vrot.lane.b32.xlu1 %v1903_v3, %s1758_s22  ;;  %v610_v45 = vsel %vm2329_vm2, %v607_v29, 0.0  ;;  %vm3969_vm12 = vcmp.lt.s32.totalorder %v1973_v7, 15  ;;  %s1768_s22 = smov 79  }
 0x301   :  { %vm2404_vm2 = vmand %vm394_vm4, %vm3969_vm12  ;;  %vm658_vm12 = vcmp.lt.s32.totalorder %v1824_v17, 30 }
 0x302   :  { %v2292_v10 = vadd.f32 %v552_v60, %v474_v58  ;;  %v2294_v1 = vadd.f32 %v553_v61, %v475_v59  ;;  %1127 = vrot.lane.b32.xlu0 %v1897_v62, %s1759_s25  ;;  %v559_v13 = vpop.permute.xlu1 %558  ;;  %v629_v60 = vsel %vm394_vm4, %v627_v43, 0.0  ;;  %v645_v61 = vsel %vm3870_vm15, %v643_v51, %v644_v55 }
 0x303   :  { %v561_v19 = vsel %vm560_vm0, %v557_v63, %v559_v13  ;;  %v562_v20 = vsel %vm560_vm0, %v559_v13, %v557_v63  ;;  %vm2342_vm0 = vmand %vm394_vm4, %vm3863_vm13  ;;  %v664_v13 = vstv %s2350_s29  ;;  %v723_v63 = vstv %s2451_s10  ;;  %s2722_s29 = sld [smem:[#allocation2 + $0x47]]  ;;  %s2815_s10 = sld [smem:[#allocation2 + $0x4c]] }
 0x304   :  { %v572_v23 = vmul.f32 %v570_v4, %v562_v20  ;;  %v573_v24 = vmul.f32 %v571_v9, %v561_v19  ;;  %v577_v25 = vpop.permute.xlu0 %576  ;;  %1129 = vrot.lane.b32.xlu1 %v1903_v3, %s1759_s25  ;;  %v611_v42 = vsel %vm2342_vm0, %v607_v29, 0.0  ;;  %vm638_vm0 = vcmp.lt.s32.totalorder %v1824_v17, 31  ;;  %s1769_s25 = smov 78  }
 0x305   :  { %v649_v20 = vsel %vm2404_vm2, %v645_v61, 0.0  ;;  %v684_v29 = vstv %s2375_s5  ;;  %vm2471_vm2 = vmand %vm393_vm10, %vm3862_vm1  ;;  %s2779_s5 = sld [smem:[#allocation2 + $0x19]] }
 0x306   :  { %v2333_v12 = vadd.f32 %v572_v23, %v492_v21  ;;  %v2335_v30 = vadd.f32 %v573_v24, %v493_v22  ;;  %1147 = vrot.lane.b32.xlu0 %v1897_v62, %s1760_s27  ;;  %v579_v32 = vpop.permute.xlu1 %578  ;;  %v665_v21 = vsel %vm3870_vm15, %v663_v52, %v664_v13  ;;  %v743_v22 = vstv %s2493_s13  ;;  %s2832_s13 = sld [smem:[#allocation2 + $0x1c]] }
 0x307   :  { %v581_v36 = vsel %vm580_vm14, %v577_v25, %v579_v32  ;;  %v582_v37 = vsel %vm580_vm14, %v579_v32, %v577_v25  ;;  %vm2389_vm14 = vmand %vm393_vm10, %vm3966_vm3  ;;  %vm3975_vm3 = vcmp.lt.s32.totalorder %v1973_v7, 14 }
 0x308   :  { %v592_v38 = vmul.f32 %v590_v26, %v582_v37  ;;  %v593_v41 = vmul.f32 %v591_v28, %v581_v36  ;;  %v597_v44 = vpop.permute.xlu0 %596  ;;  %1149 = vrot.lane.b32.xlu1 %v1903_v3, %s1760_s27  ;;  %v648_v19 = vsel %vm2389_vm14, %v645_v61, 0.0  ;;  %vm2445_vm14 = vmand %vm394_vm4, %vm3975_vm3  ;;  %v683_v28 = vstv %s2373_s4  ;;  %s1770_s27 = smov 77   ;;  %s2762_s4 = sld [smem:[#allocation2 + $0x48]] }
 0x309   :  { %v669_v35 = vsel %vm2445_vm14, %v665_v21, 0.0  ;;  %v685_v36 = vsel %vm3870_vm15, %v683_v28, %v684_v29  ;;  %vm698_vm14 = vcmp.lt.s32.totalorder %v1824_v17, 19  ;;  %v763_v37 = vstv %s2535_s16  ;;  %s2849_s16 = sld [smem:[#allocation2 + $0x4e]] }
 0x30a   :  { %v2365_v48 = vadd.f32 %v592_v38, %v2057_v39  ;;  %v2368_v49 = vadd.f32 %v593_v41, %v2059_v40  ;;  %1165 = vrot.lane.b32.xlu0 %v1897_v62, %s1761_s30  ;;  %v599_v50 = vpop.permute.xlu1 %598  ;;  %v628_v40 = vsel %vm393_vm10, %v627_v43, 0.0  ;;  %v704_v43 = vstv %s2412_s8  ;;  %s2800_s8 = sld [smem:[#allocation2 + $0x4b]] }
 0x30b   :  { %v601_v56 = vsel %vm600_vm6, %v597_v44, %v599_v50  ;;  %v602_v57 = vsel %vm600_vm6, %v599_v50, %v597_v44  ;;  %vm3972_vm6 = vcmp.lt.s32.totalorder %v1968_v5, 14 }
 0x30c   :  { %v612_v58 = vmul.f32 %v610_v45, %v602_v57  ;;  %v613_v39 = vmul.f32 %v611_v42, %v601_v56  ;;  %v617_v59 = vpop.permute.xlu0 %616  ;;  %1167 = vrot.lane.b32.xlu1 %v1903_v3, %s1761_s30  ;;  %v703_v42 = vstv %s2410_s7  ;;  %v688_v56 = vsel %vm2471_vm2, %v685_v36, 0.0  ;;  %s2760_s30 = sld [smem:[#allocation2 + $0x17]]  ;;  %s2798_s7 = sld [smem:[#allocation2 + $0x1a]] }
 0x30d   :  { %vm3988_vm2 = vcmp.ge.s32.totalorder %v1973_v7, 2 }
 0x30e   :  { %v2394_v2 = vadd.f32 %v612_v58, %v2247_v46  ;;  %v2397_v4 = vadd.f32 %v613_v39, %v2249_v47  ;;  %1185 = vrot.lane.b32.xlu0 %v1897_v62, %s1762_s6  ;;  %v619_v9 = vpop.permute.xlu1 %618  ;;  %v705_v58 = vsel %vm3870_vm15, %v703_v42, %v704_v43 }
 0x30f   :  { %v621_v46 = vsel %vm620_vm8, %v617_v59, %v619_v9  ;;  %v622_v47 = vsel %vm620_vm8, %v619_v9, %v617_v59  ;;  %vm2430_vm8 = vmand %vm393_vm10, %vm3972_vm6  ;;  %vm396_vm6 = vcmp.ge.s32.totalorder %v1975_v8, 1  ;;  %v724_v9 = vstv %s2453_s11  ;;  %s2818_s11 = sld [smem:[#allocation2 + $0x18]] }
 0x310   :  { %v630_v14 = vmul.f32 %v628_v40, %v622_v47  ;;  %v631_v15 = vmul.f32 %v629_v60, %v621_v46  ;;  %v635_v16 = vpop.permute.xlu0 %634  ;;  %1187 = vrot.lane.b32.xlu1 %v1903_v3, %s1762_s6  ;;  %v668_v34 = vsel %vm2430_vm8, %v665_v21, 0.0  ;;  %vm2487_vm10 = vmand %vm394_vm4, %vm3864_vm11  ;;  %vm678_vm4 = vcmp.lt.s32.totalorder %v1824_v17, 29  ;;  %s2781_s6 = sld [smem:[#allocation2 + $0x4a]] }
 0x311   :  { %v689_v57 = vsel %vm2487_vm10, %v685_v36, 0.0  ;;  %vm2529_vm3 = vmand %vm396_vm6, %vm3866_vm9 }
 0x312   :  { %v2435_v23 = vadd.f32 %v630_v14, %v2292_v10  ;;  %v2438_v24 = vadd.f32 %v631_v15, %v2294_v1  ;;  %1205 = vrot.lane.b32.xlu0 %v1897_v62, %s1763_s9  ;;  %v637_v25 = vpop.permute.xlu1 %636  ;;  %v709_v47 = vsel %vm2529_vm3, %v705_v58, 0.0  ;;  %v725_v14 = vsel %vm3870_vm15, %v723_v63, %v724_v9  ;;  %vm2570_vm10 = vmand %vm396_vm6, %vm3988_vm2 }
 0x313   :  { %v639_v10 = vsel %vm638_vm0, %v635_v16, %v637_v25  ;;  %v640_v1 = vsel %vm638_vm0, %v637_v25, %v635_v16  ;;  %vm395_vm0 = vcmp.ge.s32.totalorder %v1971_v6, 1  ;;  %v744_v25 = vstv %s2495_s14  ;;  %s2834_s14 = sld [smem:[#allocation2 + $0x4d]] }
 0x314   :  { %v650_v11 = vmul.f32 %v648_v19, %v640_v1  ;;  %v651_v32 = vmul.f32 %v649_v20, %v639_v10  ;;  %v655_v33 = vpop.permute.xlu0 %654  ;;  %1207 = vrot.lane.b32.xlu1 %v1903_v3, %s1763_s9  ;;  %vm2514_vm8 = vmand %vm395_vm0, %vm3865_vm7  ;;  %v729_v1 = vsel %vm2570_vm10, %v725_v14, 0.0  ;;  %vm758_vm2 = vcmp.lt.s32.totalorder %v1824_v17, 16  ;;  %s2813_s9 = sld [smem:[#allocation2 + $0x1b]] }
 0x315   :  { %v708_v46 = vsel %vm2514_vm8, %v705_v58, 0.0  ;;  %vm3991_vm8 = vcmp.ge.s32.totalorder %v1968_v5, 1  ;;  %v782_v58 = vstv %s2578_s19  ;;  %vm3996_vm10 = vcmp.lt.s32.totalorder %v1968_v5, 15  ;;  %s2986_s19 = sld [smem:[#allocation2 + $0x50]] }
 0x316   :  { %v2477_v38 = vadd.f32 %v650_v11, %v2333_v12  ;;  %v2480_v41 = vadd.f32 %v651_v32, %v2335_v30  ;;  %1225 = vrot.lane.b32.xlu0 %v1897_v62, %s1764_s12  ;;  %v657_v44 = vpop.permute.xlu1 %656  ;;  %v745_v11 = vsel %vm3870_vm15, %v743_v22, %v744_v25  ;;  %vm2596_vm3 = vmand %vm395_vm0, %vm3991_vm8  ;;  %vm3999_vm8 = vcmp.lt.s32.totalorder %v1973_v7, 15 }
 0x317   :  { %v659_v12 = vsel %vm658_vm12, %v655_v33, %v657_v44  ;;  %v660_v30 = vsel %vm658_vm12, %v657_v44, %v655_v33  ;;  %vm2555_vm12 = vmand %vm395_vm0, %vm3868_vm5  ;;  %v764_v44 = vstv %s2537_s17  ;;  %s2868_s17 = sld [smem:[#allocation2 + $0x1e]] }
 0x318   :  { %v670_v50 = vmul.f32 %v668_v34, %v660_v30  ;;  %v671_v51 = vmul.f32 %v669_v35, %v659_v12  ;;  %v675_v55 = vpop.permute.xlu0 %674  ;;  %1227 = vrot.lane.b32.xlu1 %v1903_v3, %s1764_s12  ;;  %v728_v10 = vsel %vm2555_vm12, %v725_v14, 0.0  ;;  %vm738_vm12 = vcmp.lt.s32.totalorder %v1824_v17, 17  ;;  %s2826_s12 = sld [smem:[#allocation2 + $0x49]] }
 0x319   :  { %v748_v12 = vsel %vm2596_vm3, %v745_v11, 0.0  ;;  %vm2673_vm3 = vmand %vm396_vm6, %vm3999_vm8  ;;  %v802_v14 = vstv %s2619_s21  ;;  %vm796_vm8 = vcmp.lt.s32.totalorder %v1824_v17, 14  ;;  %s2994_s21 = sld [smem:[#allocation2 + $0x21]] }
 0x31a   :  { %v2519_v59 = vadd.f32 %v670_v50, %v2365_v48  ;;  %v2522_v40 = vadd.f32 %v671_v51, %v2368_v49  ;;  %1245 = vrot.lane.b32.xlu0 %v1897_v62, %s1765_s15  ;;  %v677_v60 = vpop.permute.xlu1 %676  ;;  %v765_v50 = vsel %vm3870_vm15, %v763_v37, %v764_v44 }
 0x31b   :  { %v679_v48 = vsel %vm678_vm4, %v675_v55, %v677_v60  ;;  %v680_v49 = vsel %vm678_vm4, %v677_v60, %v675_v55  ;;  %vm718_vm4 = vcmp.lt.s32.totalorder %v1824_v17, 18  ;;  %v767_v9 = vsel %vm396_vm6, %v765_v50, 0.0 }
 0x31c   :  { %v690_v54 = vmul.f32 %v688_v56, %v680_v49  ;;  %v691_v52 = vmul.f32 %v689_v57, %v679_v48  ;;  %v695_v13 = vpop.permute.xlu0 %694  ;;  %1247 = vrot.lane.b32.xlu1 %v1903_v3, %s1765_s15  ;;  %v781_v57 = vstv %s2576_s2  ;;  %s2847_s15 = sld [smem:[#allocation2 + $0x1d]]  ;;  %s2984_s2 = sld [smem:[#allocation2 + $0x1f]] }
 0x31d   :  { %v783_v48 = vsel %vm3870_vm15, %v781_v57, %v782_v58 }
 0x31e   :  { %v2560_v16 = vadd.f32 %v690_v54, %v2394_v2  ;;  %v2563_v19 = vadd.f32 %v691_v52, %v2397_v4  ;;  %1265 = vrot.lane.b32.xlu0 %v1897_v62, %s1766_s18  ;;  %v697_v20 = vpop.permute.xlu1 %696  ;;  %v787_v25 = vsel %vm2673_vm3, %v783_v48, 0.0  ;;  %vm2740_vm3 = vmand %vm395_vm0, %vm3862_vm1 }
 0x31f   :  { %v699_v2 = vsel %vm698_vm14, %v695_v13, %v697_v20  ;;  %v700_v4 = vsel %vm698_vm14, %v697_v20, %v695_v13  ;;  %vm2611_vm14 = vmand %vm396_vm6, %vm3863_vm13 }
 0x320   :  { %v710_v26 = vmul.f32 %v708_v46, %v700_v4  ;;  %v711_v28 = vmul.f32 %v709_v47, %v699_v2  ;;  %v715_v29 = vpop.permute.xlu0 %714  ;;  %1267 = vrot.lane.b32.xlu1 %v1903_v3, %s1766_s18  ;;  %v749_v30 = vsel %vm2611_vm14, %v745_v11, 0.0  ;;  %v801_v47 = vstv %s2617_s20  ;;  %s2870_s18 = sld [smem:[#allocation2 + $0x4f]]  ;;  %s2992_s20 = sld [smem:[#allocation2 + $0x51]] }
 0x321   :  { %vm776_vm14 = vcmp.lt.s32.totalorder %v1824_v17, 15  ;;  %v803_v2 = vsel %vm3870_vm15, %v801_v47, %v802_v14  ;;  %v822_v11 = vstv %s2644_s24  ;;  %s3002_s24 = sld [smem:[#allocation2 + $0x53]] }
 0x322   :  { %v2601_v33 = vadd.f32 %v710_v26, %v2435_v23  ;;  %v2604_v34 = vadd.f32 %v711_v28, %v2438_v24  ;;  %1285 = vrot.lane.b32.xlu0 %v1897_v62, %s1767_s0  ;;  %v717_v35 = vpop.permute.xlu1 %716 }
 0x323   :  { %v719_v23 = vsel %vm718_vm4, %v715_v29, %v717_v35  ;;  %v720_v24 = vsel %vm718_vm4, %v717_v35, %v715_v29  ;;  %vm2658_vm4 = vmand %vm395_vm0, %vm3996_vm10  ;;  %vm4005_vm10 = vcmp.lt.s32.totalorder %v1973_v7, 14 }
 0x324   :  { %v730_v45 = vmul.f32 %v728_v10, %v720_v24  ;;  %v731_v42 = vmul.f32 %v729_v1, %v719_v23  ;;  %v735_v43 = vpop.permute.xlu0 %734  ;;  %1287 = vrot.lane.b32.xlu1 %v1903_v3, %s1767_s0  ;;  %v786_v22 = vsel %vm2658_vm4, %v783_v48, 0.0  ;;  %vm2714_vm4 = vmand %vm396_vm6, %vm4005_vm10  ;;  %v821_v1 = vstv %s2642_s23  ;;  %s2990_s0 = sld [smem:[#allocation2 + $0x20]]  ;;  %s3000_s23 = sld [smem:[#allocation2 + $0x22]] }
 0x325   :  { %v807_v44 = vsel %vm2714_vm4, %v803_v2, 0.0  ;;  %v823_v23 = vsel %vm3870_vm15, %v821_v1, %v822_v11  ;;  %v860_v48 = vstv %s2722_s29  ;;  %vm872_vm10 = vcmp.lt.s32.totalorder %v1824_v17, 1  ;;  %s3064_s29 = sld [smem:[#allocation2 + $0x56]] }
 0x326   :  { %v2634_v51 = vadd.f32 %v730_v45, %v2477_v38  ;;  %v2637_v55 = vadd.f32 %v731_v42, %v2480_v41  ;;  %1303 = vrot.lane.b32.xlu0 %v1897_v62, %s1768_s22  ;;  %v737_v56 = vpop.permute.xlu1 %736  ;;  %v766_v41 = vsel %vm395_vm0, %v765_v50, 0.0  ;;  %v842_v50 = vstv %s2681_s1  ;;  %s3045_s1 = sld [smem:[#allocation2 + $0x24]] }
 0x327   :  { %v739_v39 = vsel %vm738_vm12, %v735_v43, %v737_v56  ;;  %v740_v60 = vsel %vm738_vm12, %v737_v56, %v735_v43  ;;  %vm4002_vm12 = vcmp.lt.s32.totalorder %v1968_v5, 14  ;;  %vm4013_vm4 = vcmp.ge.s32.totalorder %v1968_v5, 1 }
 0x328   :  { %v750_v61 = vmul.f32 %v748_v12, %v740_v60  ;;  %v751_v38 = vmul.f32 %v749_v30, %v739_v39  ;;  %v755_v63 = vpop.permute.xlu0 %754  ;;  %1305 = vrot.lane.b32.xlu1 %v1903_v3, %s1768_s22  ;;  %v841_v30 = vstv %s2679_s26  ;;  %v826_v39 = vsel %vm2740_vm3, %v823_v23, 0.0  ;;  %s2996_s22 = sld [smem:[#allocation2 + $0x52]]  ;;  %s3016_s26 = sld [smem:[#allocation2 + $0x54]] }
 0x329   :  { %vm4014_vm3 = vcmp.lt.s32.totalorder %v1968_v5, 15 }
 0x32a   :  { %v2663_v54 = vadd.f32 %v750_v61, %v2519_v59  ;;  %v2666_v52 = vadd.f32 %v751_v38, %v2522_v40  ;;  %1323 = vrot.lane.b32.xlu0 %v1897_v62, %s1769_s25  ;;  %v757_v13 = vpop.permute.xlu1 %756  ;;  %v843_v61 = vsel %vm3870_vm15, %v841_v30, %v842_v50 }
 0x32b   :  { %v759_v59 = vsel %vm758_vm2, %v755_v63, %v757_v13  ;;  %v760_v40 = vsel %vm758_vm2, %v757_v13, %v755_v63  ;;  %vm2699_vm2 = vmand %vm395_vm0, %vm4002_vm12  ;;  %vm816_vm0 = vcmp.lt.s32.totalorder %v1824_v17, 13  ;;  %vm854_vm12 = vcmp.lt.s32.totalorder %v1824_v17, 2 }
 0x32c   :  { %v768_v15 = vmul.f32 %v766_v41, %v760_v40  ;;  %v769_v20 = vmul.f32 %v767_v9, %v759_v59  ;;  %v773_v21 = vpop.permute.xlu0 %772  ;;  %1325 = vrot.lane.b32.xlu1 %v1903_v3, %s1769_s25  ;;  %v806_v37 = vsel %vm2699_vm2, %v803_v2, 0.0  ;;  %v859_v9 = vstv %s2720_s28  ;;  %s3014_s25 = sld [smem:[#allocation2 + $0x23]]  ;;  %s3062_s28 = sld [smem:[#allocation2 + $0x25]] }
 0x32d   :  { %v861_v59 = vsel %vm3870_vm15, %v859_v9, %v860_v48  ;;  %vm4012_vm2 = vcmp.ge.s32.totalorder %v1973_v7, 2 }
 0x32e   :  { %v2704_v26 = vadd.f32 %v768_v15, %v2560_v16  ;;  %v2707_v28 = vadd.f32 %v769_v20, %v2563_v19  ;;  %1343 = vrot.lane.b32.xlu0 %v1897_v62, %s1770_s27  ;;  %v775_v29 = vpop.permute.xlu1 %774 }
 0x32f   :  { %v777_v16 = vsel %vm776_vm14, %v773_v21, %v775_v29  ;;  %v778_v19 = vsel %vm776_vm14, %v775_v29, %v773_v21  ;;  %vm2754_vm14 = vmand %vm396_vm6, %vm3864_vm11  ;;  %vm836_vm6 = vcmp.lt.s32.totalorder %v1824_v17, 3  ;;  %v877_v21 = vstv %s2760_s30  ;;  %s3076_s30 = sld [smem:[#allocation2 + $0x26]] }
 0x330   :  { %v788_v32 = vmul.f32 %v786_v22, %v778_v19  ;;  %v789_v35 = vmul.f32 %v787_v25, %v777_v16  ;;  %v793_v36 = vpop.permute.xlu0 %792  ;;  %1345 = vrot.lane.b32.xlu1 %v1903_v3, %s1770_s27  ;;  %v827_v60 = vsel %vm2754_vm14, %v823_v23, 0.0  ;;  %v878_v22 = vstv %s2762_s4  ;;  %s3047_s27 = sld [smem:[#allocation2 + $0x55]]  ;;  %s3078_s4 = sld [smem:[#allocation2 + $0x57]] }
 0x331   :  { %v879_v1 = vsel %vm3870_vm15, %v877_v21, %v878_v22  ;;  %vm4015_vm14 = vcmp.lt.s32.totalorder %v1973_v7, 15  ;;  %v889_v21 = vstv %s2826_s12  ;;  %s3146_s12 = sld [smem:[#allocation2 + $0x5b]] }
 0x332   :  { %v2745_v45 = vadd.f32 %v788_v32, %v2601_v33  ;;  %v2748_v42 = vadd.f32 %v789_v35, %v2604_v34  ;;  %v795_v43 = vpop.permute.xlu1 %794  ;;  %v904_v32 = vstv %s2779_s5  ;;  %v905_v35 = vstv %s2781_s6  ;;  %s3092_s5 = sld [smem:[#allocation2 + $0x27]]  ;;  %s3094_s6 = sld [smem:[#allocation2 + $0x58]] }
 0x333   :  { %v797_v33 = vsel %vm796_vm8, %v793_v36, %v795_v43  ;;  %v798_v34 = vsel %vm796_vm8, %v795_v43, %v793_v36  ;;  %v906_v43 = vsel %vm3870_vm15, %v904_v32, %v905_v35  ;;  %vm899_vm8 = vcmp.lt.s32.totalorder %v1824_v17, 127 }
 0x334   :  { %v808_v56 = vmul.f32 %v806_v37, %v798_v34  ;;  %v809_v57 = vmul.f32 %v807_v44, %v797_v33  ;;  %v813_v58 = vpop.permute.xlu0 %812  ;;  %v922_v33 = vstv %s2798_s7  ;;  %v923_v34 = vstv %s2800_s8  ;;  %s3108_s7 = sld [smem:[#allocation2 + $0x28]]  ;;  %s3110_s8 = sld [smem:[#allocation2 + $0x59]] }
 0x336   :  { %v2772_v38 = vadd.f32 %v808_v56, %v2634_v51  ;;  %v2775_v63 = vadd.f32 %v809_v57, %v2637_v55  ;;  %v815_v41 = vpop.permute.xlu1 %814  ;;  %v844_v51 = vsel %vm3865_vm7, %v843_v61, 0.0  ;;  %v845_v55 = vsel %vm3866_vm9, %v843_v61, 0.0 }
 0x337   :  { %v817_v49 = vsel %vm816_vm0, %v813_v58, %v815_v41  ;;  %v818_v13 = vsel %vm816_vm0, %v815_v41, %v813_v58  ;;  %v924_v61 = vsel %vm3870_vm15, %v922_v33, %v923_v34  ;;  %vm917_vm0 = vcmp.lt.s32.totalorder %v1824_v17, 126 }
 0x338   :  { %v828_v46 = vmul.f32 %v826_v39, %v818_v13  ;;  %v829_v47 = vmul.f32 %v827_v60, %v817_v49  ;;  %v833_v14 = vpop.permute.xlu0 %832  ;;  %v940_v49 = vstv %s2813_s9  ;;  %v941_v13 = vstv %s2815_s10  ;;  %s3128_s9 = sld [smem:[#allocation2 + $0x29]]  ;;  %s3130_s10 = sld [smem:[#allocation2 + $0x5a]] }
 0x33a   :  { %v2791_v40 = vadd.f32 %v828_v46, %v2663_v54  ;;  %v2794_v15 = vadd.f32 %v829_v47, %v2666_v52  ;;  %v835_v20 = vpop.permute.xlu1 %834  ;;  %v862_v54 = vsel %vm3868_vm5, %v861_v59, 0.0  ;;  %v863_v52 = vsel %vm4012_vm2, %v861_v59, 0.0 }
 0x33b   :  { %v837_v25 = vsel %vm836_vm6, %v833_v14, %v835_v20  ;;  %v838_v2 = vsel %vm836_vm6, %v835_v20, %v833_v14  ;;  %vm4016_vm6 = vcmp.lt.s32.totalorder %v1968_v5, 14  ;;  %v942_v20 = vsel %vm3870_vm15, %v940_v49, %v941_v13 }
 0x33c   :  { %v846_v4 = vmul.f32 %v844_v51, %v838_v2  ;;  %v847_v29 = vmul.f32 %v845_v55, %v837_v25  ;;  %v851_v10 = vpop.permute.xlu0 %850  ;;  %vm397_vm2 = vcmp.lt.s32.totalorder %v1971_v6, 15  ;;  %v999_v49 = vstv %s2870_s18  ;;  %s3263_s18 = sld [smem:[#allocation2 + $0x5e]] }
 0x33d   :  { %v1194_v53 = vstv %s3108_s7  ;;  %v1195_v27 = vstv %s3110_s8 }
 0x33e   :  { %v848_v11 = vadd.f32 %v846_v4, %v2704_v26  ;;  %v849_v16 = vadd.f32 %v847_v29, %v2707_v28  ;;  %v853_v19 = vpop.permute.xlu1 %852  ;;  %v880_v26 = vsel %vm4013_vm4, %v879_v1, 0.0  ;;  %v881_v28 = vsel %vm3863_vm13, %v879_v1, 0.0 }
 0x33f   :  { %v855_v36 = vsel %vm854_vm12, %v851_v10, %v853_v19  ;;  %v856_v37 = vsel %vm854_vm12, %v853_v19, %v851_v10  ;;  %vm4017_vm12 = vcmp.lt.s32.totalorder %v1973_v7, 14  ;;  %v958_v10 = vstv %s2832_s13  ;;  %s3203_s13 = sld [smem:[#allocation2 + $0x2b]] }
 0x340   :  { %v864_v44 = vmul.f32 %v862_v54, %v856_v37  ;;  %v865_v23 = vmul.f32 %v863_v52, %v855_v36  ;;  %v869_v24 = vpop.permute.xlu0 %868  ;;  %v926_v59 = vsel %vm4017_vm12, %v924_v61, 0.0  ;;  %v959_v54 = vstv %s2834_s14  ;;  %s3205_s14 = sld [smem:[#allocation2 + $0x5c]] }
 0x341   :  { %vm935_vm4 = vcmp.lt.s32.totalorder %v1824_v17, 125  ;;  %v944_v19 = vsel %vm3864_vm11, %v942_v20, 0.0  ;;  %vm4024_vm12 = vcmp.ge.s32.totalorder %v1973_v7, 2 }
 0x342   :  { %v866_v12 = vadd.f32 %v864_v44, %v2745_v45  ;;  %v867_v30 = vadd.f32 %v865_v23, %v2748_v42  ;;  %v871_v50 = vpop.permute.xlu1 %870  ;;  %v907_v45 = vsel %vm4014_vm3, %v906_v43, 0.0  ;;  %v908_v42 = vsel %vm4015_vm14, %v906_v43, 0.0 }
 0x343   :  { %v873_v56 = vsel %vm872_vm10, %v869_v24, %v871_v50  ;;  %v874_v57 = vsel %vm872_vm10, %v871_v50, %v869_v24  ;;  %vm3867_vm10 = vcmp.lt.s32.totalorder %v1975_v8, 15  ;;  %v960_v23 = vsel %vm3870_vm15, %v958_v10, %v959_v54 }
 0x344   :  { %v882_v58 = vmul.f32 %v880_v26, %v874_v57  ;;  %v883_v39 = vmul.f32 %v881_v28, %v873_v56  ;;  %v896_v60 = vpop.permute.xlu0 %895  ;;  %vm2893_vm3 = vmand %vm3867_vm10, %vm3866_vm9  ;;  %v978_v43 = vstv %s2847_s15  ;;  %vm953_vm14 = vcmp.lt.s32.totalorder %v1824_v17, 115  ;;  %s3244_s15 = sld [smem:[#allocation2 + $0x2c]] }
 0x345   :  { %v964_v57 = vsel %vm2893_vm3, %v960_v23, 0.0 }
 0x346   :  { %v884_v41 = vadd.f32 %v882_v58, %v2772_v38  ;;  %v885_v9 = vadd.f32 %v883_v39, %v2775_v63  ;;  %v898_v48 = vpop.permute.xlu1 %897  ;;  %v888_v38 = vstv %s2818_s11  ;;  %v925_v63 = vsel %vm4016_vm6, %v924_v61, 0.0  ;;  %s3144_s11 = sld [smem:[#allocation2 + $0x2a]] }
 0x347   :  { %v900_v46 = vsel %vm899_vm8, %v896_v60, %v898_v48  ;;  %v901_v47 = vsel %vm899_vm8, %v898_v48, %v896_v60  ;;  %vm2881_vm8 = vmand %vm397_vm2, %vm3865_vm7  ;;  %v890_v44 = vsel %vm3870_vm15, %v888_v38, %v889_v21  ;;  %vm973_vm6 = vcmp.lt.s32.totalorder %v1824_v17, 114 }
 0x348   :  { %v909_v14 = vmul.f32 %v907_v45, %v900_v46  ;;  %v910_v51 = vmul.f32 %v908_v42, %v901_v47  ;;  %v914_v55 = vpop.permute.xlu0 %913  ;;  %v891_v34 = vmul.f32 %v890_v44, %v1897_v62  ;;  %v963_v56 = vsel %vm2881_vm8, %v960_v23, 0.0 }
 0x349   :  { %v892_v58 = vmul.f32 %v890_v44, %v1903_v3  ;;  %vm4027_vm8 = vcmp.ge.s32.totalorder %v1968_v5, 1  ;;  %v4046_v39 = vmov 0  ;;  %v1037_v3 = vstv %s2992_s20  ;;  %s3301_s20 = sld [smem:[#allocation2 + $0x60]] }
 0x34a   :  { %v2860_v22 = vadd.f32 %v909_v14, %v848_v11  ;;  %v2862_v25 = vadd.f32 %v910_v51, %v849_v16  ;;  %v916_v2 = vpop.permute.xlu1 %915  ;;  %v943_v16 = vsel %vm3862_vm1, %v942_v20, 0.0  ;;  %vm2941_vm3 = vmand %vm397_vm2, %vm4027_vm8  ;;  %v1097_v38 = vstv %s3016_s26  ;;  %s1504_s26 = sld [smem:[#allocation2 + $0x63]] }
 0x34b   :  { %v918_v4 = vsel %vm917_vm0, %v914_v55, %v916_v2  ;;  %v919_v29 = vsel %vm917_vm0, %v916_v2, %v914_v55  ;;  %vm2910_vm0 = vmand %vm397_vm2, %vm3868_vm5  ;;  %v894_v13 = vadd.f32 %v892_v58, %v2794_v15  ;;  %v1019_v58 = vstv %s2986_s19  ;;  %s3284_s19 = sld [smem:[#allocation2 + $0x5f]] }
 0x34c   :  { %v927_v52 = vmul.f32 %v925_v63, %v918_v4  ;;  %v928_v1 = vmul.f32 %v926_v59, %v919_v29  ;;  %v932_v11 = vpop.permute.xlu0 %931 }
 0x34e   :  { %v929_v35 = vadd.f32 %v927_v52, %v866_v12  ;;  %v930_v36 = vadd.f32 %v928_v1, %v867_v30  ;;  %v934_v37 = vpop.permute.xlu1 %933  ;;  %v979_v12 = vstv %s2849_s16  ;;  %s3246_s16 = sld [smem:[#allocation2 + $0x5d]] }
 0x34f   :  { %v936_v26 = vsel %vm935_vm4, %v932_v11, %v934_v37  ;;  %v937_v28 = vsel %vm935_vm4, %v934_v37, %v932_v11  ;;  %v980_v42 = vsel %vm3870_vm15, %v978_v43, %v979_v12  ;;  %vm2925_vm4 = vmand %vm3867_vm10, %vm4024_vm12 }
 0x350   :  { %v945_v30 = vmul.f32 %v943_v16, %v936_v26  ;;  %v946_v50 = vmul.f32 %v944_v19, %v937_v28  ;;  %v950_v33 = vpop.permute.xlu0 %949  ;;  %v983_v51 = vsel %vm2910_vm0, %v980_v42, 0.0  ;;  %v984_v55 = vsel %vm2925_vm4, %v980_v42, 0.0 }
 0x351   :  { %vm993_vm0 = vcmp.lt.s32.totalorder %v1824_v17, 113  ;;  %vm4037_vm4 = vcmp.lt.s32.totalorder %v1973_v7, 15  ;;  %v1036_v42 = vstv %s2990_s0  ;;  %s3299_s0 = sld [smem:[#allocation2 + $0x2f]] }
 0x352   :  { %v2914_v60 = vadd.f32 %v945_v30, %v884_v41  ;;  %v2916_v45 = vadd.f32 %v946_v50, %v885_v9  ;;  %v952_v62 = vpop.permute.xlu1 %951  ;;  %v998_v41 = vstv %s2868_s17  ;;  %v893_v9 = vadd.f32 %v891_v34, %v2791_v40  ;;  %vm3022_vm8 = vmand %vm3867_vm10, %vm4037_vm4  ;;  %s3261_s17 = sld [smem:[#allocation2 + $0x2d]] }
 0x353   :  { %v954_v61 = vsel %vm953_vm14, %v950_v33, %v952_v62  ;;  %v955_v48 = vsel %vm953_vm14, %v952_v62, %v950_v33  ;;  %v1000_v59 = vsel %vm3870_vm15, %v998_v41, %v999_v49  ;;  %vm1002_vm14 = vmand %vm3867_vm10, %vm3863_vm13  ;;  %v4038_v50 = vmov 0 }
 0x354   :  { %v965_v46 = vmul.f32 %v963_v56, %v954_v61  ;;  %v966_v47 = vmul.f32 %v964_v57, %v955_v48  ;;  %v970_v14 = vpop.permute.xlu0 %969  ;;  %v1003_v10 = vsel %vm2941_vm3, %v1000_v59, 0.0  ;;  %v1004_v54 = vsel %vm1002_vm14, %v1000_v59, 0.0 }
 0x355   :  { %v4039_v50 = vsel %vm3022_vm8, 4294967295, %v4038_v50  ;;  %vm4040_vm3 = vcmp.lt.s32.totalorder %v1968_v5, 14  ;;  %v4041_v33 = vmov 0  ;;  %v4044_v56 = vmov 0 }
 0x356   :  { %v2945_v40 = vadd.f32 %v965_v46, %v893_v9  ;;  %v2947_v15 = vadd.f32 %v966_v47, %v894_v13  ;;  %v972_v63 = vpop.permute.xlu1 %971  ;;  %vm3030_vm14 = vmand %vm397_vm2, %vm4040_vm3  ;;  %vm3872_vm4 = vcmp.lt.s32.totalorder %v1971_v6, 14  ;;  %v1018_v57 = vstv %s2984_s2  ;;  %s3282_s2 = sld [smem:[#allocation2 + $0x2e]] }
 0x357   :  { %v974_v20 = vsel %vm973_vm6, %v970_v14, %v972_v63  ;;  %v975_v21 = vsel %vm973_vm6, %v972_v63, %v970_v14  ;;  %vm4034_vm6 = vcmp.lt.s32.totalorder %v1968_v5, 15  ;;  %v4042_v33 = vsel %vm3030_vm14, 4294967295, %v4041_v33  ;;  %vm3055_vm3 = vmand %vm397_vm2, %vm3862_vm1 }
 0x358   :  { %v985_v2 = vmul.f32 %v983_v51, %v974_v20  ;;  %v986_v4 = vmul.f32 %v984_v55, %v975_v21  ;;  %v990_v29 = vpop.permute.xlu0 %989  ;;  %vm3008_vm12 = vmand %vm397_vm2, %vm4034_vm6  ;;  %v4047_v39 = vsel %vm3055_vm3, 4294967295, %v4046_v39  ;;  %v4048_v61 = vmov 0 }
 0x359   :  { %vm3072_vm1 = vmand %vm3867_vm10, %vm3864_vm11  ;;  %v1056_v48 = vstv %s2994_s21  ;;  %v1057_v41 = vstv %s2996_s22  ;;  %v4050_v49 = vmov 0  ;;  %v1020_v13 = vsel %vm3870_vm15, %v1018_v57, %v1019_v58  ;;  %s3325_s21 = sld [smem:[#allocation2 + $0x30]]  ;;  %s3327_s22 = sld [smem:[#allocation2 + $0x61]] }
 0x35a   :  { %v2963_v52 = vadd.f32 %v985_v2, %v2860_v22  ;;  %v2966_v1 = vadd.f32 %v986_v4, %v2862_v25  ;;  %v992_v11 = vpop.permute.xlu1 %991  ;;  %v4049_v61 = vsel %vm3072_vm1, 4294967295, %v4048_v61  ;;  %vm3086_vm13 = vmand %vm3872_vm4, %vm3865_vm7  ;;  %v1076_v46 = vstv %s3000_s23  ;;  %s1503_s23 = sld [smem:[#allocation2 + $0x62]] }
 0x35b   :  { %v994_v16 = vsel %vm993_vm0, %v990_v29, %v992_v11  ;;  %v995_v19 = vsel %vm993_vm0, %v992_v11, %v990_v29  ;;  %vm4043_vm0 = vcmp.lt.s32.totalorder %v1973_v7, 14  ;;  %v4051_v49 = vsel %vm3086_vm13, 4294967295, %v4050_v49  ;;  %vm3122_vm7 = vmand %vm3872_vm4, %vm3868_vm5 }
 0x35c   :  { %4030 = vst [vmem:[#allocation12_spill] sm:$0xff] %v2963_v52  ;;  %4031 = vst [vmem:[#allocation13_spill] sm:$0xff] %v2966_v1  ;;  %v1005_v32 = vmul.f32 %v1003_v10, %v994_v16  ;;  %v1006_v37 = vmul.f32 %v1004_v54, %v995_v19  ;;  %v2968_v44 = vpop.permute.xlu0 %1009  ;;  %v1077_v47 = vstv %s3002_s24  ;;  %v3114_v51 = vsel %vm3870_vm15, %v1036_v42, %v1037_v3 }
 0x35d   :  { %vm3040_vm6 = vmand %vm3867_vm10, %vm4043_vm0  ;;  %vm3869_vm0 = vcmp.lt.s32.totalorder %v1975_v8, 14  ;;  %4052 = vst [vmem:[#allocation16_spill] sm:$0xff] %v4051_v49  ;;  %v1096_v55 = vstv %s3014_s25  ;;  %v3134_v20 = vsel %vm3870_vm15, %v1056_v48, %v1057_v41  ;;  %v3150_v2 = vsel %vm397_vm2, %v1020_v13, 0.0 }
 0x35e   :  { %v2970_v23 = vadd.f32 %v1005_v32, %v929_v35  ;;  %v2972_v24 = vadd.f32 %v1006_v37, %v930_v36  ;;  %v2974_v26 = vpop.permute.xlu1 %1011  ;;  %v4035_v36 = vmov 0  ;;  %v4045_v56 = vsel %vm3040_vm6, 4294967295, %v4044_v56  ;;  %vm3104_vm11 = vmand %vm3869_vm0, %vm3866_vm9 }
 0x35f   :  { %v4036_v36 = vsel %vm3008_vm12, 4294967295, %v4035_v36  ;;  %vm4057_vm9 = vcmp.ge.s32.totalorder %v1973_v7, 2  ;;  %vm4060_vm5 = vcmp.lt.s32.totalorder %v1975_v8, 15  ;;  %v3158_v29 = vsel %vm3870_vm15, %v1076_v46, %v1077_v47 }
 0x360   :  { %4032 = vst [vmem:[#allocation14_spill] sm:$0xff] %v2970_v23  ;;  %4033 = vst [vmem:[#allocation15_spill] sm:$0xff] %v2972_v24  ;;  %v2976_v28 = vpop.permute.xlu0 %1027  ;;  %v3154_v4 = vsel %vm4060_vm5, %v1020_v13, 0.0  ;;  %v4062_v10 = vmov 0  ;;  %v3175_v16 = vsel %vm3870_vm15, %v1096_v55, %v1097_v38  ;;  %v1116_v19 = vstv %s3045_s1  ;;  %s1505_s1 = sld [smem:[#allocation2 + $0x64]] }
 0x361   :  { %vm3140_vm10 = vmand %vm3869_vm0, %vm4057_vm9  ;;  %vm4061_vm9 = vcmp.ge.s32.totalorder %v1968_v5, 1  ;;  %v1117_v32 = vstv %s3047_s27  ;;  %vm4064_vm5 = vcmp.ge.s32.totalorder %v1973_v7, 1  ;;  %vm4065_vm2 = vcmp.lt.s32.totalorder %v1975_v8, 14  ;;  %s1772_s27 = smov [#allocation5]  }
 0x362   :  { %v2978_v22 = vpop.permute.xlu1 %1029  ;;  %vm3164_vm0 = vmand %vm3872_vm4, %vm4061_vm9  ;;  %v4066_v37 = vmov 0  ;;  %vm4070_vm15 = vcmp.lt.s32.totalorder %v1968_v5, 15  ;;  %v4071_v3 = vmov 0  ;;  %v1136_v13 = vstv %s3062_s28  ;;  %s1489_s28 = sshll.u32 %s1772_s27, 4  ;;  %s1490_s28 = int_to_ptr.vmem [resolvable:$true] %s1489_s28 }
 0x363   :  { %v4063_v10 = vsel %vm3164_vm0, 4294967295, %v4062_v10  ;;  %vm3183_vm9 = vmand %vm4065_vm2, %vm4064_vm5  ;;  %v1137_v46 = vstv %s3064_s29  ;;  %v4076_v47 = vmov 0  ;;  %v1156_v48 = vstv %s3076_s30  ;;  %s1695_s29 = scalar_lea.vmem %s1490_s28, 256  ;;  %p1700_p6 = scmp.lt.s32.totalorder %s1490_s28, %s1490_s28 }
 0x364   :  { %v2980_v43 = vpop.permute.xlu0 %1047  ;;  %v4067_v37 = vsel %vm3183_vm9, 4294967295, %v4066_v37  ;;  %vm3199_vm12 = vmand %vm3872_vm4, %vm4070_vm15  ;;  %vm4074_vm15 = vcmp.lt.s32.totalorder %v1973_v7, 15  ;;  %vm4079_vm4 = vcmp.lt.s32.totalorder %v1826_v18, 2  ;;  %v4083_v57 = vmov 0  ;;  %p1696_p5 = scmp.ne.s32.totalorder %s1490_s28, %s1695_s29  ;;  %p1701_p7 = scmp.lt.s32.totalorder %s1695_s29, %s1695_s29 }
 0x365   :  { %4068 = vst [vmem:[#allocation17_spill] sm:$0xff] %v4067_v37  ;;  %v4072_v3 = vsel %vm3199_vm12, 4294967295, %v4071_v3  ;;  %vm4075_vm5 = vmmov %vm4065_vm2  ;;  %v3231_v41 = vsel %vm4079_vm4, %v1116_v19, %v1117_v32  ;;  %v1157_v19 = vstv %s3078_s4  ;;  %v1174_v32 = vstv %s3092_s5 }
 0x366   :  { %v2982_v25 = vpop.permute.xlu1 %1049  ;;  %4073 = vst [vmem:[#allocation19_spill] sm:$0xff] %v4072_v3  ;;  %vm3219_vm2 = vmand %vm4075_vm5, %vm4074_vm15  ;;  %vm4081_vm15 = vcmp.lt.s32.totalorder %v1968_v5, 14  ;;  %vm4082_vm5 = vcmp.lt.s32.totalorder %v1971_v6, 14  ;;  %v1175_v38 = vstv %s3094_s6  ;;  %vm4086_vm13 = vcmp.lt.s32.totalorder %v1973_v7, 14  ;;  %p1702_p8 = por %p1701_p7, %p1700_p6 }
 0x367   :  { %v4077_v47 = vsel %vm3219_vm2, 4294967295, %v4076_v47  ;;  %vm3240_vm3 = vmand %vm4082_vm5, %vm4081_vm15  ;;  %vm4087_vm1 = vcmp.lt.s32.totalorder %v1975_v8, 14  ;;  %v4088_v55 = vmov 0  ;;  %vm3891_vm15 = vcmp.lt.s32.totalorder %v1975_v8, 13 }
 0x368   :  { %v2988_v12 = vpop.permute.xlu0 %1067  ;;  %4078 = vst [vmem:[#allocation20_spill] sm:$0xff] %v4077_v47  ;;  %v4084_v57 = vsel %vm3240_vm3, 4294967295, %v4083_v57  ;;  %vm3256_vm6 = vmand %vm4087_vm1, %vm4086_vm13  ;;  %vm4093_vm1 = vcmp.lt.s32.totalorder %v1968_v5, 13  ;;  %vm4094_vm13 = vcmp.lt.s32.totalorder %v1971_v6, 14  ;;  %vm4098_vm14 = vcmp.lt.s32.totalorder %v1973_v7, 13  ;;  %p1703_p9 = pnand %p1702_p8, %p1696_p5 }
 0x369   :  { %4085 = vst [vmem:[#allocation22_spill] sm:$0xff] %v4084_v57  ;;  %v4089_v55 = vsel %vm3256_vm6, 4294967295, %v4088_v55  ;;  %vm4091_vm5 = vmmov %vm4079_vm4  ;;  %vm4099_vm8 = vcmp.lt.s32.totalorder %v1975_v8, 14  ;;  %v4100_v24 = vmov 0  ;;  %v1234_v23 = vstv %s3144_s11 }
 0x36a   :  { %v2998_v35 = vpop.permute.xlu1 %1069  ;;  %4090 = vst [vmem:[#allocation23_spill] sm:$0xff] %v4089_v55  ;;  %v3267_v11 = vsel %vm4091_vm5, %v1136_v13, %v1137_v46  ;;  %vm3277_vm4 = vmand %vm4094_vm13, %vm4093_vm1  ;;  %v1214_v13 = vstv %s3128_s9  ;;  %v1215_v46 = vstv %s3130_s10  ;;  %vm4108_vm13 = vcmp.lt.s32.totalorder %v1971_v6, 13 }
 0x36b   :  { %v4096_v31 = vsel %vm3277_vm4, 4294967295, %v4095_v31  ;;  %vm3293_vm6 = vmand %vm4099_vm8, %vm4098_vm14  ;;  %vm4107_vm14 = vcmp.ge.s32.totalorder %v1968_v5, 3  ;;  %v4109_v1 = vmov 0  ;;  %v4114_v52 = vmov 0 }
 0x36c   :  { %v3012_v30 = vpop.permute.xlu0 %1087  ;;  %4097 = vst [vmem:[#allocation25_spill] sm:$0xff] %v4096_v31  ;;  %v4101_v24 = vsel %vm3293_vm6, 4294967295, %v4100_v24  ;;  %vm4103_vm1 = vmmov %vm4091_vm5  ;;  %v1274_v47 = vstv %s3244_s15  ;;  %v4138_v3 = vmov 0  ;;  %vm4142_vm3 = vcmp.lt.s32.totalorder %v1975_v8, 13 }
 0x36d   :  { %4102 = vst [vmem:[#allocation26_spill] sm:$0xff] %v4101_v24  ;;  %vm4104_vm8 = vmmov %vm4103_vm1  ;;  %v1294_v24 = vstv %s3261_s17  ;;  %v1312_v55 = vstv %s3282_s2  ;;  %v1313_v31 = vstv %s3284_s19  ;;  %vm4147_vm6 = vcmp.lt.s32.totalorder %v1971_v6, 13 }
 0x36e   :  { %v3034_v34 = vpop.permute.xlu1 %1089  ;;  %vm3321_vm5 = vmand %vm4108_vm13, %vm4107_vm14  ;;  %vm4151_vm4 = vcmp.lt.s32.totalorder %v1973_v7, 15  ;;  %v1332_v57 = vstv %s3299_s0  ;;  %v4213_v14 = vsel %vm3122_vm7, %v3231_v41, 0.0  ;;  %vm4222_vm7 = vcmp.lt.s32.totalorder %v1824_v17, 95 }
 0x36f   :  { %v4110_v1 = vsel %vm3321_vm5, 4294967295, %v4109_v1  ;;  %vm4118_vm0 = vmmov %vm4103_vm1 }
 0x370   :  { %v3060_v62 = vpop.permute.xlu0 %1107  ;;  %4111 = vst [vmem:[#allocation29_spill] sm:$0xff] %v4110_v1  ;;  %vm4152_vm2 = vmmov %vm4142_vm3 }
 0x371   :  { %vm3461_vm12 = vmand %vm4152_vm2, %vm4151_vm4  ;;  %vm4158_vm2 = vcmp.lt.s32.totalorder %v1968_v5, 14  ;;  %vm4159_vm4 = vcmp.lt.s32.totalorder %v1971_v6, 13 }
 0x372   :  { %v3090_v9 = vpop.permute.xlu1 %1109 }
 0x374   :  { %v3126_v59 = vpop.permute.xlu0 %1127 }
 0x376   :  { %v3168_v54 = vpop.permute.xlu1 %1129 }
 0x378   :  { %v3193_v42 = vpop.permute.xlu0 %1147 }
 0x379   :  { %4069 = vst [vmem:[#allocation18_spill] sm:$0xff] %v3193_v42  ;;  %v1158_v42 = vsel %vm4103_vm1, %v1156_v48, %v1157_v19  ;;  %v3355_v19 = vsel %vm4118_vm0, %v1214_v13, %v1215_v46  ;;  %v1255_v48 = vstv %s3205_s14 }
 0x37a   :  { %v3234_v58 = vpop.permute.xlu1 %1149  ;;  %4119 = vst [vmem:[#allocation33_spill] sm:$0xff] %v3355_v19  ;;  %v1295_v19 = vstv %s3263_s18 }
 0x37b   :  { %4080 = vst [vmem:[#allocation21_spill] sm:$0xff] %v3234_v58  ;;  %v3313_v58 = vsel %vm4104_vm8, %v1174_v32, %v1175_v38  ;;  %v3340_v32 = vsel %vm4103_vm1, %v1194_v53, %v1195_v27  ;;  %vm4113_vm8 = vcmp.ge.s32.totalorder %v1973_v7, 3  ;;  %vm4120_vm1 = vmmov %vm4118_vm0  ;;  %v1254_v53 = vstv %s3203_s13 }
 0x37c   :  { %v3269_v0 = vpop.permute.xlu0 %1165  ;;  %4105 = vst [vmem:[#allocation27_spill] sm:$0xff] %v3313_v58  ;;  %4112 = vst [vmem:[#allocation30_spill] sm:$0xff] %v3340_v32  ;;  %vm4128_vm0 = vcmp.lt.s32.totalorder %v1975_v8, 14  ;;  %v1275_v58 = vstv %s3246_s16 }
 0x37d   :  { %4092 = vst [vmem:[#allocation24_spill] sm:$0xff] %v3269_v0  ;;  %v1235_v0 = vstv %s3146_s12  ;;  %vm3346_vm14 = vmand %vm3891_vm15, %vm4113_vm8  ;;  %vm4122_vm8 = vcmp.ge.s32.totalorder %v1968_v5, 2  ;;  %v3377_v13 = vsel %vm4128_vm0, %v1158_v42, 0.0 }
 0x37e   :  { %v3315_v49 = vpop.permute.xlu1 %1167  ;;  %v4115_v52 = vsel %vm3346_vm14, 4294967295, %v4114_v52  ;;  %v3359_v27 = vsel %vm4120_vm1, %v1234_v23, %v1235_v0  ;;  %vm4123_vm15 = vmmov %vm4108_vm13  ;;  %vm4126_vm13 = vcmp.lt.s32.totalorder %v1971_v6, 14  ;;  %4129 = vst [vmem:[#allocation36_spill] sm:$0xff] %v3377_v13  ;;  %vm4131_vm1 = vcmp.lt.s32.totalorder %v1975_v8, 13 }
 0x37f   :  { %4106 = vst [vmem:[#allocation28_spill] sm:$0xff] %v3315_v49  ;;  %4116 = vst [vmem:[#allocation31_spill] sm:$0xff] %v4115_v52  ;;  %v4124_v49 = vmov 0  ;;  %v1353_v13 = vstv %s3327_s22 }
 0x380   :  { %v3351_v38 = vpop.permute.xlu0 %1185  ;;  %4121 = vst [vmem:[#allocation34_spill] sm:$0xff] %v3359_v27  ;;  %vm3367_vm9 = vmand %vm4123_vm15, %vm4122_vm8  ;;  %vm4130_vm15 = vcmp.ge.s32.totalorder %v1973_v7, 2  ;;  %v1352_v27 = vstv %s3325_s21 }
 0x381   :  { %4117 = vst [vmem:[#allocation32_spill] sm:$0xff] %v3351_v38  ;;  %v4125_v49 = vsel %vm3367_vm9, 4294967295, %v4124_v49  ;;  %v3373_v38 = vsel %vm4126_vm13, %v1158_v42, 0.0  ;;  %vm3389_vm8 = vmand %vm4131_vm1, %vm4130_vm15  ;;  %vm4136_vm15 = vcmp.ge.s32.totalorder %v1968_v5, 1  ;;  %vm4137_vm1 = vcmp.lt.s32.totalorder %v1971_v6, 13 }
 0x382   :  { %4127 = vst [vmem:[#allocation35_spill] sm:$0xff] %v3373_v38  ;;  %v3400_v0 = vpop.permute.xlu1 %1187  ;;  %vm3408_vm13 = vmand %vm4137_vm1, %vm4136_vm15  ;;  %vm4140_vm15 = vcmp.lt.s32.totalorder %v1826_v18, 2  ;;  %vm4141_vm1 = vcmp.ge.s32.totalorder %v1973_v7, 1  ;;  %v4143_v42 = vmov 0  ;;  %vm4168_vm9 = vcmp.lt.s32.totalorder %v1824_v17, 111 }
 0x383   :  { %4135 = vst [vmem:[#allocation37_spill] sm:$0xff] %v3400_v0  ;;  %v4139_v3 = vsel %vm3408_vm13, 4294967295, %v4138_v3  ;;  %v3424_v32 = vsel %vm4140_vm15, %v1254_v53, %v1255_v48  ;;  %vm3430_vm0 = vmand %vm4142_vm3, %vm4141_vm1  ;;  %vm4146_vm15 = vcmp.lt.s32.totalorder %v1968_v5, 15  ;;  %vm4150_vm1 = vcmp.lt.s32.totalorder %v1826_v18, 2 }
 0x384   :  { %v4144_v42 = vsel %vm3430_vm0, 4294967295, %v4143_v42  ;;  %v3435_v23 = vpop.permute.xlu0 %1205  ;;  %vm3445_vm5 = vmand %vm4147_vm6, %vm4146_vm15  ;;  %v1333_v0 = vstv %s3301_s20  ;;  %vm4155_vm6 = vcmp.lt.s32.totalorder %v1824_v17, 112  ;;  %vm4175_vm13 = vcmp.lt.s32.totalorder %v1973_v7, 13 }
 0x385   :  { %4145 = vst [vmem:[#allocation38_spill] sm:$0xff] %v3435_v23  ;;  %v3455_v23 = vsel %vm4150_vm1, %v1274_v47, %v1275_v58  ;;  %v1014_v52 = vsel %vm4155_vm6, %v2968_v44, %v2974_v26  ;;  %vm4156_vm15 = vmmov %vm4155_vm6  ;;  %v1377_v38 = vstv %s1503_s23 }
 0x386   :  { %v1015_v58 = vsel %vm4156_vm15, %v2974_v26, %v2968_v44  ;;  %v3476_v47 = vpop.permute.xlu1 %1207  ;;  %vm3482_vm3 = vmand %vm4159_vm4, %vm4158_vm2  ;;  %vm4164_vm2 = vcmp.lt.s32.totalorder %v1973_v7, 14  ;;  %vm4165_vm4 = vcmp.lt.s32.totalorder %v1975_v8, 13  ;;  %v1032_v44 = vsel %vm4168_vm9, %v2976_v28, %v2978_v22  ;;  %v4220_v63 = vld [vmem:[#allocation28_spill] sm:$0xff] }
 0x387   :  { %4157 = vst [vmem:[#allocation39_spill] sm:$0xff] %v3476_v47  ;;  %vm4162_vm6 = vmmov %vm4150_vm1 }
 0x388   :  { %v1296_v26 = vsel %vm4162_vm6, %v1294_v24, %v1295_v19  ;;  %vm4163_vm15 = vmmov %vm4150_vm1 }
 0x389   :  { %v3498_v47 = vsel %vm4163_vm15, %v1312_v55, %v1313_v31  ;;  %vm3504_vm1 = vmand %vm4165_vm4, %vm4164_vm2  ;;  %v3517_v31 = vpop.permute.xlu0 %1225  ;;  %vm4170_vm2 = vcmp.lt.s32.totalorder %v1968_v5, 13  ;;  %v3538_v55 = vsel %vm4163_vm15, %v1332_v57, %v1333_v0 }
 0x38a   :  { %vm4169_vm6 = vmmov %vm4168_vm9  ;;  %vm4171_vm9 = vcmp.lt.s32.totalorder %v1971_v6, 13  ;;  %v1317_v7 = vsel %vm3445_vm5, %v3498_v47, 0.0  ;;  %v1318_v57 = vsel %vm3461_vm12, %v3498_v47, 0.0  ;;  %vm4277_vm12 = vcmask 1041408  }
 0x38b   :  { %v1033_v24 = vsel %vm4169_vm6, %v2978_v22, %v2976_v28  ;;  %vm3529_vm4 = vmand %vm4171_vm9, %vm4170_vm2  ;;  %v1023_v28 = vmul.f32 %v3150_v2, %v1014_v52  ;;  %v1024_v22 = vmul.f32 %v3154_v4, %v1015_v58  ;;  %vm4176_vm2 = vcmp.lt.s32.totalorder %v1975_v8, 13  ;;  %v3552_v52 = vpop.permute.xlu1 %1227 }
 0x38c   :  { %vm4174_vm0 = vmmov %vm4163_vm15  ;;  %vm4179_vm6 = vcmp.lt.s32.totalorder %v1971_v6, 13 }
 0x38d   :  { %v3542_v19 = vsel %vm4174_vm0, %v1352_v27, %v1353_v13  ;;  %vm3548_vm9 = vmand %vm4176_vm2, %vm4175_vm13  ;;  %v3556_v2 = vsel %vm4179_vm6, %v1296_v26, 0.0  ;;  %vm4181_vm13 = vnez %v4036_v36  ;;  %vm4183_vm0 = vnez %v4039_v50  ;;  %v3585_v36 = vpop.permute.xlu0 %1245 }
 0x38e   :  { %vm4180_vm15 = vmmov %vm4176_vm2  ;;  %v4182_v27 = vsel %vm4181_vm13, %v3114_v51, 0.0  ;;  %v4184_v6 = vsel %vm4183_vm0, %v3114_v51, 0.0  ;;  %vm4185_vm6 = vcmp.lt.s32.totalorder %v1824_v17, 110  ;;  %v1337_v50 = vsel %vm3482_vm3, %v3538_v55, 0.0 }
 0x38f   :  { %v3560_v4 = vsel %vm4180_vm15, %v1296_v26, 0.0  ;;  %v1043_v13 = vmul.f32 %v4182_v27, %v1032_v44  ;;  %v1044_v8 = vmul.f32 %v4184_v6, %v1033_v24  ;;  %v1052_v0 = vsel %vm4185_vm6, %v2980_v43, %v2982_v25  ;;  %vm4186_vm2 = vmmov %vm4185_vm6 }
 0x390   :  { %v1053_v58 = vsel %vm4186_vm2, %v2982_v25, %v2980_v43  ;;  %v1025_v25 = vadd.f32 %v1023_v28, %v2914_v60  ;;  %v1026_v26 = vadd.f32 %v1024_v22, %v2916_v45  ;;  %vm4187_vm13 = vcmp.lt.s32.totalorder %v1824_v17, 109  ;;  %vm4278_vm5 = vmmov %vm4277_vm12 }
 0x391   :  { %v1072_v24 = vsel %vm4187_vm13, %v2988_v12, %v2998_v35  ;;  %vm4188_vm0 = vmmov %vm4187_vm13  ;;  %vm4189_vm6 = vnez %v4042_v33  ;;  %vm4191_vm2 = vnez %v4045_v56  ;;  %vm4193_vm15 = vcmp.lt.s32.totalorder %v1824_v17, 99 }
 0x392   :  { %v1073_v27 = vsel %vm4188_vm0, %v2998_v35, %v2988_v12  ;;  %v4190_v6 = vsel %vm4189_vm6, %v3134_v20, 0.0  ;;  %v4192_v60 = vsel %vm4191_vm2, %v3134_v20, 0.0  ;;  %v1092_v28 = vsel %vm4193_vm15, %v3012_v30, %v3034_v34  ;;  %vm4194_vm13 = vmmov %vm4193_vm15  ;;  %v1248_v35 = vpop.permute.xlu1 %1247 }
 0x393   :  { %v1063_v44 = vmul.f32 %v4190_v6, %v1052_v0  ;;  %v1064_v45 = vmul.f32 %v4192_v60, %v1053_v58  ;;  %v1093_v12 = vsel %vm4194_vm13, %v3034_v34, %v3012_v30  ;;  %v1045_v33 = vadd.f32 %v1043_v13, %v2945_v40  ;;  %v4207_v58 = vld [vmem:[#allocation21_spill] sm:$0xff]  ;;  %vm4279_vm3 = vmmov %vm4278_vm5 }
 0x394   :  { %v1046_v56 = vadd.f32 %v1044_v8, %v2947_v15  ;;  %vm4195_vm6 = vcmp.lt.s32.totalorder %v1824_v17, 98  ;;  %vm4197_vm13 = vnez %v4047_v39  ;;  %vm4199_vm0 = vnez %v4049_v61  ;;  %v4203_v39 = vld [vmem:[#allocation16_spill] sm:$0xff]  ;;  %v4212_v60 = vld [vmem:[#allocation13_spill] sm:$0xff] }
 0x395   :  { %v1112_v20 = vsel %vm4195_vm6, %v3060_v62, %v3090_v9  ;;  %vm4196_vm15 = vmmov %vm4195_vm6  ;;  %v4198_v30 = vsel %vm4197_vm13, %v3158_v29, 0.0  ;;  %v4200_v40 = vsel %vm4199_vm0, %v3158_v29, 0.0  ;;  %vm4201_vm6 = vcmp.lt.s32.totalorder %v1824_v17, 97 }
 0x396   :  { %v1113_v22 = vsel %vm4196_vm15, %v3090_v9, %v3060_v62  ;;  %v1083_v34 = vmul.f32 %v4198_v30, %v1072_v24  ;;  %v1084_v15 = vmul.f32 %v4200_v40, %v1073_v27  ;;  %v1132_v13 = vsel %vm4201_vm6, %v3126_v59, %v3168_v54  ;;  %vm4202_vm15 = vmmov %vm4201_vm6  ;;  %v1266_v9 = vpop.permute.xlu0 %1265  ;;  %v4208_v24 = vld [vmem:[#allocation18_spill] sm:$0xff]  ;;  %v1268_v40 = vpop.permute.xlu1 %1267 }
 0x397   :  { %v1133_v62 = vsel %vm4202_vm15, %v3168_v54, %v3126_v59  ;;  %vm1307_vm2 = vcmp.lt.s32.totalorder %v1824_v17, 79  ;;  %vm4204_vm13 = vnez %v4203_v39  ;;  %v4206_v29 = vsel %vm3104_vm11, %v3175_v16, 0.0  ;;  %v4211_v54 = vld [vmem:[#allocation12_spill] sm:$0xff] }
 0x398   :  { %v4205_v61 = vsel %vm4204_vm13, %v3175_v16, 0.0  ;;  %v1104_v0 = vmul.f32 %v4206_v29, %v1093_v12  ;;  %vm4209_vm0 = vcmp.lt.s32.totalorder %v1824_v17, 96  ;;  %vm1269_vm15 = vcmp.lt.s32.totalorder %v1824_v17, 81  ;;  %v4217_v29 = vld [vmem:[#allocation17_spill] sm:$0xff] }
 0x399   :  { %v1103_v8 = vmul.f32 %v4205_v61, %v1092_v28  ;;  %v1152_v27 = vsel %vm4209_vm0, %v4208_v24, %v4207_v58  ;;  %vm4210_vm6 = vmmov %vm4209_vm0  ;;  %v1065_v6 = vadd.f32 %v1063_v44, %v4211_v54  ;;  %v1066_v28 = vadd.f32 %v1064_v45, %v4212_v60  ;;  %v4227_v54 = vld [vmem:[#allocation32_spill] sm:$0xff] }
 0x39a   :  { %v1153_v59 = vsel %vm4210_vm6, %v4207_v58, %v4208_v24  ;;  %v1123_v16 = vmul.f32 %v4213_v14, %v1112_v20  ;;  %v4214_v12 = vsel %vm3140_vm10, %v3231_v41, 0.0  ;;  %vm4215_vm11 = vnez %v4063_v10  ;;  %v4221_v58 = vld [vmem:[#allocation24_spill] sm:$0xff]  ;;  %vm4223_vm10 = vmmov %vm4222_vm7  ;;  %v4224_v10 = vld [vmem:[#allocation35_spill] sm:$0xff]  ;;  %v1286_v60 = vpop.permute.xlu0 %1285 }
 0x39b   :  { %v1124_v30 = vmul.f32 %v4214_v12, %v1113_v22  ;;  %v4216_v39 = vsel %vm4215_vm11, %v3267_v11, 0.0  ;;  %vm4218_vm13 = vnez %v4217_v29  ;;  %v1170_v20 = vsel %vm4222_vm7, %v4221_v58, %v4220_v63  ;;  %v4225_v22 = vld [vmem:[#allocation36_spill] sm:$0xff]  ;;  %v4226_v24 = vld [vmem:[#allocation37_spill] sm:$0xff]  ;;  %v4230_v14 = vld [vmem:[#allocation14_spill] sm:$0xff] }
 0x39c   :  { %v1143_v61 = vmul.f32 %v4216_v39, %v1132_v13  ;;  %v4219_v44 = vsel %vm4218_vm13, %v3267_v11, 0.0  ;;  %v1171_v21 = vsel %vm4223_vm10, %v4220_v63, %v4221_v58  ;;  %vm1289_vm0 = vcmp.lt.s32.totalorder %v1824_v17, 80  ;;  %v4231_v39 = vld [vmem:[#allocation15_spill] sm:$0xff] }
 0x39d   :  { %v1144_v45 = vmul.f32 %v4219_v44, %v1133_v62  ;;  %v1161_v41 = vmul.f32 %v4224_v10, %v1152_v27  ;;  %v1162_v13 = vmul.f32 %v4225_v22, %v1153_v59  ;;  %vm4228_vm6 = vcmp.lt.s32.totalorder %v1824_v17, 94  ;;  %v4232_v59 = vld [vmem:[#allocation19_spill] sm:$0xff]  ;;  %v4236_v22 = vld [vmem:[#allocation20_spill] sm:$0xff] }
 0x39e   :  { %v1190_v11 = vsel %vm4228_vm6, %v4227_v54, %v4226_v24  ;;  %vm4229_vm11 = vmmov %vm4228_vm6  ;;  %vm1327_vm13 = vcmp.lt.s32.totalorder %v1824_v17, 78  ;;  %v1085_v12 = vadd.f32 %v1083_v34, %v4230_v14  ;;  %v1086_v29 = vadd.f32 %v1084_v15, %v4231_v39  ;;  %v4234_v63 = vld [vmem:[#allocation27_spill] sm:$0xff] }
 0x39f   :  { %v1191_v62 = vsel %vm4229_vm11, %v4226_v24, %v4227_v54  ;;  %v1105_v27 = vadd.f32 %v1103_v8, %v1025_v25  ;;  %v1106_v44 = vadd.f32 %v1104_v0, %v1026_v26  ;;  %vm4233_vm7 = vnez %v4232_v59  ;;  %v1288_v26 = vpop.permute.xlu1 %1287  ;;  %v4241_v8 = vld [vmem:[#allocation22_spill] sm:$0xff]  ;;  %v4245_v14 = vld [vmem:[#allocation23_spill] sm:$0xff] }
 0x3a0   :  { %v4235_v58 = vsel %vm4233_vm7, %v4234_v63, 0.0  ;;  %vm4237_vm10 = vnez %v4236_v22  ;;  %vm4239_vm6 = vcmp.lt.s32.totalorder %v1824_v17, 83  ;;  %v1125_v34 = vadd.f32 %v1123_v16, %v1045_v33  ;;  %v4243_v0 = vld [vmem:[#allocation30_spill] sm:$0xff]  ;;  %v1304_v22 = vpop.permute.xlu0 %1303 }
 0x3a1   :  { %v1181_v10 = vmul.f32 %v4235_v58, %v1170_v20  ;;  %v4238_v43 = vsel %vm4237_vm10, %v4234_v63, 0.0  ;;  %v1230_v24 = vsel %vm4239_vm6, %v3517_v31, %v3552_v52  ;;  %vm4240_vm11 = vmmov %vm4239_vm6  ;;  %v1126_v15 = vadd.f32 %v1124_v30, %v1046_v56 }
 0x3a2   :  { %v1182_v51 = vmul.f32 %v4238_v43, %v1171_v21  ;;  %v1231_v25 = vsel %vm4240_vm11, %v3552_v52, %v3517_v31  ;;  %vm4242_vm7 = vnez %v4241_v8  ;;  %vm4246_vm10 = vnez %v4245_v14  ;;  %v4248_v31 = vld [vmem:[#allocation29_spill] sm:$0xff]  ;;  %v4250_v52 = vld [vmem:[#allocation34_spill] sm:$0xff] }
 0x3a3   :  { %v4244_v20 = vsel %vm4242_vm7, %v4243_v0, 0.0  ;;  %v4247_v43 = vsel %vm4246_vm10, %v4243_v0, 0.0  ;;  %v1145_v39 = vadd.f32 %v1143_v61, %v1065_v6  ;;  %v1146_v59 = vadd.f32 %v1144_v45, %v1066_v28  ;;  %v4263_v0 = vld [vmem:[#allocation25_spill] sm:$0xff]  ;;  %v4267_v14 = vld [vmem:[#allocation26_spill] sm:$0xff] }
 0x3a4   :  { %v1201_v54 = vmul.f32 %v4244_v20, %v1190_v11  ;;  %v1202_v21 = vmul.f32 %v4247_v43, %v1191_v62  ;;  %v1163_v63 = vadd.f32 %v1161_v41, %v1085_v12  ;;  %v1164_v58 = vadd.f32 %v1162_v13, %v1086_v29  ;;  %v4256_v41 = vld [vmem:[#allocation39_spill] sm:$0xff]  ;;  %v4257_v13 = vld [vmem:[#allocation38_spill] sm:$0xff]  ;;  %v1306_v29 = vpop.permute.xlu1 %1305  ;;  %v4265_v20 = vld [vmem:[#allocation33_spill] sm:$0xff] }
 0x3a5   :  { %vm1347_vm6 = vcmp.lt.s32.totalorder %v1824_v17, 77  ;;  %vm4249_vm11 = vnez %v4248_v31  ;;  %v4253_v30 = vsel %vm3346_vm14, %v4250_v52, 0.0  ;;  %vm4254_vm7 = vcmp.lt.s32.totalorder %v1824_v17, 82 }
 0x3a6   :  { %v4251_v33 = vsel %vm4249_vm11, %v4250_v52, 0.0  ;;  %v1242_v11 = vmul.f32 %v4253_v30, %v1231_v25  ;;  %v1250_v6 = vsel %vm4254_vm7, %v3585_v36, %v1248_v35  ;;  %vm4255_vm10 = vmmov %vm4254_vm7  ;;  %v1183_v61 = vadd.f32 %v1181_v10, %v1105_v27 }
 0x3a7   :  { %v1241_v56 = vmul.f32 %v4251_v33, %v1230_v24  ;;  %v1251_v28 = vsel %vm4255_vm10, %v1248_v35, %v3585_v36  ;;  %v1184_v45 = vadd.f32 %v1182_v51, %v1106_v44  ;;  %vm4258_vm11 = vcmp.lt.s32.totalorder %v1824_v17, 93 }
 0x3a8   :  { %v1210_v62 = vsel %vm4258_vm11, %v4257_v13, %v4256_v41  ;;  %vm4259_vm14 = vmmov %vm4258_vm11  ;;  %v1203_v24 = vadd.f32 %v1201_v54, %v1125_v34  ;;  %v1204_v25 = vadd.f32 %v1202_v21, %v1126_v15  ;;  %v1308_v8 = vsel %vm1307_vm2, %v1304_v22, %v1306_v29  ;;  %v1324_v15 = vpop.permute.xlu0 %1323  ;;  %v1326_v52 = vpop.permute.xlu1 %1325 }
 0x3a9   :  { %v1211_v12 = vsel %vm4259_vm14, %v4256_v41, %v4257_v13  ;;  %v1309_v36 = vsel %vm1307_vm2, %v1306_v29, %v1304_v22  ;;  %vm4260_vm7 = vnez %v4125_v49  ;;  %v4262_v27 = vsel %vm3389_vm8, %v3424_v32, 0.0 }
 0x3aa   :  { %v4261_v51 = vsel %vm4260_vm7, %v3424_v32, 0.0  ;;  %v1262_v44 = vmul.f32 %v4262_v27, %v1251_v28  ;;  %v1270_v10 = vsel %vm1269_vm15, %v1266_v9, %v1268_v40  ;;  %v1271_v34 = vsel %vm1269_vm15, %v1268_v40, %v1266_v9 }
 0x3ab   :  { %v1261_v35 = vmul.f32 %v4261_v51, %v1250_v6  ;;  %vm4264_vm10 = vnez %v4263_v0  ;;  %vm4268_vm2 = vnez %v4267_v14  ;;  %v1243_v21 = vadd.f32 %v1241_v56, %v1163_v63 }
 0x3ac   :  { %v4266_v54 = vsel %vm4264_vm10, %v4265_v20, 0.0  ;;  %v4269_v43 = vsel %vm4268_vm2, %v4265_v20, 0.0  ;;  %v1244_v32 = vadd.f32 %v1242_v11, %v1164_v58  ;;  %v1290_v22 = vsel %vm1289_vm0, %v1286_v60, %v1288_v26  ;;  %v1346_v53 = vpop.permute.xlu1 %1345 }
 0x3ad   :  { %v1221_v49 = vmul.f32 %v4266_v54, %v1210_v62  ;;  %v1222_v46 = vmul.f32 %v4269_v43, %v1211_v12  ;;  %v1291_v31 = vsel %vm1289_vm0, %v1288_v26, %v1286_v60  ;;  %v1319_v9 = vmul.f32 %v1317_v7, %v1308_v8 }
 0x3ae   :  { %v1320_v40 = vmul.f32 %v1318_v57, %v1309_v36  ;;  %vm4270_vm8 = vnez %v4139_v3  ;;  %vm4272_vm15 = vnez %v4144_v42  ;;  %v1328_v48 = vsel %vm1327_vm13, %v1324_v15, %v1326_v52 }
 0x3af   :  { %v4271_v63 = vsel %vm4270_vm8, %v3455_v23, 0.0  ;;  %v4273_v60 = vsel %vm4272_vm15, %v3455_v23, 0.0  ;;  %v1329_v1 = vsel %vm1327_vm13, %v1326_v52, %v1324_v15  ;;  %v1263_v7 = vadd.f32 %v1261_v35, %v1183_v61  ;;  %v1344_v61 = vpop.permute.xlu0 %1343 }
 0x3b0   :  { %v1281_v58 = vmul.f32 %v4271_v63, %v1270_v10  ;;  %v1282_v26 = vmul.f32 %v4273_v60, %v1271_v34  ;;  %v1264_v47 = vadd.f32 %v1262_v44, %v1184_v45  ;;  %v1339_v3 = vmul.f32 %v1337_v50, %v1328_v48 }
 0x3b1   :  { %v4274_v42 = vsel %vm3504_vm1, %v3538_v55, 0.0  ;;  %v1223_v23 = vadd.f32 %v1221_v49, %v1145_v39  ;;  %v1224_v33 = vadd.f32 %v1222_v46, %v1146_v59  ;;  %v1299_v56 = vmul.f32 %v3556_v2, %v1290_v22  ;;  %vm4280_vm1 = vmmov %vm4279_vm3 }
 0x3b2   :  { %v1340_v57 = vmul.f32 %v4274_v42, %v1329_v1  ;;  %v1300_v16 = vmul.f32 %v3560_v4, %v1291_v31  ;;  %v1321_v30 = vadd.f32 %v1319_v9, %v1243_v21  ;;  %v1322_v11 = vadd.f32 %v1320_v40, %v1244_v32 }
 0x3b3   :  { %v1341_v6 = vadd.f32 %v1339_v3, %v1263_v7  ;;  %v1283_v45 = vadd.f32 %v1281_v58, %v1203_v24  ;;  %v1284_v41 = vadd.f32 %v1282_v26, %v1204_v25  ;;  %v1348_v37 = vsel %vm1347_vm6, %v1344_v61, %v1346_v53 }
 0x3b4   :  { %v1342_v28 = vadd.f32 %v1340_v57, %v1264_v47  ;;  %v1349_v55 = vsel %vm1347_vm6, %v1346_v53, %v1344_v61  ;;  %v4275_v2 = vsel %vm3529_vm4, %v3542_v19, 0.0  ;;  %v4276_v59 = vsel %vm3548_vm9, %v3542_v19, 0.0 }
 0x3b5   :  { %v1365_v50 = vadd.f32 %v1341_v6, %v1321_v30  ;;  %v1359_v4 = vmul.f32 %v4275_v2, %v1348_v37  ;;  %v1360_v13 = vmul.f32 %v4276_v59, %v1349_v55  ;;  %v1301_v62 = vadd.f32 %v1299_v56, %v1223_v23 }
 0x3b6   :  { %v1366_v39 = vadd.f32 %v1342_v28, %v1322_v11  ;;  %v1302_v12 = vadd.f32 %v1300_v16, %v1224_v33  ;;  %v1417_v56 = vstv %s1504_s26  ;;  %v1420_v11 = vstv %s1505_s1 }
 0x3b7   :  { %v1361_v29 = vadd.f32 %v1359_v4, %v1283_v45  ;;  %v1362_v24 = vadd.f32 %v1360_v13, %v1284_v41  ;;  %v1771_v2 = vmov 1966171168  }
 0x3b8   :  { %v1439_v4 = vunpack.c.l.s4 %v1771_v2 }
 0x3b9   :  { %v1363_v25 = vadd.f32 %v1361_v29, %v1301_v62  ;;  %v1364_v17 = vadd.f32 %v1362_v24, %v1302_v12 }
 0x3ba   :  { %v1440_v59 = vunpack.c.0.s8 %v1439_v4 }
 0x3bb   :  { %v1367_v8 = vadd.f32 %v1365_v50, %v1363_v25  ;;  %v1368_v36 = vadd.f32 %v1366_v39, %v1364_v17 }
 0x3bc   :  { %v1443_v62 = vsub.s32 %v1440_v59, %v1826_v18 }
 0x3bd   :  { %v1371_v51 = vrot.slane %v1367_v8, 2  ;;  %v1372_v35 = vrot.slane %v1368_v36, 2 }
 0x3bf   :  { %v1375_v27 = vadd.f32 %v1371_v51, %v1367_v8  ;;  %v1376_v44 = vadd.f32 %v1372_v35, %v1368_v36  ;;  %v4281_v36 = vld [vmem:[#allocation9_spill] sm:$0xff]  ;;  %v4282_v35 = vld [vmem:[#allocation8_spill] sm:$0xff] }
 0x3c1   :  { %v1378_v10 = vadd.f32 %v1377_v38, %v1375_v27  ;;  %v1379_v34 = vadd.f32 %v1377_v38, %v1376_v44 }
 0x3c3   :  { %v1380_v5 = vsel %vm4277_vm12, %v1378_v10, 0.0  ;;  %v1381_v19 = vsel %vm4278_vm5, %v1379_v34, 0.0 }
 0x3c4   :  { %v1382_v15 = vadd.f32 %v1381_v19, %v1380_v5  ;;  %v4283_v5 = vld [vmem:[#allocation10_spill] sm:$0xff]  ;;  %v4284_v19 = vld [vmem:[#allocation11_spill] sm:$0xff] }
 0x3c6   :  { %1383 = vadd.xlane.f32.xlu0 %v1382_v15 }
 0x453   :  { %v1384_v0 = vpop.xlane.xlu0 %1383 }
 0x454   :  { %v1385_v20 = vrot.slane %v1384_v0, 4 }
 0x456   :  { %v1386_v54 = vadd.f32 %v1385_v20, %v1384_v0 }
 0x458   :  { %v1387_v49 = vrot.slane %v1386_v54, 2 }
 0x45a   :  { %v1388_v14 = vadd.f32 %v1387_v49, %v1386_v54 }
 0x45c   :  { %v1389_v43 = vrot.slane %v1388_v14, 1 }
 0x45e   :  { %v1390_v46 = vadd.f32 %v1389_v43, %v1388_v14 }
 0x460   :  { %1605 = vpush %v1390_v46 }
 0x491   :  { %s1606_s24 = spop %1605 }
 0x492   :  { %v1392_v21 = vstv %s1606_s24 }
 0x493   :  { %v1394_v32 = vmul.f32 0.001953125, %v1392_v21 }
 0x495   :  { %v1395_v22 = vsub.f32 %v1378_v10, %v1394_v32  ;;  %v1396_v31 = vsub.f32 %v1379_v34, %v1394_v32 }
 0x497   :  { %v1397_v9 = vmul.f32 %v1395_v22, %v1395_v22  ;;  %v1398_v40 = vmul.f32 %v1396_v31, %v1396_v31 }
 0x499   :  { %v1399_v52 = vsel %vm4279_vm3, %v1397_v9, 0.0  ;;  %v1400_v63 = vsel %vm4280_vm1, %v1398_v40, 0.0 }
 0x49a   :  { %v1401_v58 = vadd.f32 %v1400_v63, %v1399_v52 }
 0x49c   :  { %1402 = vadd.xlane.f32.xlu1 %v1401_v58 }
 0x529   :  { %v1403_v60 = vpop.xlane.xlu1 %1402 }
 0x52a   :  { %v1404_v26 = vrot.slane %v1403_v60, 4 }
 0x52c   :  { %v1405_v48 = vadd.f32 %v1404_v26, %v1403_v60 }
 0x52e   :  { %v1406_v1 = vrot.slane %v1405_v48, 2 }
 0x530   :  { %v1407_v7 = vadd.f32 %v1406_v1, %v1405_v48 }
 0x532   :  { %v1408_v47 = vrot.slane %v1407_v7, 1 }
 0x534   :  { %v1409_v3 = vadd.f32 %v1408_v47, %v1407_v7 }
 0x536   :  { %1607 = vpush %v1409_v3 }
 0x567   :  { %s1608_s25 = spop %1607 }
 0x568   :  { %v1411_v42 = vstv %s1608_s25 }
 0x569   :  { %v1412_v57 = vmul.f32 0.001953125, %v1411_v42 }
 0x56b   :  { %v1413_v23 = vadd.f32 1e-05, %v1412_v57 }
 0x56d   :  { %1673 = vrsqrt.f32 %v1413_v23 }
 0x577   :  { %v1674_v33 = vpop.eup %1673 }
 0x578   :  { %v1415_v16 = vmul.f32 %v1674_v33, %v1395_v22  ;;  %v1416_v30 = vmul.f32 %v1674_v33, %v1396_v31 }
 0x57a   :  { %v1418_v6 = vmul.f32 %v1417_v56, %v1415_v16  ;;  %v1419_v28 = vmul.f32 %v1417_v56, %v1416_v30 }
 0x57c   :  { %v1421_v61 = vadd.f32 %v1420_v11, %v1418_v6  ;;  %v1422_v53 = vadd.f32 %v1420_v11, %v1419_v28 }
 0x57e   :  { %v1603_v45 = vmul.f32 -1.442695, %v1421_v61  ;;  %v1604_v41 = vmul.f32 -1.442695, %v1422_v53 }
 0x580   :  { %1675 = vpow2.f32 %v1603_v45 }
 0x581   :  { %1677 = vpow2.f32 %v1604_v41 }
 0x58a   :  { %v1676_v37 = vpop.eup %1675 }
 0x58b   :  { %v1678_v55 = vpop.eup %1677  ;;  %v1429_v50 = vadd.f32 1.0, %v1676_v37 }
 0x58c   :  { %v1430_v39 = vadd.f32 1.0, %v1678_v55 }
 0x58d   :  { %1679 = vrcp.f32 %v1429_v50 }
 0x58e   :  { %1681 = vrcp.f32 %v1430_v39 }
 0x597   :  { %v1680_v13 = vpop.eup %1679 }
 0x598   :  { %v1682_v12 = vpop.eup %1681 }
 0x599   :  { %v1437_v29 = vcombine.low %v1680_v13, %v1682_v12 }
 0x59b   :  { %v1444_v24 = vrot.slane %v1437_v29, %v1443_v62 }
 0x59d   :  { %v1445_v25 = vcombine.high %v1444_v24, %v1444_v24  ;;  %v1452_v17 = vrot.slane %v1444_v24, %v1443_v62 }
 0x59f   :  { %v1459_v8 = vrot.slane %v1445_v25, %v1443_v62  ;;  %v1463_v51 = vrot.slane %v1452_v17, %v4281_v36  ;;  %v1467_v38 = vrot.slane %v1452_v17, %v4282_v35 }
 0x5a1   :  { %v1471_v27 = vrot.slane %v1459_v8, %v4281_v36  ;;  %v1475_v44 = vrot.slane %v1459_v8, %v4282_v35  ;;  %v1476_v10 = vcombine.low %v1463_v51, %v1467_v38 }
 0x5a3   :  { %v1477_v34 = vcombine.low %v1471_v27, %v1475_v44  ;;  %v1480_v18 = vmul.f32 %v1476_v10, %v4283_v5 }
 0x5a5   :  { %v1481_v15 = vmul.f32 %v1477_v34, %v4284_v19  ;;  %1482 = vst [vmem:[#allocation5] sm:$0xff] %v1480_v18 }
 0x5a7   :  { %1483 = vst [vmem:[#allocation5 + $0x8] sm:$0xff] %v1481_v15 }
 0x5a8   :  { %1706 = shalt.err (!%p1703_p9)
}
 0x5a9   :  { %s1707_s5 = scalar_lea.hbm %s3854_s3, 256 }
 0x5aa   :  { %p1708_p10 = scmp.ne.s32.totalorder %s3854_s3, %s1707_s5  ;;  %p1711_p11 = scmp.lt.u32.totalorder %s1707_s5, %s3854_s3 }
 0x5ac   :  { %p1713_p12 = pnand %p1711_p11, %p1708_p10 }
 0x5ae   :  { %1716 = shalt.err (!%p1713_p12)
}
 0x5af   :  { %s1773_s10 = smov 128   ;;  %s1774_s11 = smov 8  }
 0x5b0   :  { %1495 = dma.vmem_to_hbm [thread:$0]  %s1490_s28, 256, %s3854_s3, [#allocation3], %s1773_s10, %s1773_s10, %s1774_s11  }
 0x5b1   :  { %1719 = dma.done.wait [#allocation3], 256  }
 0x5b2   :  { %1720 = vsyncadd [#allocation3], 4294967040 }
 0x5b3   :  { %1499 = vsyncpa [#allocation3], 1 }
 0x5b4   :  { %1500 = vsyncpa [#allocation4], 1 }

</bundles_post_ra>
